<compile_context>
chip_gen: v7x
topology: tpu7x:2x2x1
jax: 0.10.0
libtpu: 0.0.40
codegen_flags: <defaults>
</compile_context>

<pallas_src>
import functools

import jax
import jax.numpy as jnp
from jax import lax
from jax.experimental import pallas as pl
from jax.experimental.pallas import tpu as pltpu  # noqa: F401  (kept for completeness)

NB_HIDDEN = 128
SM_W = max(128, NB_HIDDEN)          # lane width of the packed small-operand array


# --------------------------------------------------------------------------------------
# Fused Pallas kernel: both branches + final difference in one invocation
# --------------------------------------------------------------------------------------
def _fused_kernel(p_ref, w1_ref, w2_ref, wf1_ref, wf2_ref, sm_ref, o_ref, *, batch):
    """Whole TwoBranchesModel forward.

    p_ref  : (2, 144*B, 9)   conv1 im2col patches; rows (dy,dx,i,j,b), cols ky*3+kx
    w1_ref : (2, 9, 32)      conv1 weight, rows ky*3+kx
    w2_ref : (2, 288, 64)    conv2 weight, rows (ky*3+kx)*32 + ci
    wf1_ref: (2, 64, 4*H)    fc1 weight, rows = channel c, lanes = (pi*2+pj)*H + h
    wf2_ref: (2, H, 10)
    sm_ref : (2, 6, SM_W)    packed: cb1, cb2, fb1, fb2, fw3, fb3 (one row each)
    o_ref  : (B, 1)          output_2 - output_1
    """
    B = batch
    H = NB_HIDDEN

    def branch(br):
        sm = sm_ref[br]                              # [6, SM_W]
        cb1 = sm[0:1, 0:32]
        cb2 = sm[1:2, 0:64]
        fb1 = sm[2:3, 0:H]
        fb2 = sm[3:4, 0:10]
        fw3 = sm[4:5, 0:10]
        fb3 = sm[5:6, 0:1]

        # ---- conv1 (1->32, k=3) as one matmul, then 2x2 max-pool + ReLU ----------------
        h1 = jnp.dot(p_ref[br], w1_ref[br],
                     preferred_element_type=jnp.float32) + cb1        # [144B, 32]
        n1 = 36 * B
        p1 = jnp.maximum(jnp.maximum(h1[0:n1], h1[n1:2 * n1]),
                         jnp.maximum(h1[2 * n1:3 * n1], h1[3 * n1:4 * n1]))
        p1 = jnp.maximum(p1, 0.0)                    # [36B, 32], rows (i, j, b)

        # ---- conv2 (32->64, k=3): 9 shifted matmuls built from static row slices -------
        w2 = w2_ref[br]                              # [288, 64]
        acc = jnp.zeros((16 * B, 64), jnp.float32)   # rows (oy, ox, b), oy,ox in 0..3
        for ky in range(3):
            for kx in range(3):
                lhs = jnp.concatenate(
                    [p1[(oy + ky) * 6 * B + kx * B:(oy + ky) * 6 * B + (kx + 4) * B]
                     for oy in range(4)], axis=0)                     # [16B, 32]
                k = ky * 3 + kx
                acc = acc + jnp.dot(lhs, w2[k * 32:(k + 1) * 32],
                                    preferred_element_type=jnp.float32)
        acc = acc + cb2                              # [16B, 64]

        # ---- 2x2 max-pool + ReLU -> four [B,64] blocks, order q = pi*2 + pj ------------
        pooled = []
        for pi in range(2):
            for pj in range(2):
                offs = [(2 * pi + dy) * 4 * B + (2 * pj + dx) * B
                        for dy in range(2) for dx in range(2)]
                m = jnp.maximum(
                    jnp.maximum(acc[offs[0]:offs[0] + B], acc[offs[1]:offs[1] + B]),
                    jnp.maximum(acc[offs[2]:offs[2] + B], acc[offs[3]:offs[3] + B]))
                pooled.append(jnp.maximum(m, 0.0))
        stacked = jnp.concatenate(pooled, axis=0)    # [4B, 64], rows (q, b)

        # ---- fc1 as ONE wide matmul; extract the (8,128)-aligned block diagonal --------
        y = jnp.dot(stacked, wf1_ref[br],
                    preferred_element_type=jnp.float32)               # [4B, 4H]
        f1 = fb1 + (y[0:B, 0:H] + y[B:2 * B, H:2 * H]
                    + y[2 * B:3 * B, 2 * H:3 * H] + y[3 * B:4 * B, 3 * H:4 * H])
        f1 = jnp.maximum(f1, 0.0)                    # [B, H]

        # ---- fc2 + ReLU, fc3 (10 -> 1) as broadcast-multiply + lane reduction ----------
        f2 = jnp.maximum(jnp.dot(f1, wf2_ref[br],
                                 preferred_element_type=jnp.float32) + fb2, 0.0)  # [B, 10]
        return jnp.sum(f2 * fw3, axis=-1, keepdims=True) + fb3                    # [B, 1]

    o_ref[...] = branch(1) - branch(0)


# --------------------------------------------------------------------------------------
# Wrapper glue: conv1 im2col via static strided slices only (no gather)
# --------------------------------------------------------------------------------------
def _conv1_patches(x):
    """x: [B, 2, 14, 14] -> [2, 144*B, 9]; rows (dy,dx,i,j,b), cols ky*3+kx."""
    B = x.shape[0]
    xt = jnp.transpose(x, (1, 2, 3, 0))              # [2, 14, 14, B]
    cols = []
    for ky in range(3):
        for kx in range(3):
            blocks = [xt[:, dy + ky:dy + ky + 11:2, dx + kx:dx + kx + 11:2, :]  # [2,6,6,B]
                      for dy in range(2) for dx in range(2)]
            col = jnp.stack(blocks, axis=1)          # [2, 4, 6, 6, B]
            cols.append(col.reshape(2, 4 * 36 * B))
    return jnp.stack(cols, axis=-1)                  # [2, 144B, 9]


# --------------------------------------------------------------------------------------
# Parameters (PyTorch shape conventions) + kernel layout conversion
# --------------------------------------------------------------------------------------
def init_branch_params(key):
    ks = jax.random.split(key, 10)
    return dict(
        cw1=jax.random.normal(ks[0], (32, 1, 3, 3), jnp.float32) * 0.2,
        cb1=jax.random.normal(ks[1], (32,), jnp.float32) * 0.1,
        cw2=jax.random.normal(ks[2], (64, 32, 3, 3), jnp.float32) * 0.05,
        cb2=jax.random.normal(ks[3], (64,), jnp.float32) * 0.1,
        fw1=jax.random.normal(ks[4], (NB_HIDDEN, 256), jnp.float32) * 0.05,
        fb1=jax.random.normal(ks[5], (NB_HIDDEN,), jnp.float32) * 0.1,
        fw2=jax.random.normal(ks[6], (10, NB_HIDDEN), jnp.float32) * 0.05,
        fb2=jax.random.normal(ks[7], (10,), jnp.float32) * 0.1,
        fw3=jax.random.normal(ks[8], (1, 10), jnp.float32) * 0.1,
        fb3=jax.random.normal(ks[9], (1,), jnp.float32) * 0.1,
    )


def to_kernel_layout(p):
    H = NB_HIDDEN
    W1 = p["cw1"].reshape(32, 9).T                              # [9, 32]
    W2 = p["cw2"].transpose(2, 3, 1, 0).reshape(288, 64)        # rows (ky*3+kx)*32 + ci
    # PyTorch flattens NCHW as c*4 + (pi*2+pj).  Store fc1 as [c, (pi*2+pj)*H + h] so the
    # kernel can use one wide matmul and sum the aligned block diagonal.
    Wf1 = p["fw1"].T.reshape(64, 4 * H)                         # [64, 4H]
    Wf2 = p["fw2"].T                                            # [H, 10]
    sm = jnp.zeros((6, SM_W), jnp.float32)
    sm = sm.at[0, 0:32].set(p["cb1"])
    sm = sm.at[1, 0:64].set(p["cb2"])
    sm = sm.at[2, 0:H].set(p["fb1"])
    sm = sm.at[3, 0:10].set(p["fb2"])
    sm = sm.at[4, 0:10].set(p["fw3"][0])
    sm = sm.at[5, 0:1].set(p["fb3"])
    return (W1, W2, Wf1, Wf2, sm)


# --------------------------------------------------------------------------------------
# Forward pass
# --------------------------------------------------------------------------------------
@jax.jit
def two_branches_forward(x, kparams):
    """x: [B, 2, 14, 14] float32 (NCHW, like PyTorch)  ->  [B] float32."""
    B = x.shape[0]
    Bp = ((B + 7) // 8) * 8                          # keep row slices sublane-aligned
    if Bp != B:
        x = jnp.pad(x, ((0, Bp - B), (0, 0), (0, 0), (0, 0)))

    patches = _conv1_patches(x)                      # [2, 144*Bp, 9]
    W1, W2, Wf1, Wf2, SM = kparams                   # each stacked over branch on dim 0

    out = pl.pallas_call(
        functools.partial(_fused_kernel, batch=Bp),
        out_shape=jax.ShapeDtypeStruct((Bp, 1), jnp.float32),
    )(patches, W1, W2, Wf1, Wf2, SM)
    # TODO(synk): output is (Bp, 1); a fully lane-dense (1, Bp) store would need an
    # in-kernel transpose of an 8x1 tile -- at this size both are a single masked vst.
    return out[:B, 0]


# --------------------------------------------------------------------------------------
# Pure-JAX reference (lax conv / reduce_window) for correctness check
# --------------------------------------------------------------------------------------
def ref_branch(xb, p):
    dn = ("NCHW", "OIHW", "NCHW")
    y = lax.conv_general_dilated(xb[:, None], p["cw1"], (1, 1), "VALID",
                                 dimension_numbers=dn) + p["cb1"][None, :, None, None]
    y = lax.reduce_window(y, -jnp.inf, lax.max, (1, 1, 2, 2), (1, 1, 2, 2), "VALID")
    y = jnp.maximum(y, 0.0)
    y = lax.conv_general_dilated(y, p["cw2"], (1, 1), "VALID",
                                 dimension_numbers=dn) + p["cb2"][None, :, None, None]
    y = lax.reduce_window(y, -jnp.inf, lax.max, (1, 1, 2, 2), (1, 1, 2, 2), "VALID")
    y = jnp.maximum(y, 0.0)
    y = y.reshape(y.shape[0], -1)                    # NCHW flatten -> [B, 256]
    y = jnp.maximum(y @ p["fw1"].T + p["fb1"], 0.0)
    y = jnp.maximum(y @ p["fw2"].T + p["fb2"], 0.0)
    y = y @ p["fw3"].T + p["fb3"]
    return y[:, 0]


def ref_forward(x, params_first, params_second):
    return ref_branch(x[:, 1], params_second) - ref_branch(x[:, 0], params_first)


# --------------------------------------------------------------------------------------
if __name__ == "__main__":
    key = jax.random.PRNGKey(0)
    k_x, k_p1, k_p2 = jax.random.split(key, 3)

    B = 8
    x = jax.random.normal(k_x, (B, 2, 14, 14), jnp.float32)

    params_first = init_branch_params(k_p1)
    params_second = init_branch_params(k_p2)

    kparams = tuple(jnp.stack([a, b], axis=0)
                    for a, b in zip(to_kernel_layout(params_first),
                                    to_kernel_layout(params_second)))

    out = jax.block_until_ready(two_branches_forward(x, kparams))

    ref = ref_forward(x, params_first, params_second)
    assert out.shape == (B,)
    assert jnp.allclose(out, ref, atol=1e-4, rtol=1e-4), (out, ref)

    print("KERNEL_OK")
</pallas_src>

<mosaic_0001>
module attributes {stable_mosaic.version = 11 : i64} {
  func.func @_fused_kernel(%arg0: memref<2x1152x9xf32, #tpu.memory_space<vmem>>, %arg1: memref<2x9x32xf32, #tpu.memory_space<vmem>>, %arg2: memref<2x288x64xf32, #tpu.memory_space<vmem>>, %arg3: memref<2x64x512xf32, #tpu.memory_space<vmem>>, %arg4: memref<2x128x10xf32, #tpu.memory_space<vmem>>, %arg5: memref<2x6x128xf32, #tpu.memory_space<vmem>>, %arg6: memref<8x1xf32, #tpu.memory_space<vmem>>) attributes {dimension_semantics = [], scalar_prefetch = 0 : i64, scratch_operands = 0 : i64, tpu.core_type = #tpu.core_type<tc>} {
    %c1 = arith.constant 1 : index
    %c0 = arith.constant 0 : index
    %c0_0 = arith.constant 0 : index
    %0 = vector.load %arg5[%c1, %c0, %c0_0] : memref<2x6x128xf32, #tpu.memory_space<vmem>>, vector<1x6x128xf32>
    %1 = vector.shape_cast %0 : vector<1x6x128xf32> to vector<6x128xf32>
    %2 = vector.extract_strided_slice %1 {offsets = [0, 0], sizes = [1, 32], strides = [1, 1]} : vector<6x128xf32> to vector<1x32xf32>
    %3 = vector.extract_strided_slice %1 {offsets = [1, 0], sizes = [1, 64], strides = [1, 1]} : vector<6x128xf32> to vector<1x64xf32>
    %4 = vector.extract_strided_slice %1 {offsets = [2, 0], sizes = [1, 128], strides = [1, 1]} : vector<6x128xf32> to vector<1x128xf32>
    %5 = vector.extract_strided_slice %1 {offsets = [3, 0], sizes = [1, 10], strides = [1, 1]} : vector<6x128xf32> to vector<1x10xf32>
    %6 = vector.extract_strided_slice %1 {offsets = [4, 0], sizes = [1, 10], strides = [1, 1]} : vector<6x128xf32> to vector<1x10xf32>
    %7 = vector.extract_strided_slice %1 {offsets = [5, 0], sizes = [1, 1], strides = [1, 1]} : vector<6x128xf32> to vector<1x1xf32>
    %c1_1 = arith.constant 1 : index
    %c0_2 = arith.constant 0 : index
    %c0_3 = arith.constant 0 : index
    %8 = vector.load %arg0[%c1_1, %c0_2, %c0_3] : memref<2x1152x9xf32, #tpu.memory_space<vmem>>, vector<1x1152x9xf32>
    %9 = vector.shape_cast %8 : vector<1x1152x9xf32> to vector<1152x9xf32>
    %c1_4 = arith.constant 1 : index
    %c0_5 = arith.constant 0 : index
    %c0_6 = arith.constant 0 : index
    %10 = vector.load %arg1[%c1_4, %c0_5, %c0_6] : memref<2x9x32xf32, #tpu.memory_space<vmem>>, vector<1x9x32xf32>
    %11 = vector.shape_cast %10 : vector<1x9x32xf32> to vector<9x32xf32>
    %cst = arith.constant dense<0.000000e+00> : vector<1152x32xf32>
    %12 = tpu.matmul %9, %11, %cst {dimension_numbers = #tpu.dot_dimension_numbers<[1], [0], [0], [1], [0, 0, 1, 1], [], []>} : vector<1152x9xf32>, vector<9x32xf32>, vector<1152x32xf32> -> vector<1152x32xf32>
    %13 = vector.broadcast %2 : vector<1x32xf32> to vector<1152x32xf32>
    %14 = arith.addf %12, %13 : vector<1152x32xf32>
    %15 = vector.extract_strided_slice %14 {offsets = [0, 0], sizes = [288, 32], strides = [1, 1]} : vector<1152x32xf32> to vector<288x32xf32>
    %16 = vector.extract_strided_slice %14 {offsets = [288, 0], sizes = [288, 32], strides = [1, 1]} : vector<1152x32xf32> to vector<288x32xf32>
    %17 = arith.maximumf %15, %16 : vector<288x32xf32>
    %18 = vector.extract_strided_slice %14 {offsets = [576, 0], sizes = [288, 32], strides = [1, 1]} : vector<1152x32xf32> to vector<288x32xf32>
    %19 = vector.extract_strided_slice %14 {offsets = [864, 0], sizes = [288, 32], strides = [1, 1]} : vector<1152x32xf32> to vector<288x32xf32>
    %20 = arith.maximumf %18, %19 : vector<288x32xf32>
    %21 = arith.maximumf %17, %20 : vector<288x32xf32>
    %cst_7 = arith.constant 0.000000e+00 : f32
    %22 = vector.broadcast %cst_7 : f32 to vector<288x32xf32>
    %23 = arith.maximumf %21, %22 : vector<288x32xf32>
    %c1_8 = arith.constant 1 : index
    %c0_9 = arith.constant 0 : index
    %c0_10 = arith.constant 0 : index
    %24 = vector.load %arg2[%c1_8, %c0_9, %c0_10] : memref<2x288x64xf32, #tpu.memory_space<vmem>>, vector<1x288x64xf32>
    %25 = vector.shape_cast %24 : vector<1x288x64xf32> to vector<288x64xf32>
    %cst_11 = arith.constant 0.000000e+00 : f32
    %26 = vector.broadcast %cst_11 : f32 to vector<128x64xf32>
    %27 = vector.extract_strided_slice %23 {offsets = [0, 0], sizes = [32, 32], strides = [1, 1]} : vector<288x32xf32> to vector<32x32xf32>
    %28 = vector.extract_strided_slice %23 {offsets = [48, 0], sizes = [32, 32], strides = [1, 1]} : vector<288x32xf32> to vector<32x32xf32>
    %29 = vector.extract_strided_slice %23 {offsets = [96, 0], sizes = [32, 32], strides = [1, 1]} : vector<288x32xf32> to vector<32x32xf32>
    %30 = vector.extract_strided_slice %23 {offsets = [144, 0], sizes = [32, 32], strides = [1, 1]} : vector<288x32xf32> to vector<32x32xf32>
    %31 = tpu.concatenate %27, %28, %29, %30 in 0 : vector<32x32xf32>, vector<32x32xf32>, vector<32x32xf32>, vector<32x32xf32> -> vector<128x32xf32>
    %32 = vector.extract_strided_slice %25 {offsets = [0, 0], sizes = [32, 64], strides = [1, 1]} : vector<288x64xf32> to vector<32x64xf32>
    %cst_12 = arith.constant dense<0.000000e+00> : vector<128x64xf32>
    %33 = tpu.matmul %31, %32, %cst_12 {dimension_numbers = #tpu.dot_dimension_numbers<[1], [0], [0], [1], [0, 0, 1, 1], [], []>} : vector<128x32xf32>, vector<32x64xf32>, vector<128x64xf32> -> vector<128x64xf32>
    %34 = arith.addf %26, %33 : vector<128x64xf32>
    %35 = vector.extract_strided_slice %23 {offsets = [8, 0], sizes = [32, 32], strides = [1, 1]} : vector<288x32xf32> to vector<32x32xf32>
    %36 = vector.extract_strided_slice %23 {offsets = [56, 0], sizes = [32, 32], strides = [1, 1]} : vector<288x32xf32> to vector<32x32xf32>
    %37 = vector.extract_strided_slice %23 {offsets = [104, 0], sizes = [32, 32], strides = [1, 1]} : vector<288x32xf32> to vector<32x32xf32>
    %38 = vector.extract_strided_slice %23 {offsets = [152, 0], sizes = [32, 32], strides = [1, 1]} : vector<288x32xf32> to vector<32x32xf32>
    %39 = tpu.concatenate %35, %36, %37, %38 in 0 : vector<32x32xf32>, vector<32x32xf32>, vector<32x32xf32>, vector<32x32xf32> -> vector<128x32xf32>
    %40 = vector.extract_strided_slice %25 {offsets = [32, 0], sizes = [32, 64], strides = [1, 1]} : vector<288x64xf32> to vector<32x64xf32>
    %cst_13 = arith.constant dense<0.000000e+00> : vector<128x64xf32>
    %41 = tpu.matmul %39, %40, %cst_13 {dimension_numbers = #tpu.dot_dimension_numbers<[1], [0], [0], [1], [0, 0, 1, 1], [], []>} : vector<128x32xf32>, vector<32x64xf32>, vector<128x64xf32> -> vector<128x64xf32>
    %42 = arith.addf %34, %41 : vector<128x64xf32>
    %43 = vector.extract_strided_slice %23 {offsets = [16, 0], sizes = [32, 32], strides = [1, 1]} : vector<288x32xf32> to vector<32x32xf32>
    %44 = vector.extract_strided_slice %23 {offsets = [64, 0], sizes = [32, 32], strides = [1, 1]} : vector<288x32xf32> to vector<32x32xf32>
    %45 = vector.extract_strided_slice %23 {offsets = [112, 0], sizes = [32, 32], strides = [1, 1]} : vector<288x32xf32> to vector<32x32xf32>
    %46 = vector.extract_strided_slice %23 {offsets = [160, 0], sizes = [32, 32], strides = [1, 1]} : vector<288x32xf32> to vector<32x32xf32>
    %47 = tpu.concatenate %43, %44, %45, %46 in 0 : vector<32x32xf32>, vector<32x32xf32>, vector<32x32xf32>, vector<32x32xf32> -> vector<128x32xf32>
    %48 = vector.extract_strided_slice %25 {offsets = [64, 0], sizes = [32, 64], strides = [1, 1]} : vector<288x64xf32> to vector<32x64xf32>
    %cst_14 = arith.constant dense<0.000000e+00> : vector<128x64xf32>
    %49 = tpu.matmul %47, %48, %cst_14 {dimension_numbers = #tpu.dot_dimension_numbers<[1], [0], [0], [1], [0, 0, 1, 1], [], []>} : vector<128x32xf32>, vector<32x64xf32>, vector<128x64xf32> -> vector<128x64xf32>
    %50 = arith.addf %42, %49 : vector<128x64xf32>
    %51 = vector.extract_strided_slice %23 {offsets = [48, 0], sizes = [32, 32], strides = [1, 1]} : vector<288x32xf32> to vector<32x32xf32>
    %52 = vector.extract_strided_slice %23 {offsets = [96, 0], sizes = [32, 32], strides = [1, 1]} : vector<288x32xf32> to vector<32x32xf32>
    %53 = vector.extract_strided_slice %23 {offsets = [144, 0], sizes = [32, 32], strides = [1, 1]} : vector<288x32xf32> to vector<32x32xf32>
    %54 = vector.extract_strided_slice %23 {offsets = [192, 0], sizes = [32, 32], strides = [1, 1]} : vector<288x32xf32> to vector<32x32xf32>
    %55 = tpu.concatenate %51, %52, %53, %54 in 0 : vector<32x32xf32>, vector<32x32xf32>, vector<32x32xf32>, vector<32x32xf32> -> vector<128x32xf32>
    %56 = vector.extract_strided_slice %25 {offsets = [96, 0], sizes = [32, 64], strides = [1, 1]} : vector<288x64xf32> to vector<32x64xf32>
    %cst_15 = arith.constant dense<0.000000e+00> : vector<128x64xf32>
    %57 = tpu.matmul %55, %56, %cst_15 {dimension_numbers = #tpu.dot_dimension_numbers<[1], [0], [0], [1], [0, 0, 1, 1], [], []>} : vector<128x32xf32>, vector<32x64xf32>, vector<128x64xf32> -> vector<128x64xf32>
    %58 = arith.addf %50, %57 : vector<128x64xf32>
    %59 = vector.extract_strided_slice %23 {offsets = [56, 0], sizes = [32, 32], strides = [1, 1]} : vector<288x32xf32> to vector<32x32xf32>
    %60 = vector.extract_strided_slice %23 {offsets = [104, 0], sizes = [32, 32], strides = [1, 1]} : vector<288x32xf32> to vector<32x32xf32>
    %61 = vector.extract_strided_slice %23 {offsets = [152, 0], sizes = [32, 32], strides = [1, 1]} : vector<288x32xf32> to vector<32x32xf32>
    %62 = vector.extract_strided_slice %23 {offsets = [200, 0], sizes = [32, 32], strides = [1, 1]} : vector<288x32xf32> to vector<32x32xf32>
    %63 = tpu.concatenate %59, %60, %61, %62 in 0 : vector<32x32xf32>, vector<32x32xf32>, vector<32x32xf32>, vector<32x32xf32> -> vector<128x32xf32>
    %64 = vector.extract_strided_slice %25 {offsets = [128, 0], sizes = [32, 64], strides = [1, 1]} : vector<288x64xf32> to vector<32x64xf32>
    %cst_16 = arith.constant dense<0.000000e+00> : vector<128x64xf32>
    %65 = tpu.matmul %63, %64, %cst_16 {dimension_numbers = #tpu.dot_dimension_numbers<[1], [0], [0], [1], [0, 0, 1, 1], [], []>} : vector<128x32xf32>, vector<32x64xf32>, vector<128x64xf32> -> vector<128x64xf32>
    %66 = arith.addf %58, %65 : vector<128x64xf32>
    %67 = vector.extract_strided_slice %23 {offsets = [64, 0], sizes = [32, 32], strides = [1, 1]} : vector<288x32xf32> to vector<32x32xf32>
    %68 = vector.extract_strided_slice %23 {offsets = [112, 0], sizes = [32, 32], strides = [1, 1]} : vector<288x32xf32> to vector<32x32xf32>
    %69 = vector.extract_strided_slice %23 {offsets = [160, 0], sizes = [32, 32], strides = [1, 1]} : vector<288x32xf32> to vector<32x32xf32>
    %70 = vector.extract_strided_slice %23 {offsets = [208, 0], sizes = [32, 32], strides = [1, 1]} : vector<288x32xf32> to vector<32x32xf32>
    %71 = tpu.concatenate %67, %68, %69, %70 in 0 : vector<32x32xf32>, vector<32x32xf32>, vector<32x32xf32>, vector<32x32xf32> -> vector<128x32xf32>
    %72 = vector.extract_strided_slice %25 {offsets = [160, 0], sizes = [32, 64], strides = [1, 1]} : vector<288x64xf32> to vector<32x64xf32>
    %cst_17 = arith.constant dense<0.000000e+00> : vector<128x64xf32>
    %73 = tpu.matmul %71, %72, %cst_17 {dimension_numbers = #tpu.dot_dimension_numbers<[1], [0], [0], [1], [0, 0, 1, 1], [], []>} : vector<128x32xf32>, vector<32x64xf32>, vector<128x64xf32> -> vector<128x64xf32>
    %74 = arith.addf %66, %73 : vector<128x64xf32>
    %75 = vector.extract_strided_slice %23 {offsets = [96, 0], sizes = [32, 32], strides = [1, 1]} : vector<288x32xf32> to vector<32x32xf32>
    %76 = vector.extract_strided_slice %23 {offsets = [144, 0], sizes = [32, 32], strides = [1, 1]} : vector<288x32xf32> to vector<32x32xf32>
    %77 = vector.extract_strided_slice %23 {offsets = [192, 0], sizes = [32, 32], strides = [1, 1]} : vector<288x32xf32> to vector<32x32xf32>
    %78 = vector.extract_strided_slice %23 {offsets = [240, 0], sizes = [32, 32], strides = [1, 1]} : vector<288x32xf32> to vector<32x32xf32>
    %79 = tpu.concatenate %75, %76, %77, %78 in 0 : vector<32x32xf32>, vector<32x32xf32>, vector<32x32xf32>, vector<32x32xf32> -> vector<128x32xf32>
    %80 = vector.extract_strided_slice %25 {offsets = [192, 0], sizes = [32, 64], strides = [1, 1]} : vector<288x64xf32> to vector<32x64xf32>
    %cst_18 = arith.constant dense<0.000000e+00> : vector<128x64xf32>
    %81 = tpu.matmul %79, %80, %cst_18 {dimension_numbers = #tpu.dot_dimension_numbers<[1], [0], [0], [1], [0, 0, 1, 1], [], []>} : vector<128x32xf32>, vector<32x64xf32>, vector<128x64xf32> -> vector<128x64xf32>
    %82 = arith.addf %74, %81 : vector<128x64xf32>
    %83 = vector.extract_strided_slice %23 {offsets = [104, 0], sizes = [32, 32], strides = [1, 1]} : vector<288x32xf32> to vector<32x32xf32>
    %84 = vector.extract_strided_slice %23 {offsets = [152, 0], sizes = [32, 32], strides = [1, 1]} : vector<288x32xf32> to vector<32x32xf32>
    %85 = vector.extract_strided_slice %23 {offsets = [200, 0], sizes = [32, 32], strides = [1, 1]} : vector<288x32xf32> to vector<32x32xf32>
    %86 = vector.extract_strided_slice %23 {offsets = [248, 0], sizes = [32, 32], strides = [1, 1]} : vector<288x32xf32> to vector<32x32xf32>
    %87 = tpu.concatenate %83, %84, %85, %86 in 0 : vector<32x32xf32>, vector<32x32xf32>, vector<32x32xf32>, vector<32x32xf32> -> vector<128x32xf32>
    %88 = vector.extract_strided_slice %25 {offsets = [224, 0], sizes = [32, 64], strides = [1, 1]} : vector<288x64xf32> to vector<32x64xf32>
    %cst_19 = arith.constant dense<0.000000e+00> : vector<128x64xf32>
    %89 = tpu.matmul %87, %88, %cst_19 {dimension_numbers = #tpu.dot_dimension_numbers<[1], [0], [0], [1], [0, 0, 1, 1], [], []>} : vector<128x32xf32>, vector<32x64xf32>, vector<128x64xf32> -> vector<128x64xf32>
    %90 = arith.addf %82, %89 : vector<128x64xf32>
    %91 = vector.extract_strided_slice %23 {offsets = [112, 0], sizes = [32, 32], strides = [1, 1]} : vector<288x32xf32> to vector<32x32xf32>
    %92 = vector.extract_strided_slice %23 {offsets = [160, 0], sizes = [32, 32], strides = [1, 1]} : vector<288x32xf32> to vector<32x32xf32>
    %93 = vector.extract_strided_slice %23 {offsets = [208, 0], sizes = [32, 32], strides = [1, 1]} : vector<288x32xf32> to vector<32x32xf32>
    %94 = vector.extract_strided_slice %23 {offsets = [256, 0], sizes = [32, 32], strides = [1, 1]} : vector<288x32xf32> to vector<32x32xf32>
    %95 = tpu.concatenate %91, %92, %93, %94 in 0 : vector<32x32xf32>, vector<32x32xf32>, vector<32x32xf32>, vector<32x32xf32> -> vector<128x32xf32>
    %96 = vector.extract_strided_slice %25 {offsets = [256, 0], sizes = [32, 64], strides = [1, 1]} : vector<288x64xf32> to vector<32x64xf32>
    %cst_20 = arith.constant dense<0.000000e+00> : vector<128x64xf32>
    %97 = tpu.matmul %95, %96, %cst_20 {dimension_numbers = #tpu.dot_dimension_numbers<[1], [0], [0], [1], [0, 0, 1, 1], [], []>} : vector<128x32xf32>, vector<32x64xf32>, vector<128x64xf32> -> vector<128x64xf32>
    %98 = arith.addf %90, %97 : vector<128x64xf32>
    %99 = vector.broadcast %3 : vector<1x64xf32> to vector<128x64xf32>
    %100 = arith.addf %98, %99 : vector<128x64xf32>
    %101 = vector.extract_strided_slice %100 {offsets = [0, 0], sizes = [8, 64], strides = [1, 1]} : vector<128x64xf32> to vector<8x64xf32>
    %102 = vector.extract_strided_slice %100 {offsets = [8, 0], sizes = [8, 64], strides = [1, 1]} : vector<128x64xf32> to vector<8x64xf32>
    %103 = arith.maximumf %101, %102 : vector<8x64xf32>
    %104 = vector.extract_strided_slice %100 {offsets = [32, 0], sizes = [8, 64], strides = [1, 1]} : vector<128x64xf32> to vector<8x64xf32>
    %105 = vector.extract_strided_slice %100 {offsets = [40, 0], sizes = [8, 64], strides = [1, 1]} : vector<128x64xf32> to vector<8x64xf32>
    %106 = arith.maximumf %104, %105 : vector<8x64xf32>
    %107 = arith.maximumf %103, %106 : vector<8x64xf32>
    %cst_21 = arith.constant 0.000000e+00 : f32
    %108 = vector.broadcast %cst_21 : f32 to vector<8x64xf32>
    %109 = arith.maximumf %107, %108 : vector<8x64xf32>
    %110 = vector.extract_strided_slice %100 {offsets = [16, 0], sizes = [8, 64], strides = [1, 1]} : vector<128x64xf32> to vector<8x64xf32>
    %111 = vector.extract_strided_slice %100 {offsets = [24, 0], sizes = [8, 64], strides = [1, 1]} : vector<128x64xf32> to vector<8x64xf32>
    %112 = arith.maximumf %110, %111 : vector<8x64xf32>
    %113 = vector.extract_strided_slice %100 {offsets = [48, 0], sizes = [8, 64], strides = [1, 1]} : vector<128x64xf32> to vector<8x64xf32>
    %114 = vector.extract_strided_slice %100 {offsets = [56, 0], sizes = [8, 64], strides = [1, 1]} : vector<128x64xf32> to vector<8x64xf32>
    %115 = arith.maximumf %113, %114 : vector<8x64xf32>
    %116 = arith.maximumf %112, %115 : vector<8x64xf32>
    %cst_22 = arith.constant 0.000000e+00 : f32
    %117 = vector.broadcast %cst_22 : f32 to vector<8x64xf32>
    %118 = arith.maximumf %116, %117 : vector<8x64xf32>
    %119 = vector.extract_strided_slice %100 {offsets = [64, 0], sizes = [8, 64], strides = [1, 1]} : vector<128x64xf32> to vector<8x64xf32>
    %120 = vector.extract_strided_slice %100 {offsets = [72, 0], sizes = [8, 64], strides = [1, 1]} : vector<128x64xf32> to vector<8x64xf32>
    %121 = arith.maximumf %119, %120 : vector<8x64xf32>
    %122 = vector.extract_strided_slice %100 {offsets = [96, 0], sizes = [8, 64], strides = [1, 1]} : vector<128x64xf32> to vector<8x64xf32>
    %123 = vector.extract_strided_slice %100 {offsets = [104, 0], sizes = [8, 64], strides = [1, 1]} : vector<128x64xf32> to vector<8x64xf32>
    %124 = arith.maximumf %122, %123 : vector<8x64xf32>
    %125 = arith.maximumf %121, %124 : vector<8x64xf32>
    %cst_23 = arith.constant 0.000000e+00 : f32
    %126 = vector.broadcast %cst_23 : f32 to vector<8x64xf32>
    %127 = arith.maximumf %125, %126 : vector<8x64xf32>
    %128 = vector.extract_strided_slice %100 {offsets = [80, 0], sizes = [8, 64], strides = [1, 1]} : vector<128x64xf32> to vector<8x64xf32>
    %129 = vector.extract_strided_slice %100 {offsets = [88, 0], sizes = [8, 64], strides = [1, 1]} : vector<128x64xf32> to vector<8x64xf32>
    %130 = arith.maximumf %128, %129 : vector<8x64xf32>
    %131 = vector.extract_strided_slice %100 {offsets = [112, 0], sizes = [8, 64], strides = [1, 1]} : vector<128x64xf32> to vector<8x64xf32>
    %132 = vector.extract_strided_slice %100 {offsets = [120, 0], sizes = [8, 64], strides = [1, 1]} : vector<128x64xf32> to vector<8x64xf32>
    %133 = arith.maximumf %131, %132 : vector<8x64xf32>
    %134 = arith.maximumf %130, %133 : vector<8x64xf32>
    %cst_24 = arith.constant 0.000000e+00 : f32
    %135 = vector.broadcast %cst_24 : f32 to vector<8x64xf32>
    %136 = arith.maximumf %134, %135 : vector<8x64xf32>
    %137 = tpu.concatenate %109, %118, %127, %136 in 0 : vector<8x64xf32>, vector<8x64xf32>, vector<8x64xf32>, vector<8x64xf32> -> vector<32x64xf32>
    %c1_25 = arith.constant 1 : index
    %c0_26 = arith.constant 0 : index
    %c0_27 = arith.constant 0 : index
    %138 = vector.load %arg3[%c1_25, %c0_26, %c0_27] : memref<2x64x512xf32, #tpu.memory_space<vmem>>, vector<1x64x512xf32>
    %139 = vector.shape_cast %138 : vector<1x64x512xf32> to vector<64x512xf32>
    %cst_28 = arith.constant dense<0.000000e+00> : vector<32x512xf32>
    %140 = tpu.matmul %137, %139, %cst_28 {dimension_numbers = #tpu.dot_dimension_numbers<[1], [0], [0], [1], [0, 0, 1, 1], [], []>} : vector<32x64xf32>, vector<64x512xf32>, vector<32x512xf32> -> vector<32x512xf32>
    %141 = vector.extract_strided_slice %140 {offsets = [0, 0], sizes = [8, 128], strides = [1, 1]} : vector<32x512xf32> to vector<8x128xf32>
    %142 = vector.extract_strided_slice %140 {offsets = [8, 128], sizes = [8, 128], strides = [1, 1]} : vector<32x512xf32> to vector<8x128xf32>
    %143 = arith.addf %141, %142 : vector<8x128xf32>
    %144 = vector.extract_strided_slice %140 {offsets = [16, 256], sizes = [8, 128], strides = [1, 1]} : vector<32x512xf32> to vector<8x128xf32>
    %145 = arith.addf %143, %144 : vector<8x128xf32>
    %146 = vector.extract_strided_slice %140 {offsets = [24, 384], sizes = [8, 128], strides = [1, 1]} : vector<32x512xf32> to vector<8x128xf32>
    %147 = arith.addf %145, %146 : vector<8x128xf32>
    %148 = vector.broadcast %4 : vector<1x128xf32> to vector<8x128xf32>
    %149 = arith.addf %148, %147 : vector<8x128xf32>
    %cst_29 = arith.constant 0.000000e+00 : f32
    %150 = vector.broadcast %cst_29 : f32 to vector<8x128xf32>
    %151 = arith.maximumf %149, %150 : vector<8x128xf32>
    %c1_30 = arith.constant 1 : index
    %c0_31 = arith.constant 0 : index
    %c0_32 = arith.constant 0 : index
    %152 = vector.load %arg4[%c1_30, %c0_31, %c0_32] : memref<2x128x10xf32, #tpu.memory_space<vmem>>, vector<1x128x10xf32>
    %153 = vector.shape_cast %152 : vector<1x128x10xf32> to vector<128x10xf32>
    %cst_33 = arith.constant dense<0.000000e+00> : vector<8x10xf32>
    %154 = tpu.matmul %151, %153, %cst_33 {dimension_numbers = #tpu.dot_dimension_numbers<[1], [0], [0], [1], [0, 0, 1, 1], [], []>} : vector<8x128xf32>, vector<128x10xf32>, vector<8x10xf32> -> vector<8x10xf32>
    %155 = vector.broadcast %5 : vector<1x10xf32> to vector<8x10xf32>
    %156 = arith.addf %154, %155 : vector<8x10xf32>
    %cst_34 = arith.constant 0.000000e+00 : f32
    %157 = vector.broadcast %cst_34 : f32 to vector<8x10xf32>
    %158 = arith.maximumf %156, %157 : vector<8x10xf32>
    %159 = vector.broadcast %6 : vector<1x10xf32> to vector<8x10xf32>
    %160 = arith.mulf %158, %159 : vector<8x10xf32>
    %cst_35 = arith.constant dense<0.000000e+00> : vector<8xf32>
    %161 = vector.multi_reduction <add>, %160, %cst_35 [1] : vector<8x10xf32> to vector<8xf32>
    %162 = vector.shape_cast %161 : vector<8xf32> to vector<8x1xf32>
    %163 = vector.broadcast %7 : vector<1x1xf32> to vector<8x1xf32>
    %164 = arith.addf %162, %163 : vector<8x1xf32>
    %c0_36 = arith.constant 0 : index
    %c0_37 = arith.constant 0 : index
    %c0_38 = arith.constant 0 : index
    %165 = vector.load %arg5[%c0_36, %c0_37, %c0_38] : memref<2x6x128xf32, #tpu.memory_space<vmem>>, vector<1x6x128xf32>
    %166 = vector.shape_cast %165 : vector<1x6x128xf32> to vector<6x128xf32>
    %167 = vector.extract_strided_slice %166 {offsets = [0, 0], sizes = [1, 32], strides = [1, 1]} : vector<6x128xf32> to vector<1x32xf32>
    %168 = vector.extract_strided_slice %166 {offsets = [1, 0], sizes = [1, 64], strides = [1, 1]} : vector<6x128xf32> to vector<1x64xf32>
    %169 = vector.extract_strided_slice %166 {offsets = [2, 0], sizes = [1, 128], strides = [1, 1]} : vector<6x128xf32> to vector<1x128xf32>
    %170 = vector.extract_strided_slice %166 {offsets = [3, 0], sizes = [1, 10], strides = [1, 1]} : vector<6x128xf32> to vector<1x10xf32>
    %171 = vector.extract_strided_slice %166 {offsets = [4, 0], sizes = [1, 10], strides = [1, 1]} : vector<6x128xf32> to vector<1x10xf32>
    %172 = vector.extract_strided_slice %166 {offsets = [5, 0], sizes = [1, 1], strides = [1, 1]} : vector<6x128xf32> to vector<1x1xf32>
    %c0_39 = arith.constant 0 : index
    %c0_40 = arith.constant 0 : index
    %c0_41 = arith.constant 0 : index
    %173 = vector.load %arg0[%c0_39, %c0_40, %c0_41] : memref<2x1152x9xf32, #tpu.memory_space<vmem>>, vector<1x1152x9xf32>
    %174 = vector.shape_cast %173 : vector<1x1152x9xf32> to vector<1152x9xf32>
    %c0_42 = arith.constant 0 : index
    %c0_43 = arith.constant 0 : index
    %c0_44 = arith.constant 0 : index
    %175 = vector.load %arg1[%c0_42, %c0_43, %c0_44] : memref<2x9x32xf32, #tpu.memory_space<vmem>>, vector<1x9x32xf32>
    %176 = vector.shape_cast %175 : vector<1x9x32xf32> to vector<9x32xf32>
    %cst_45 = arith.constant dense<0.000000e+00> : vector<1152x32xf32>
    %177 = tpu.matmul %174, %176, %cst_45 {dimension_numbers = #tpu.dot_dimension_numbers<[1], [0], [0], [1], [0, 0, 1, 1], [], []>} : vector<1152x9xf32>, vector<9x32xf32>, vector<1152x32xf32> -> vector<1152x32xf32>
    %178 = vector.broadcast %167 : vector<1x32xf32> to vector<1152x32xf32>
    %179 = arith.addf %177, %178 : vector<1152x32xf32>
    %180 = vector.extract_strided_slice %179 {offsets = [0, 0], sizes = [288, 32], strides = [1, 1]} : vector<1152x32xf32> to vector<288x32xf32>
    %181 = vector.extract_strided_slice %179 {offsets = [288, 0], sizes = [288, 32], strides = [1, 1]} : vector<1152x32xf32> to vector<288x32xf32>
    %182 = arith.maximumf %180, %181 : vector<288x32xf32>
    %183 = vector.extract_strided_slice %179 {offsets = [576, 0], sizes = [288, 32], strides = [1, 1]} : vector<1152x32xf32> to vector<288x32xf32>
    %184 = vector.extract_strided_slice %179 {offsets = [864, 0], sizes = [288, 32], strides = [1, 1]} : vector<1152x32xf32> to vector<288x32xf32>
    %185 = arith.maximumf %183, %184 : vector<288x32xf32>
    %186 = arith.maximumf %182, %185 : vector<288x32xf32>
    %cst_46 = arith.constant 0.000000e+00 : f32
    %187 = vector.broadcast %cst_46 : f32 to vector<288x32xf32>
    %188 = arith.maximumf %186, %187 : vector<288x32xf32>
    %c0_47 = arith.constant 0 : index
    %c0_48 = arith.constant 0 : index
    %c0_49 = arith.constant 0 : index
    %189 = vector.load %arg2[%c0_47, %c0_48, %c0_49] : memref<2x288x64xf32, #tpu.memory_space<vmem>>, vector<1x288x64xf32>
    %190 = vector.shape_cast %189 : vector<1x288x64xf32> to vector<288x64xf32>
    %cst_50 = arith.constant 0.000000e+00 : f32
    %191 = vector.broadcast %cst_50 : f32 to vector<128x64xf32>
    %192 = vector.extract_strided_slice %188 {offsets = [0, 0], sizes = [32, 32], strides = [1, 1]} : vector<288x32xf32> to vector<32x32xf32>
    %193 = vector.extract_strided_slice %188 {offsets = [48, 0], sizes = [32, 32], strides = [1, 1]} : vector<288x32xf32> to vector<32x32xf32>
    %194 = vector.extract_strided_slice %188 {offsets = [96, 0], sizes = [32, 32], strides = [1, 1]} : vector<288x32xf32> to vector<32x32xf32>
    %195 = vector.extract_strided_slice %188 {offsets = [144, 0], sizes = [32, 32], strides = [1, 1]} : vector<288x32xf32> to vector<32x32xf32>
    %196 = tpu.concatenate %192, %193, %194, %195 in 0 : vector<32x32xf32>, vector<32x32xf32>, vector<32x32xf32>, vector<32x32xf32> -> vector<128x32xf32>
    %197 = vector.extract_strided_slice %190 {offsets = [0, 0], sizes = [32, 64], strides = [1, 1]} : vector<288x64xf32> to vector<32x64xf32>
    %cst_51 = arith.constant dense<0.000000e+00> : vector<128x64xf32>
    %198 = tpu.matmul %196, %197, %cst_51 {dimension_numbers = #tpu.dot_dimension_numbers<[1], [0], [0], [1], [0, 0, 1, 1], [], []>} : vector<128x32xf32>, vector<32x64xf32>, vector<128x64xf32> -> vector<128x64xf32>
    %199 = arith.addf %191, %198 : vector<128x64xf32>
    %200 = vector.extract_strided_slice %188 {offsets = [8, 0], sizes = [32, 32], strides = [1, 1]} : vector<288x32xf32> to vector<32x32xf32>
    %201 = vector.extract_strided_slice %188 {offsets = [56, 0], sizes = [32, 32], strides = [1, 1]} : vector<288x32xf32> to vector<32x32xf32>
    %202 = vector.extract_strided_slice %188 {offsets = [104, 0], sizes = [32, 32], strides = [1, 1]} : vector<288x32xf32> to vector<32x32xf32>
    %203 = vector.extract_strided_slice %188 {offsets = [152, 0], sizes = [32, 32], strides = [1, 1]} : vector<288x32xf32> to vector<32x32xf32>
    %204 = tpu.concatenate %200, %201, %202, %203 in 0 : vector<32x32xf32>, vector<32x32xf32>, vector<32x32xf32>, vector<32x32xf32> -> vector<128x32xf32>
    %205 = vector.extract_strided_slice %190 {offsets = [32, 0], sizes = [32, 64], strides = [1, 1]} : vector<288x64xf32> to vector<32x64xf32>
    %cst_52 = arith.constant dense<0.000000e+00> : vector<128x64xf32>
    %206 = tpu.matmul %204, %205, %cst_52 {dimension_numbers = #tpu.dot_dimension_numbers<[1], [0], [0], [1], [0, 0, 1, 1], [], []>} : vector<128x32xf32>, vector<32x64xf32>, vector<128x64xf32> -> vector<128x64xf32>
    %207 = arith.addf %199, %206 : vector<128x64xf32>
    %208 = vector.extract_strided_slice %188 {offsets = [16, 0], sizes = [32, 32], strides = [1, 1]} : vector<288x32xf32> to vector<32x32xf32>
    %209 = vector.extract_strided_slice %188 {offsets = [64, 0], sizes = [32, 32], strides = [1, 1]} : vector<288x32xf32> to vector<32x32xf32>
    %210 = vector.extract_strided_slice %188 {offsets = [112, 0], sizes = [32, 32], strides = [1, 1]} : vector<288x32xf32> to vector<32x32xf32>
    %211 = vector.extract_strided_slice %188 {offsets = [160, 0], sizes = [32, 32], strides = [1, 1]} : vector<288x32xf32> to vector<32x32xf32>
    %212 = tpu.concatenate %208, %209, %210, %211 in 0 : vector<32x32xf32>, vector<32x32xf32>, vector<32x32xf32>, vector<32x32xf32> -> vector<128x32xf32>
    %213 = vector.extract_strided_slice %190 {offsets = [64, 0], sizes = [32, 64], strides = [1, 1]} : vector<288x64xf32> to vector<32x64xf32>
    %cst_53 = arith.constant dense<0.000000e+00> : vector<128x64xf32>
    %214 = tpu.matmul %212, %213, %cst_53 {dimension_numbers = #tpu.dot_dimension_numbers<[1], [0], [0], [1], [0, 0, 1, 1], [], []>} : vector<128x32xf32>, vector<32x64xf32>, vector<128x64xf32> -> vector<128x64xf32>
    %215 = arith.addf %207, %214 : vector<128x64xf32>
    %216 = vector.extract_strided_slice %188 {offsets = [48, 0], sizes = [32, 32], strides = [1, 1]} : vector<288x32xf32> to vector<32x32xf32>
    %217 = vector.extract_strided_slice %188 {offsets = [96, 0], sizes = [32, 32], strides = [1, 1]} : vector<288x32xf32> to vector<32x32xf32>
    %218 = vector.extract_strided_slice %188 {offsets = [144, 0], sizes = [32, 32], strides = [1, 1]} : vector<288x32xf32> to vector<32x32xf32>
    %219 = vector.extract_strided_slice %188 {offsets = [192, 0], sizes = [32, 32], strides = [1, 1]} : vector<288x32xf32> to vector<32x32xf32>
    %220 = tpu.concatenate %216, %217, %218, %219 in 0 : vector<32x32xf32>, vector<32x32xf32>, vector<32x32xf32>, vector<32x32xf32> -> vector<128x32xf32>
    %221 = vector.extract_strided_slice %190 {offsets = [96, 0], sizes = [32, 64], strides = [1, 1]} : vector<288x64xf32> to vector<32x64xf32>
    %cst_54 = arith.constant dense<0.000000e+00> : vector<128x64xf32>
    %222 = tpu.matmul %220, %221, %cst_54 {dimension_numbers = #tpu.dot_dimension_numbers<[1], [0], [0], [1], [0, 0, 1, 1], [], []>} : vector<128x32xf32>, vector<32x64xf32>, vector<128x64xf32> -> vector<128x64xf32>
    %223 = arith.addf %215, %222 : vector<128x64xf32>
    %224 = vector.extract_strided_slice %188 {offsets = [56, 0], sizes = [32, 32], strides = [1, 1]} : vector<288x32xf32> to vector<32x32xf32>
    %225 = vector.extract_strided_slice %188 {offsets = [104, 0], sizes = [32, 32], strides = [1, 1]} : vector<288x32xf32> to vector<32x32xf32>
    %226 = vector.extract_strided_slice %188 {offsets = [152, 0], sizes = [32, 32], strides = [1, 1]} : vector<288x32xf32> to vector<32x32xf32>
    %227 = vector.extract_strided_slice %188 {offsets = [200, 0], sizes = [32, 32], strides = [1, 1]} : vector<288x32xf32> to vector<32x32xf32>
    %228 = tpu.concatenate %224, %225, %226, %227 in 0 : vector<32x32xf32>, vector<32x32xf32>, vector<32x32xf32>, vector<32x32xf32> -> vector<128x32xf32>
    %229 = vector.extract_strided_slice %190 {offsets = [128, 0], sizes = [32, 64], strides = [1, 1]} : vector<288x64xf32> to vector<32x64xf32>
    %cst_55 = arith.constant dense<0.000000e+00> : vector<128x64xf32>
    %230 = tpu.matmul %228, %229, %cst_55 {dimension_numbers = #tpu.dot_dimension_numbers<[1], [0], [0], [1], [0, 0, 1, 1], [], []>} : vector<128x32xf32>, vector<32x64xf32>, vector<128x64xf32> -> vector<128x64xf32>
    %231 = arith.addf %223, %230 : vector<128x64xf32>
    %232 = vector.extract_strided_slice %188 {offsets = [64, 0], sizes = [32, 32], strides = [1, 1]} : vector<288x32xf32> to vector<32x32xf32>
    %233 = vector.extract_strided_slice %188 {offsets = [112, 0], sizes = [32, 32], strides = [1, 1]} : vector<288x32xf32> to vector<32x32xf32>
    %234 = vector.extract_strided_slice %188 {offsets = [160, 0], sizes = [32, 32], strides = [1, 1]} : vector<288x32xf32> to vector<32x32xf32>
    %235 = vector.extract_strided_slice %188 {offsets = [208, 0], sizes = [32, 32], strides = [1, 1]} : vector<288x32xf32> to vector<32x32xf32>
    %236 = tpu.concatenate %232, %233, %234, %235 in 0 : vector<32x32xf32>, vector<32x32xf32>, vector<32x32xf32>, vector<32x32xf32> -> vector<128x32xf32>
    %237 = vector.extract_strided_slice %190 {offsets = [160, 0], sizes = [32, 64], strides = [1, 1]} : vector<288x64xf32> to vector<32x64xf32>
    %cst_56 = arith.constant dense<0.000000e+00> : vector<128x64xf32>
    %238 = tpu.matmul %236, %237, %cst_56 {dimension_numbers = #tpu.dot_dimension_numbers<[1], [0], [0], [1], [0, 0, 1, 1], [], []>} : vector<128x32xf32>, vector<32x64xf32>, vector<128x64xf32> -> vector<128x64xf32>
    %239 = arith.addf %231, %238 : vector<128x64xf32>
    %240 = vector.extract_strided_slice %188 {offsets = [96, 0], sizes = [32, 32], strides = [1, 1]} : vector<288x32xf32> to vector<32x32xf32>
    %241 = vector.extract_strided_slice %188 {offsets = [144, 0], sizes = [32, 32], strides = [1, 1]} : vector<288x32xf32> to vector<32x32xf32>
    %242 = vector.extract_strided_slice %188 {offsets = [192, 0], sizes = [32, 32], strides = [1, 1]} : vector<288x32xf32> to vector<32x32xf32>
    %243 = vector.extract_strided_slice %188 {offsets = [240, 0], sizes = [32, 32], strides = [1, 1]} : vector<288x32xf32> to vector<32x32xf32>
    %244 = tpu.concatenate %240, %241, %242, %243 in 0 : vector<32x32xf32>, vector<32x32xf32>, vector<32x32xf32>, vector<32x32xf32> -> vector<128x32xf32>
    %245 = vector.extract_strided_slice %190 {offsets = [192, 0], sizes = [32, 64], strides = [1, 1]} : vector<288x64xf32> to vector<32x64xf32>
    %cst_57 = arith.constant dense<0.000000e+00> : vector<128x64xf32>
    %246 = tpu.matmul %244, %245, %cst_57 {dimension_numbers = #tpu.dot_dimension_numbers<[1], [0], [0], [1], [0, 0, 1, 1], [], []>} : vector<128x32xf32>, vector<32x64xf32>, vector<128x64xf32> -> vector<128x64xf32>
    %247 = arith.addf %239, %246 : vector<128x64xf32>
    %248 = vector.extract_strided_slice %188 {offsets = [104, 0], sizes = [32, 32], strides = [1, 1]} : vector<288x32xf32> to vector<32x32xf32>
    %249 = vector.extract_strided_slice %188 {offsets = [152, 0], sizes = [32, 32], strides = [1, 1]} : vector<288x32xf32> to vector<32x32xf32>
    %250 = vector.extract_strided_slice %188 {offsets = [200, 0], sizes = [32, 32], strides = [1, 1]} : vector<288x32xf32> to vector<32x32xf32>
    %251 = vector.extract_strided_slice %188 {offsets = [248, 0], sizes = [32, 32], strides = [1, 1]} : vector<288x32xf32> to vector<32x32xf32>
    %252 = tpu.concatenate %248, %249, %250, %251 in 0 : vector<32x32xf32>, vector<32x32xf32>, vector<32x32xf32>, vector<32x32xf32> -> vector<128x32xf32>
    %253 = vector.extract_strided_slice %190 {offsets = [224, 0], sizes = [32, 64], strides = [1, 1]} : vector<288x64xf32> to vector<32x64xf32>
    %cst_58 = arith.constant dense<0.000000e+00> : vector<128x64xf32>
    %254 = tpu.matmul %252, %253, %cst_58 {dimension_numbers = #tpu.dot_dimension_numbers<[1], [0], [0], [1], [0, 0, 1, 1], [], []>} : vector<128x32xf32>, vector<32x64xf32>, vector<128x64xf32> -> vector<128x64xf32>
    %255 = arith.addf %247, %254 : vector<128x64xf32>
    %256 = vector.extract_strided_slice %188 {offsets = [112, 0], sizes = [32, 32], strides = [1, 1]} : vector<288x32xf32> to vector<32x32xf32>
    %257 = vector.extract_strided_slice %188 {offsets = [160, 0], sizes = [32, 32], strides = [1, 1]} : vector<288x32xf32> to vector<32x32xf32>
    %258 = vector.extract_strided_slice %188 {offsets = [208, 0], sizes = [32, 32], strides = [1, 1]} : vector<288x32xf32> to vector<32x32xf32>
    %259 = vector.extract_strided_slice %188 {offsets = [256, 0], sizes = [32, 32], strides = [1, 1]} : vector<288x32xf32> to vector<32x32xf32>
    %260 = tpu.concatenate %256, %257, %258, %259 in 0 : vector<32x32xf32>, vector<32x32xf32>, vector<32x32xf32>, vector<32x32xf32> -> vector<128x32xf32>
    %261 = vector.extract_strided_slice %190 {offsets = [256, 0], sizes = [32, 64], strides = [1, 1]} : vector<288x64xf32> to vector<32x64xf32>
    %cst_59 = arith.constant dense<0.000000e+00> : vector<128x64xf32>
    %262 = tpu.matmul %260, %261, %cst_59 {dimension_numbers = #tpu.dot_dimension_numbers<[1], [0], [0], [1], [0, 0, 1, 1], [], []>} : vector<128x32xf32>, vector<32x64xf32>, vector<128x64xf32> -> vector<128x64xf32>
    %263 = arith.addf %255, %262 : vector<128x64xf32>
    %264 = vector.broadcast %168 : vector<1x64xf32> to vector<128x64xf32>
    %265 = arith.addf %263, %264 : vector<128x64xf32>
    %266 = vector.extract_strided_slice %265 {offsets = [0, 0], sizes = [8, 64], strides = [1, 1]} : vector<128x64xf32> to vector<8x64xf32>
    %267 = vector.extract_strided_slice %265 {offsets = [8, 0], sizes = [8, 64], strides = [1, 1]} : vector<128x64xf32> to vector<8x64xf32>
    %268 = arith.maximumf %266, %267 : vector<8x64xf32>
    %269 = vector.extract_strided_slice %265 {offsets = [32, 0], sizes = [8, 64], strides = [1, 1]} : vector<128x64xf32> to vector<8x64xf32>
    %270 = vector.extract_strided_slice %265 {offsets = [40, 0], sizes = [8, 64], strides = [1, 1]} : vector<128x64xf32> to vector<8x64xf32>
    %271 = arith.maximumf %269, %270 : vector<8x64xf32>
    %272 = arith.maximumf %268, %271 : vector<8x64xf32>
    %cst_60 = arith.constant 0.000000e+00 : f32
    %273 = vector.broadcast %cst_60 : f32 to vector<8x64xf32>
    %274 = arith.maximumf %272, %273 : vector<8x64xf32>
    %275 = vector.extract_strided_slice %265 {offsets = [16, 0], sizes = [8, 64], strides = [1, 1]} : vector<128x64xf32> to vector<8x64xf32>
    %276 = vector.extract_strided_slice %265 {offsets = [24, 0], sizes = [8, 64], strides = [1, 1]} : vector<128x64xf32> to vector<8x64xf32>
    %277 = arith.maximumf %275, %276 : vector<8x64xf32>
    %278 = vector.extract_strided_slice %265 {offsets = [48, 0], sizes = [8, 64], strides = [1, 1]} : vector<128x64xf32> to vector<8x64xf32>
    %279 = vector.extract_strided_slice %265 {offsets = [56, 0], sizes = [8, 64], strides = [1, 1]} : vector<128x64xf32> to vector<8x64xf32>
    %280 = arith.maximumf %278, %279 : vector<8x64xf32>
    %281 = arith.maximumf %277, %280 : vector<8x64xf32>
    %cst_61 = arith.constant 0.000000e+00 : f32
    %282 = vector.broadcast %cst_61 : f32 to vector<8x64xf32>
    %283 = arith.maximumf %281, %282 : vector<8x64xf32>
    %284 = vector.extract_strided_slice %265 {offsets = [64, 0], sizes = [8, 64], strides = [1, 1]} : vector<128x64xf32> to vector<8x64xf32>
    %285 = vector.extract_strided_slice %265 {offsets = [72, 0], sizes = [8, 64], strides = [1, 1]} : vector<128x64xf32> to vector<8x64xf32>
    %286 = arith.maximumf %284, %285 : vector<8x64xf32>
    %287 = vector.extract_strided_slice %265 {offsets = [96, 0], sizes = [8, 64], strides = [1, 1]} : vector<128x64xf32> to vector<8x64xf32>
    %288 = vector.extract_strided_slice %265 {offsets = [104, 0], sizes = [8, 64], strides = [1, 1]} : vector<128x64xf32> to vector<8x64xf32>
    %289 = arith.maximumf %287, %288 : vector<8x64xf32>
    %290 = arith.maximumf %286, %289 : vector<8x64xf32>
    %cst_62 = arith.constant 0.000000e+00 : f32
    %291 = vector.broadcast %cst_62 : f32 to vector<8x64xf32>
    %292 = arith.maximumf %290, %291 : vector<8x64xf32>
    %293 = vector.extract_strided_slice %265 {offsets = [80, 0], sizes = [8, 64], strides = [1, 1]} : vector<128x64xf32> to vector<8x64xf32>
    %294 = vector.extract_strided_slice %265 {offsets = [88, 0], sizes = [8, 64], strides = [1, 1]} : vector<128x64xf32> to vector<8x64xf32>
    %295 = arith.maximumf %293, %294 : vector<8x64xf32>
    %296 = vector.extract_strided_slice %265 {offsets = [112, 0], sizes = [8, 64], strides = [1, 1]} : vector<128x64xf32> to vector<8x64xf32>
    %297 = vector.extract_strided_slice %265 {offsets = [120, 0], sizes = [8, 64], strides = [1, 1]} : vector<128x64xf32> to vector<8x64xf32>
    %298 = arith.maximumf %296, %297 : vector<8x64xf32>
    %299 = arith.maximumf %295, %298 : vector<8x64xf32>
    %cst_63 = arith.constant 0.000000e+00 : f32
    %300 = vector.broadcast %cst_63 : f32 to vector<8x64xf32>
    %301 = arith.maximumf %299, %300 : vector<8x64xf32>
    %302 = tpu.concatenate %274, %283, %292, %301 in 0 : vector<8x64xf32>, vector<8x64xf32>, vector<8x64xf32>, vector<8x64xf32> -> vector<32x64xf32>
    %c0_64 = arith.constant 0 : index
    %c0_65 = arith.constant 0 : index
    %c0_66 = arith.constant 0 : index
    %303 = vector.load %arg3[%c0_64, %c0_65, %c0_66] : memref<2x64x512xf32, #tpu.memory_space<vmem>>, vector<1x64x512xf32>
    %304 = vector.shape_cast %303 : vector<1x64x512xf32> to vector<64x512xf32>
    %cst_67 = arith.constant dense<0.000000e+00> : vector<32x512xf32>
    %305 = tpu.matmul %302, %304, %cst_67 {dimension_numbers = #tpu.dot_dimension_numbers<[1], [0], [0], [1], [0, 0, 1, 1], [], []>} : vector<32x64xf32>, vector<64x512xf32>, vector<32x512xf32> -> vector<32x512xf32>
    %306 = vector.extract_strided_slice %305 {offsets = [0, 0], sizes = [8, 128], strides = [1, 1]} : vector<32x512xf32> to vector<8x128xf32>
    %307 = vector.extract_strided_slice %305 {offsets = [8, 128], sizes = [8, 128], strides = [1, 1]} : vector<32x512xf32> to vector<8x128xf32>
    %308 = arith.addf %306, %307 : vector<8x128xf32>
    %309 = vector.extract_strided_slice %305 {offsets = [16, 256], sizes = [8, 128], strides = [1, 1]} : vector<32x512xf32> to vector<8x128xf32>
    %310 = arith.addf %308, %309 : vector<8x128xf32>
    %311 = vector.extract_strided_slice %305 {offsets = [24, 384], sizes = [8, 128], strides = [1, 1]} : vector<32x512xf32> to vector<8x128xf32>
    %312 = arith.addf %310, %311 : vector<8x128xf32>
    %313 = vector.broadcast %169 : vector<1x128xf32> to vector<8x128xf32>
    %314 = arith.addf %313, %312 : vector<8x128xf32>
    %cst_68 = arith.constant 0.000000e+00 : f32
    %315 = vector.broadcast %cst_68 : f32 to vector<8x128xf32>
    %316 = arith.maximumf %314, %315 : vector<8x128xf32>
    %c0_69 = arith.constant 0 : index
    %c0_70 = arith.constant 0 : index
    %c0_71 = arith.constant 0 : index
    %317 = vector.load %arg4[%c0_69, %c0_70, %c0_71] : memref<2x128x10xf32, #tpu.memory_space<vmem>>, vector<1x128x10xf32>
    %318 = vector.shape_cast %317 : vector<1x128x10xf32> to vector<128x10xf32>
    %cst_72 = arith.constant dense<0.000000e+00> : vector<8x10xf32>
    %319 = tpu.matmul %316, %318, %cst_72 {dimension_numbers = #tpu.dot_dimension_numbers<[1], [0], [0], [1], [0, 0, 1, 1], [], []>} : vector<8x128xf32>, vector<128x10xf32>, vector<8x10xf32> -> vector<8x10xf32>
    %320 = vector.broadcast %170 : vector<1x10xf32> to vector<8x10xf32>
    %321 = arith.addf %319, %320 : vector<8x10xf32>
    %cst_73 = arith.constant 0.000000e+00 : f32
    %322 = vector.broadcast %cst_73 : f32 to vector<8x10xf32>
    %323 = arith.maximumf %321, %322 : vector<8x10xf32>
    %324 = vector.broadcast %171 : vector<1x10xf32> to vector<8x10xf32>
    %325 = arith.mulf %323, %324 : vector<8x10xf32>
    %cst_74 = arith.constant dense<0.000000e+00> : vector<8xf32>
    %326 = vector.multi_reduction <add>, %325, %cst_74 [1] : vector<8x10xf32> to vector<8xf32>
    %327 = vector.shape_cast %326 : vector<8xf32> to vector<8x1xf32>
    %328 = vector.broadcast %172 : vector<1x1xf32> to vector<8x1xf32>
    %329 = arith.addf %327, %328 : vector<8x1xf32>
    %330 = arith.subf %164, %329 : vector<8x1xf32>
    %c0_75 = arith.constant 0 : index
    %c0_76 = arith.constant 0 : index
    %331 = vector.load %arg6[%c0_75, %c0_76] : memref<8x1xf32, #tpu.memory_space<vmem>>, vector<8x1xf32>
    tpu.vector_store %arg6[%c0_75, %c0_76], %330 {strides = array<i32>} : memref<8x1xf32, #tpu.memory_space<vmem>>, vector<8x1xf32>,
    return
  }
}

</mosaic_0001>

<bundles_post_ra>
// kernel: two_branches_forward.1
= control target key start
LH: loop header
LB: loop body
LE: loop exit
PB: predicated region body
PF: predicated region fallthrough
CT: control target
= control target key end

     0   :  { %vm610_vm0 = vcmask 1040384   ;;  %vm177_vm1 = vcmask 72704   ;;  %vm10040_vm2 = vmmov 1   ;;  %v14149_v2 = vmov 0  ;;  %s14044_s1 = inlined_call_operand.vmem [shape: f32[2,9,32], index: 1, kind: input, shape index: {}]   ;;  %s14045_s0 = inlined_call_operand.vmem [shape: f32[2,1152,9], index: 0, kind: input, shape index: {}]   ;;  %s14046_s5 = inlined_call_operand.vmem [shape: f32[2,6,128], index: 5, kind: input, shape index: {}]   ;;  %s14047_s2 = inlined_call_operand.vmem [shape: f32[2,288,64], index: 2, kind: input, shape index: {}]   ;;  %s14048_s3 = inlined_call_operand.vmem [shape: f32[2,64,512], index: 3, kind: input, shape index: {}]   ;;  %s14049_s4 = inlined_call_operand.vmem [shape: f32[2,128,10], index: 4, kind: input, shape index: {}]   ;;  %s14050_s6 = inlined_call_operand.vmem [shape: f32[8,1], index: 6, kind: output, shape index: {}]  }
   0x1   :  { %v7056_v0 = vld [vmem:[%s14044_s1 + $0x10] sm:$0xff]  ;;  %v7057_v1 = vld [vmem:[%s14044_s1 + $0x18] sm:$0x1]  ;;  %vm10085_vm3 = vmpackc.low %vm610_vm0, %vm10040_vm2  ;;  %vm1580_vm4 = vcmask 261120   ;;  %vm3175_vm5 = vcmask 523264   ;;  %vm10043_vm6 = vmmov 0  }
   0x2   :  { %v14150_v2 = vsel %vm10085_vm3, 4294967295, %v14149_v2  ;;  %v9508_v3 = vpack.c.bf16 %v7057_v1, %v7056_v0  ;;  %v6912_v4 = vld [vmem:[%s14045_s0 + $0x480] sm:$0xff]  ;;  %v6913_v5 = vld [vmem:[%s14045_s0 + $0x488] sm:$0xff]  ;;  %v6914_v6 = vld [vmem:[%s14045_s0 + $0x490] sm:$0xff]  ;;  %vm3460_vm7 = vcmask 80896   ;;  %vm6905_vm8 = vcmask 7168  }
   0x3   :  { %14151 = vst [vmem:[#allocation2_spill] sm:$0xff] %v14150_v2  ;;  %8426 = vmatprep.mubr.msk.f32.mxu0 %vm177_vm1, %v6912_v4  ;;  %v6915_v7 = vld [vmem:[%s14045_s0 + $0x498] sm:$0xff]  ;;  %v6916_v8 = vld [vmem:[%s14045_s0 + $0x4a0] sm:$0xff]  ;;  %v6917_v9 = vld [vmem:[%s14045_s0 + $0x4a8] sm:$0xff] }
   0x4   :  { %9510 = vmatprep.subr.msk.bf16.mxu0 %vm10085_vm3, %v9508_v3  ;;  %v6918_v10 = vld [vmem:[%s14045_s0 + $0x4b0] sm:$0xff]  ;;  %v6919_v11 = vld [vmem:[%s14045_s0 + $0x4b8] sm:$0xff]  ;;  %v6920_v12 = vld [vmem:[%s14045_s0 + $0x4c0] sm:$0xff] }
   0x5   :  { %9513 = vmatpush3.bf16.msk.msra.mxu0 %vm10085_vm3, %v9508_v3  ;;  %v6921_v13 = vld [vmem:[%s14045_s0 + $0x4c8] sm:$0xff]  ;;  %v6922_v14 = vld [vmem:[%s14045_s0 + $0x4d0] sm:$0xff]  ;;  %v6923_v15 = vld [vmem:[%s14045_s0 + $0x4d8] sm:$0xff] }
   0x6   :  { %v6924_v16 = vld [vmem:[%s14045_s0 + $0x4e0] sm:$0xff]  ;;  %v6925_v17 = vld [vmem:[%s14045_s0 + $0x4e8] sm:$0xff]  ;;  %v6926_v18 = vld [vmem:[%s14045_s0 + $0x4f0] sm:$0xff] }
   0x7   :  { %v6927_v19 = vld [vmem:[%s14045_s0 + $0x4f8] sm:$0xff]  ;;  %v6928_v20 = vld [vmem:[%s14045_s0 + $0x500] sm:$0xff]  ;;  %v6929_v21 = vld [vmem:[%s14045_s0 + $0x508] sm:$0xff] }
   0x8   :  { %8427 = vmatmul.mubr.msk.f32.vlgmr.msra.gmra.mrb[0].mxu0 %vm177_vm1, %v6913_v5  ;;  %v6930_v22 = vld [vmem:[%s14045_s0 + $0x510] sm:$0xff]  ;;  %v6931_v23 = vld [vmem:[%s14045_s0 + $0x518] sm:$0xff]  ;;  %v6932_v24 = vld [vmem:[%s14045_s0 + $0x520] sm:$0xff] }
   0x9   :  { %8429 = vmatprep.mubr.msk.f32.mxu0 %vm177_vm1, %v6914_v6  ;;  %v6933_v25 = vld [vmem:[%s14045_s0 + $0x528] sm:$0xff]  ;;  %v6934_v26 = vld [vmem:[%s14045_s0 + $0x530] sm:$0xff]  ;;  %v6935_v27 = vld [vmem:[%s14045_s0 + $0x538] sm:$0xff] }
   0xa   :  { %v6936_v28 = vld [vmem:[%s14045_s0 + $0x540] sm:$0xff]  ;;  %v6937_v29 = vld [vmem:[%s14045_s0 + $0x548] sm:$0xff]  ;;  %v6938_v30 = vld [vmem:[%s14045_s0 + $0x550] sm:$0xff] }
   0xb   :  { %v6939_v31 = vld [vmem:[%s14045_s0 + $0x558] sm:$0xff]  ;;  %v6940_v32 = vld [vmem:[%s14045_s0 + $0x560] sm:$0xff]  ;;  %v6941_v33 = vld [vmem:[%s14045_s0 + $0x568] sm:$0xff] }
   0xc   :  { %8430 = vmatmul.mubr.msk.f32.gmra.mrb[2].mxu0 %vm177_vm1, %v6915_v7  ;;  %v6942_v34 = vld [vmem:[%s14045_s0 + $0x570] sm:$0xff]  ;;  %v6943_v35 = vld [vmem:[%s14045_s0 + $0x578] sm:$0xff]  ;;  %v6944_v36 = vld [vmem:[%s14045_s0 + $0x580] sm:$0xff] }
   0xd   :  { %8432 = vmatprep.mubr.msk.f32.mxu0 %vm177_vm1, %v6916_v8  ;;  %v6945_v37 = vld [vmem:[%s14045_s0 + $0x588] sm:$0xff]  ;;  %v6946_v38 = vld [vmem:[%s14045_s0 + $0x590] sm:$0xff]  ;;  %v6947_v39 = vld [vmem:[%s14045_s0 + $0x598] sm:$0xff] }
   0xe   :  { %v6948_v40 = vld [vmem:[%s14045_s0 + $0x5a0] sm:$0xff]  ;;  %v6949_v41 = vld [vmem:[%s14045_s0 + $0x5a8] sm:$0xff]  ;;  %v6950_v42 = vld [vmem:[%s14045_s0 + $0x5b0] sm:$0xff] }
   0xf   :  { %v6951_v43 = vld [vmem:[%s14045_s0 + $0x5b8] sm:$0xff]  ;;  %v6952_v44 = vld [vmem:[%s14045_s0 + $0x5c0] sm:$0xff]  ;;  %v6953_v45 = vld [vmem:[%s14045_s0 + $0x5c8] sm:$0xff] }
  0x10   :  { %8433 = vmatmul.mubr.msk.f32.gmra.mrb[4].mxu0 %vm177_vm1, %v6917_v9  ;;  %v6954_v46 = vld [vmem:[%s14045_s0 + $0x5d0] sm:$0xff]  ;;  %v6955_v47 = vld [vmem:[%s14045_s0 + $0x5d8] sm:$0xff]  ;;  %v6956_v48 = vld [vmem:[%s14045_s0 + $0x5e0] sm:$0xff] }
  0x11   :  { %8435 = vmatprep.mubr.msk.f32.mxu0 %vm177_vm1, %v6918_v10  ;;  %v6957_v49 = vld [vmem:[%s14045_s0 + $0x5e8] sm:$0xff]  ;;  %v6958_v50 = vld [vmem:[%s14045_s0 + $0x5f0] sm:$0xff]  ;;  %v6959_v51 = vld [vmem:[%s14045_s0 + $0x5f8] sm:$0xff] }
  0x12   :  { %v6960_v52 = vld [vmem:[%s14045_s0 + $0x600] sm:$0xff]  ;;  %v6961_v53 = vld [vmem:[%s14045_s0 + $0x608] sm:$0xff]  ;;  %v6962_v54 = vld [vmem:[%s14045_s0 + $0x610] sm:$0xff] }
  0x13   :  { %v6963_v55 = vld [vmem:[%s14045_s0 + $0x618] sm:$0xff]  ;;  %v6964_v56 = vld [vmem:[%s14045_s0 + $0x620] sm:$0xff]  ;;  %v6965_v57 = vld [vmem:[%s14045_s0 + $0x628] sm:$0xff] }
  0x14   :  { %8436 = vmatmul.mubr.msk.f32.gmra.mrb[6].mxu0 %vm177_vm1, %v6919_v11  ;;  %v6966_v58 = vld [vmem:[%s14045_s0 + $0x630] sm:$0xff]  ;;  %v6967_v59 = vld [vmem:[%s14045_s0 + $0x638] sm:$0xff]  ;;  %v6968_v60 = vld [vmem:[%s14045_s0 + $0x640] sm:$0xff] }
  0x15   :  { %8438 = vmatprep.mubr.msk.f32.mxu0 %vm177_vm1, %v6920_v12  ;;  %v6969_v61 = vld [vmem:[%s14045_s0 + $0x648] sm:$0xff]  ;;  %v6970_v62 = vld [vmem:[%s14045_s0 + $0x650] sm:$0xff]  ;;  %v6971_v63 = vld [vmem:[%s14045_s0 + $0x658] sm:$0xff] }
  0x16   :  { %v6972_v0 = vld [vmem:[%s14045_s0 + $0x660] sm:$0xff]  ;;  %v6973_v1 = vld [vmem:[%s14045_s0 + $0x668] sm:$0xff]  ;;  %v6974_v3 = vld [vmem:[%s14045_s0 + $0x670] sm:$0xff] }
  0x17   :  { %v6975_v4 = vld [vmem:[%s14045_s0 + $0x678] sm:$0xff]  ;;  %v6976_v5 = vld [vmem:[%s14045_s0 + $0x680] sm:$0xff]  ;;  %v6977_v6 = vld [vmem:[%s14045_s0 + $0x688] sm:$0xff] }
  0x18   :  { %8439 = vmatmul.mubr.msk.f32.gmra.mrb[8].mxu0 %vm177_vm1, %v6921_v13  ;;  %v6978_v7 = vld [vmem:[%s14045_s0 + $0x690] sm:$0xff]  ;;  %v6979_v8 = vld [vmem:[%s14045_s0 + $0x698] sm:$0xff]  ;;  %v6980_v9 = vld [vmem:[%s14045_s0 + $0x6a0] sm:$0xff] }
  0x19   :  { %8441 = vmatprep.mubr.msk.f32.mxu0 %vm177_vm1, %v6922_v14  ;;  %v6981_v10 = vld [vmem:[%s14045_s0 + $0x6a8] sm:$0xff]  ;;  %v6982_v11 = vld [vmem:[%s14045_s0 + $0x6b0] sm:$0xff]  ;;  %v6983_v12 = vld [vmem:[%s14045_s0 + $0x6b8] sm:$0xff] }
  0x1a   :  { %v6984_v13 = vld [vmem:[%s14045_s0 + $0x6c0] sm:$0xff]  ;;  %v6985_v14 = vld [vmem:[%s14045_s0 + $0x6c8] sm:$0xff] }
  0x1c   :  { %8442 = vmatmul.mubr.msk.f32.gmra.mrb[10].mxu0 %vm177_vm1, %v6923_v15  ;;  %v6986_v15 = vld [vmem:[%s14045_s0 + $0x6d0] sm:$0xff] }
  0x1d   :  { %8444 = vmatprep.mubr.msk.f32.mxu0 %vm177_vm1, %v6924_v16  ;;  %v6987_v16 = vld [vmem:[%s14045_s0 + $0x6d8] sm:$0xff] }
  0x20   :  { %8445 = vmatmul.mubr.msk.f32.gmra.mrb[12].mxu0 %vm177_vm1, %v6925_v17  ;;  %v6988_v17 = vld [vmem:[%s14045_s0 + $0x6e0] sm:$0xff] }
  0x21   :  { %8447 = vmatprep.mubr.msk.f32.mxu0 %vm177_vm1, %v6926_v18  ;;  %v6989_v18 = vld [vmem:[%s14045_s0 + $0x6e8] sm:$0xff] }
  0x24   :  { %8448 = vmatmul.mubr.msk.f32.gmra.mrb[14].mxu0 %vm177_vm1, %v6927_v19  ;;  %v6990_v19 = vld [vmem:[%s14045_s0 + $0x6f0] sm:$0xff] }
  0x25   :  { %8450 = vmatprep.mubr.msk.f32.mxu0 %vm177_vm1, %v6928_v20  ;;  %v6991_v20 = vld [vmem:[%s14045_s0 + $0x6f8] sm:$0xff] }
  0x28   :  { %8451 = vmatmul.mubr.msk.f32.gmra.mrb[16].mxu0 %vm177_vm1, %v6929_v21  ;;  %v6992_v21 = vld [vmem:[%s14045_s0 + $0x700] sm:$0xff] }
  0x29   :  { %8453 = vmatprep.mubr.msk.f32.mxu0 %vm177_vm1, %v6930_v22  ;;  %v6993_v22 = vld [vmem:[%s14045_s0 + $0x708] sm:$0xff] }
  0x2c   :  { %8454 = vmatmul.mubr.msk.f32.gmra.mrb[18].mxu0 %vm177_vm1, %v6931_v23  ;;  %v6994_v23 = vld [vmem:[%s14045_s0 + $0x710] sm:$0xff] }
  0x2d   :  { %8456 = vmatprep.mubr.msk.f32.mxu0 %vm177_vm1, %v6932_v24  ;;  %v6995_v24 = vld [vmem:[%s14045_s0 + $0x718] sm:$0xff] }
  0x30   :  { %8457 = vmatmul.mubr.msk.f32.gmra.mrb[20].mxu0 %vm177_vm1, %v6933_v25  ;;  %v6996_v25 = vld [vmem:[%s14045_s0 + $0x720] sm:$0xff] }
  0x31   :  { %8459 = vmatprep.mubr.msk.f32.mxu0 %vm177_vm1, %v6934_v26  ;;  %v6997_v26 = vld [vmem:[%s14045_s0 + $0x728] sm:$0xff] }
  0x34   :  { %8460 = vmatmul.mubr.msk.f32.gmra.mrb[22].mxu0 %vm177_vm1, %v6935_v27  ;;  %v6998_v27 = vld [vmem:[%s14045_s0 + $0x730] sm:$0xff] }
  0x35   :  { %8462 = vmatprep.mubr.msk.f32.mxu0 %vm177_vm1, %v6936_v28  ;;  %v6999_v28 = vld [vmem:[%s14045_s0 + $0x738] sm:$0xff] }
  0x38   :  { %8463 = vmatmul.mubr.msk.f32.gmra.mrb[24].mxu0 %vm177_vm1, %v6937_v29  ;;  %v7000_v29 = vld [vmem:[%s14045_s0 + $0x740] sm:$0xff] }
  0x39   :  { %8465 = vmatprep.mubr.msk.f32.mxu0 %vm177_vm1, %v6938_v30  ;;  %v7001_v30 = vld [vmem:[%s14045_s0 + $0x748] sm:$0xff] }
  0x3c   :  { %8466 = vmatmul.mubr.msk.f32.gmra.mrb[26].mxu0 %vm177_vm1, %v6939_v31  ;;  %v7002_v31 = vld [vmem:[%s14045_s0 + $0x750] sm:$0xff] }
  0x3d   :  { %8468 = vmatprep.mubr.msk.f32.mxu0 %vm177_vm1, %v6940_v32  ;;  %v7003_v32 = vld [vmem:[%s14045_s0 + $0x758] sm:$0xff] }
  0x40   :  { %8469 = vmatmul.mubr.msk.f32.gmra.mrb[28].mxu0 %vm177_vm1, %v6941_v33  ;;  %v7004_v33 = vld [vmem:[%s14045_s0 + $0x760] sm:$0xff] }
  0x41   :  { %8471 = vmatprep.mubr.msk.f32.mxu0 %vm177_vm1, %v6942_v34  ;;  %v7005_v34 = vld [vmem:[%s14045_s0 + $0x768] sm:$0xff] }
  0x44   :  { %8472 = vmatmul.mubr.msk.f32.gmra.mrb[30].mxu0 %vm177_vm1, %v6943_v35  ;;  %v7006_v35 = vld [vmem:[%s14045_s0 + $0x770] sm:$0xff] }
  0x45   :  { %8474 = vmatprep.mubr.msk.f32.mxu0 %vm177_vm1, %v6944_v36  ;;  %v7007_v36 = vld [vmem:[%s14045_s0 + $0x778] sm:$0xff] }
  0x48   :  { %8475 = vmatmul.mubr.msk.f32.gmra.mrb[32].mxu0 %vm177_vm1, %v6945_v37  ;;  %v7008_v37 = vld [vmem:[%s14045_s0 + $0x780] sm:$0xff] }
  0x49   :  { %8477 = vmatprep.mubr.msk.f32.mxu0 %vm177_vm1, %v6946_v38  ;;  %v7009_v38 = vld [vmem:[%s14045_s0 + $0x788] sm:$0xff] }
  0x4c   :  { %8478 = vmatmul.mubr.msk.f32.gmra.mrb[34].mxu0 %vm177_vm1, %v6947_v39  ;;  %v7010_v39 = vld [vmem:[%s14045_s0 + $0x790] sm:$0xff] }
  0x4d   :  { %8480 = vmatprep.mubr.msk.f32.mxu0 %vm177_vm1, %v6948_v40  ;;  %v7011_v40 = vld [vmem:[%s14045_s0 + $0x798] sm:$0xff] }
  0x50   :  { %8481 = vmatmul.mubr.msk.f32.gmra.mrb[36].mxu0 %vm177_vm1, %v6949_v41  ;;  %v7012_v41 = vld [vmem:[%s14045_s0 + $0x7a0] sm:$0xff] }
  0x51   :  { %8483 = vmatprep.mubr.msk.f32.mxu0 %vm177_vm1, %v6950_v42  ;;  %v7013_v42 = vld [vmem:[%s14045_s0 + $0x7a8] sm:$0xff] }
  0x54   :  { %8484 = vmatmul.mubr.msk.f32.gmra.mrb[38].mxu0 %vm177_vm1, %v6951_v43  ;;  %v7014_v43 = vld [vmem:[%s14045_s0 + $0x7b0] sm:$0xff] }
  0x55   :  { %8486 = vmatprep.mubr.msk.f32.mxu0 %vm177_vm1, %v6952_v44  ;;  %v7015_v44 = vld [vmem:[%s14045_s0 + $0x7b8] sm:$0xff] }
  0x58   :  { %8487 = vmatmul.mubr.msk.f32.gmra.mrb[40].mxu0 %vm177_vm1, %v6953_v45  ;;  %v7016_v45 = vld [vmem:[%s14045_s0 + $0x7c0] sm:$0xff] }
  0x59   :  { %8489 = vmatprep.mubr.msk.f32.mxu0 %vm177_vm1, %v6954_v46  ;;  %v7017_v46 = vld [vmem:[%s14045_s0 + $0x7c8] sm:$0xff] }
  0x5c   :  { %8490 = vmatmul.mubr.msk.f32.gmra.mrb[42].mxu0 %vm177_vm1, %v6955_v47  ;;  %v7018_v47 = vld [vmem:[%s14045_s0 + $0x7d0] sm:$0xff] }
  0x5d   :  { %8492 = vmatprep.mubr.msk.f32.mxu0 %vm177_vm1, %v6956_v48  ;;  %v7019_v48 = vld [vmem:[%s14045_s0 + $0x7d8] sm:$0xff] }
  0x60   :  { %8493 = vmatmul.mubr.msk.f32.gmra.mrb[44].mxu0 %vm177_vm1, %v6957_v49  ;;  %v7020_v49 = vld [vmem:[%s14045_s0 + $0x7e0] sm:$0xff] }
  0x61   :  { %8495 = vmatprep.mubr.msk.f32.mxu0 %vm177_vm1, %v6958_v50 }
  0x64   :  { %8496 = vmatmul.mubr.msk.f32.gmra.mrb[46].mxu0 %vm177_vm1, %v6959_v51 }
  0x65   :  { %8498 = vmatprep.mubr.msk.f32.mxu0 %vm177_vm1, %v6960_v52  ;;  %v7021_v52 = vld [vmem:[%s14045_s0 + $0x7e8] sm:$0xff] }
  0x68   :  { %8499 = vmatmul.mubr.msk.f32.gmra.mrb[48].mxu0 %vm177_vm1, %v6961_v53  ;;  %v7022_v53 = vld [vmem:[%s14045_s0 + $0x7f0] sm:$0xff] }
  0x69   :  { %8501 = vmatprep.mubr.msk.f32.mxu0 %vm177_vm1, %v6962_v54 }
  0x6c   :  { %8502 = vmatmul.mubr.msk.f32.gmra.mrb[50].mxu0 %vm177_vm1, %v6963_v55 }
  0x6d   :  { %8504 = vmatprep.mubr.msk.f32.mxu0 %vm177_vm1, %v6964_v56  ;;  %v7023_v56 = vld [vmem:[%s14045_s0 + $0x7f8] sm:$0xff] }
  0x70   :  { %8505 = vmatmul.mubr.msk.f32.gmra.mrb[52].mxu0 %vm177_vm1, %v6965_v57  ;;  %v7024_v57 = vld [vmem:[%s14045_s0 + $0x800] sm:$0xff] }
  0x71   :  { %8507 = vmatprep.mubr.msk.f32.mxu0 %vm177_vm1, %v6966_v58 }
  0x74   :  { %8508 = vmatmul.mubr.msk.f32.gmra.mrb[54].mxu0 %vm177_vm1, %v6967_v59 }
  0x75   :  { %8510 = vmatprep.mubr.msk.f32.mxu0 %vm177_vm1, %v6968_v60  ;;  %v7025_v60 = vld [vmem:[%s14045_s0 + $0x808] sm:$0xff] }
  0x78   :  { %8511 = vmatmul.mubr.msk.f32.gmra.mrb[56].mxu0 %vm177_vm1, %v6969_v61  ;;  %v7026_v61 = vld [vmem:[%s14045_s0 + $0x810] sm:$0xff] }
  0x79   :  { %8513 = vmatprep.mubr.msk.f32.mxu0 %vm177_vm1, %v6970_v62 }
  0x7c   :  { %8514 = vmatmul.mubr.msk.f32.gmra.mrb[58].mxu0 %vm177_vm1, %v6971_v63 }
  0x7d   :  { %8516 = vmatprep.mubr.msk.f32.mxu0 %vm177_vm1, %v6972_v0  ;;  %v7027_v0 = vld [vmem:[%s14045_s0 + $0x818] sm:$0xff] }
  0x80   :  { %8517 = vmatmul.mubr.msk.f32.gmra.mrb[60].mxu0 %vm177_vm1, %v6973_v1  ;;  %v7028_v1 = vld [vmem:[%s14045_s0 + $0x820] sm:$0xff] }
  0x81   :  { %8519 = vmatprep.mubr.msk.f32.mxu0 %vm177_vm1, %v6974_v3 }
  0x84   :  { %8520 = vmatmul.mubr.msk.f32.gmra.mrb[62].mxu0 %vm177_vm1, %v6975_v4 }
  0x85   :  { %8522 = vmatprep.mubr.msk.f32.mxu0 %vm177_vm1, %v6976_v5  ;;  %v7029_v5 = vld [vmem:[%s14045_s0 + $0x828] sm:$0xff] }
  0x88   :  { %8523 = vmatmul.mubr.msk.f32.gmra.mrb[64].mxu0 %vm177_vm1, %v6977_v6  ;;  %v7030_v6 = vld [vmem:[%s14045_s0 + $0x830] sm:$0xff] }
  0x89   :  { %8525 = vmatprep.mubr.msk.f32.mxu0 %vm177_vm1, %v6978_v7 }
  0x8c   :  { %8526 = vmatmul.mubr.msk.f32.gmra.mrb[66].mxu0 %vm177_vm1, %v6979_v8 }
  0x8d   :  { %8528 = vmatprep.mubr.msk.f32.mxu0 %vm177_vm1, %v6980_v9  ;;  %v7031_v9 = vld [vmem:[%s14045_s0 + $0x838] sm:$0xff] }
  0x90   :  { %8529 = vmatmul.mubr.msk.f32.gmra.mrb[68].mxu0 %vm177_vm1, %v6981_v10  ;;  %v7032_v10 = vld [vmem:[%s14045_s0 + $0x840] sm:$0xff] }
  0x91   :  { %8531 = vmatprep.mubr.msk.f32.mxu0 %vm177_vm1, %v6982_v11 }
  0x94   :  { %8532 = vmatmul.mubr.msk.f32.gmra.mrb[70].mxu0 %vm177_vm1, %v6983_v12 }
  0x95   :  { %8534 = vmatprep.mubr.msk.f32.mxu0 %vm177_vm1, %v6984_v13  ;;  %v7033_v13 = vld [vmem:[%s14045_s0 + $0x848] sm:$0xff] }
  0x98   :  { %8535 = vmatmul.mubr.msk.f32.gmra.mrb[72].mxu0 %vm177_vm1, %v6985_v14  ;;  %v7034_v14 = vld [vmem:[%s14045_s0 + $0x850] sm:$0xff] }
  0x99   :  { %8537 = vmatprep.mubr.msk.f32.mxu0 %vm177_vm1, %v6986_v15 }
  0x9c   :  { %8538 = vmatmul.mubr.msk.f32.gmra.mrb[74].mxu0 %vm177_vm1, %v6987_v16 }
  0x9d   :  { %8540 = vmatprep.mubr.msk.f32.mxu0 %vm177_vm1, %v6988_v17  ;;  %v7035_v17 = vld [vmem:[%s14045_s0 + $0x858] sm:$0xff] }
  0xa0   :  { %8541 = vmatmul.mubr.msk.f32.gmra.mrb[76].mxu0 %vm177_vm1, %v6989_v18  ;;  %v7036_v18 = vld [vmem:[%s14045_s0 + $0x860] sm:$0xff] }
  0xa1   :  { %8543 = vmatprep.mubr.msk.f32.mxu0 %vm177_vm1, %v6990_v19 }
  0xa4   :  { %8544 = vmatmul.mubr.msk.f32.gmra.mrb[78].mxu0 %vm177_vm1, %v6991_v20 }
  0xa5   :  { %8546 = vmatprep.mubr.msk.f32.mxu0 %vm177_vm1, %v6992_v21  ;;  %v7037_v21 = vld [vmem:[%s14045_s0 + $0x868] sm:$0xff] }
  0xa8   :  { %8547 = vmatmul.mubr.msk.f32.gmra.mrb[80].mxu0 %vm177_vm1, %v6993_v22  ;;  %v7038_v22 = vld [vmem:[%s14045_s0 + $0x870] sm:$0xff] }
  0xa9   :  { %8549 = vmatprep.mubr.msk.f32.mxu0 %vm177_vm1, %v6994_v23 }
  0xac   :  { %8550 = vmatmul.mubr.msk.f32.gmra.mrb[82].mxu0 %vm177_vm1, %v6995_v24 }
  0xad   :  { %8552 = vmatprep.mubr.msk.f32.mxu0 %vm177_vm1, %v6996_v25  ;;  %v7039_v25 = vld [vmem:[%s14045_s0 + $0x878] sm:$0xff] }
  0xb0   :  { %8553 = vmatmul.mubr.msk.f32.gmra.mrb[84].mxu0 %vm177_vm1, %v6997_v26  ;;  %v7040_v26 = vld [vmem:[%s14045_s0 + $0x880] sm:$0xff] }
  0xb1   :  { %8555 = vmatprep.mubr.msk.f32.mxu0 %vm177_vm1, %v6998_v27 }
  0xb4   :  { %8556 = vmatmul.mubr.msk.f32.gmra.mrb[86].mxu0 %vm177_vm1, %v6999_v28 }
  0xb5   :  { %8558 = vmatprep.mubr.msk.f32.mxu0 %vm177_vm1, %v7000_v29  ;;  %v7041_v29 = vld [vmem:[%s14045_s0 + $0x888] sm:$0xff] }
  0xb8   :  { %8559 = vmatmul.mubr.msk.f32.gmra.mrb[88].mxu0 %vm177_vm1, %v7001_v30  ;;  %v7042_v30 = vld [vmem:[%s14045_s0 + $0x890] sm:$0xff] }
  0xb9   :  { %8561 = vmatprep.mubr.msk.f32.mxu0 %vm177_vm1, %v7002_v31 }
  0xbc   :  { %8562 = vmatmul.mubr.msk.f32.gmra.mrb[90].mxu0 %vm177_vm1, %v7003_v32 }
  0xbd   :  { %8564 = vmatprep.mubr.msk.f32.mxu0 %vm177_vm1, %v7004_v33  ;;  %v7043_v33 = vld [vmem:[%s14045_s0 + $0x898] sm:$0xff] }
  0xc0   :  { %8565 = vmatmul.mubr.msk.f32.gmra.mrb[92].mxu0 %vm177_vm1, %v7005_v34  ;;  %v7044_v34 = vld [vmem:[%s14045_s0 + $0x8a0] sm:$0xff] }
  0xc1   :  { %8567 = vmatprep.mubr.msk.f32.mxu0 %vm177_vm1, %v7006_v35 }
  0xc4   :  { %8568 = vmatmul.mubr.msk.f32.gmra.mrb[94].mxu0 %vm177_vm1, %v7007_v36 }
  0xc5   :  { %8570 = vmatprep.mubr.msk.f32.mxu0 %vm177_vm1, %v7008_v37  ;;  %v7045_v37 = vld [vmem:[%s14045_s0 + $0x8a8] sm:$0xff] }
  0xc8   :  { %8571 = vmatmul.mubr.msk.f32.gmra.mrb[96].mxu0 %vm177_vm1, %v7009_v38  ;;  %v7046_v38 = vld [vmem:[%s14045_s0 + $0x8b0] sm:$0xff] }
  0xc9   :  { %8573 = vmatprep.mubr.msk.f32.mxu0 %vm177_vm1, %v7010_v39 }
  0xcc   :  { %8574 = vmatmul.mubr.msk.f32.gmra.mrb[98].mxu0 %vm177_vm1, %v7011_v40 }
  0xcd   :  { %8576 = vmatprep.mubr.msk.f32.mxu0 %vm177_vm1, %v7012_v41  ;;  %v7047_v41 = vld [vmem:[%s14045_s0 + $0x8b8] sm:$0xff] }
  0xd0   :  { %8577 = vmatmul.mubr.msk.f32.gmra.mrb[100].mxu0 %vm177_vm1, %v7013_v42  ;;  %v7048_v42 = vld [vmem:[%s14045_s0 + $0x8c0] sm:$0xff] }
  0xd1   :  { %8579 = vmatprep.mubr.msk.f32.mxu0 %vm177_vm1, %v7014_v43 }
  0xd4   :  { %8580 = vmatmul.mubr.msk.f32.gmra.mrb[102].mxu0 %vm177_vm1, %v7015_v44  ;;  %v173_v44 = vlaneseq }
  0xd5   :  { %8582 = vmatprep.mubr.msk.f32.mxu0 %vm177_vm1, %v7016_v45 }
  0xd8   :  { %8583 = vmatmul.mubr.msk.f32.gmra.mrb[104].mxu0 %vm177_vm1, %v7017_v46  ;;  %v7049_v46 = vld [vmem:[%s14045_s0 + $0x8c8] sm:$0xff] }
  0xd9   :  { %8585 = vmatprep.mubr.msk.f32.mxu0 %vm177_vm1, %v7018_v47  ;;  %v7050_v47 = vld [vmem:[%s14045_s0 + $0x8d0] sm:$0xff] }
  0xdb   :  { %v10527_v50 = vpop.f32.mrb[0].mxu0 }
  0xdc   :  { %v10529_v51 = vpop.f32.mrb[1].mxu0  ;;  %8586 = vmatmul.mubr.msk.f32.gmra.mrb[106].mxu0 %vm177_vm1, %v7019_v48 }
  0xdd   :  { %8588 = vmatprep.mubr.msk.f32.mxu0 %vm177_vm1, %v7020_v49  ;;  %v10709_v49 = vshrl.u32 %v173_v44, 7 }
  0xdf   :  { %v10539_v54 = vpop.f32.mrb[2].mxu0  ;;  %14152 = vst [vmem:[#allocation3_spill] sm:$0xff] %v10709_v49 }
  0xe0   :  { %v10541_v55 = vpop.f32.mrb[3].mxu0  ;;  %8589 = vmatmul.mubr.msk.f32.gmra.mrb[108].mxu0 %vm177_vm1, %v7021_v52 }
  0xe1   :  { %8591 = vmatprep.mubr.msk.f32.mxu0 %vm177_vm1, %v7022_v53  ;;  %v7051_v53 = vld [vmem:[%s14045_s0 + $0x8d8] sm:$0xff] }
  0xe3   :  { %v10551_v58 = vpop.f32.mrb[4].mxu0 }
  0xe4   :  { %v10553_v59 = vpop.f32.mrb[5].mxu0  ;;  %8592 = vmatmul.mubr.msk.f32.gmra.mrb[110].mxu0 %vm177_vm1, %v7023_v56  ;;  %v7052_v56 = vld [vmem:[%s14045_s0 + $0x8e0] sm:$0xff] }
  0xe5   :  { %8594 = vmatprep.mubr.msk.f32.mxu0 %vm177_vm1, %v7024_v57 }
  0xe7   :  { %v10563_v62 = vpop.f32.mrb[6].mxu0 }
  0xe8   :  { %v10565_v63 = vpop.f32.mrb[7].mxu0  ;;  %8595 = vmatmul.mubr.msk.f32.gmra.mrb[112].mxu0 %vm177_vm1, %v7025_v60  ;;  %v14051_v60 = vsub.s32 0, %v10709_v49 }
  0xe9   :  { %8597 = vmatprep.mubr.msk.f32.mxu0 %vm177_vm1, %v7026_v61 }
  0xeb   :  { %v10575_v3 = vpop.f32.mrb[8].mxu0 }
  0xec   :  { %v10577_v4 = vpop.f32.mrb[9].mxu0  ;;  %8598 = vmatmul.mubr.msk.f32.gmra.mrb[114].mxu0 %vm177_vm1, %v7027_v0  ;;  %v6911_v0 = vld [vmem:[%s14046_s5 + $0x8] sm:$0x3f] }
  0xed   :  { %8600 = vmatprep.mubr.msk.f32.mxu0 %vm177_vm1, %v7028_v1  ;;  %v7053_v1 = vld [vmem:[%s14045_s0 + $0x8e8] sm:$0xff] }
  0xef   :  { %v10587_v7 = vpop.f32.mrb[10].mxu0 }
  0xf0   :  { %v10589_v8 = vpop.f32.mrb[11].mxu0  ;;  %8601 = vmatmul.mubr.msk.f32.gmra.mrb[116].mxu0 %vm177_vm1, %v7029_v5  ;;  %v7054_v5 = vld [vmem:[%s14045_s0 + $0x8f0] sm:$0xff] }
  0xf1   :  { %8603 = vmatprep.mubr.msk.f32.mxu0 %vm177_vm1, %v7030_v6 }
  0xf3   :  { %v10599_v11 = vpop.f32.mrb[12].mxu0 }
  0xf4   :  { %v10601_v12 = vpop.f32.mrb[13].mxu0  ;;  %8604 = vmatmul.mubr.msk.f32.gmra.mrb[118].mxu0 %vm177_vm1, %v7031_v9  ;;  %v10741_v9 = vrot.slane %v6911_v0, %v14051_v60 }
  0xf5   :  { %8606 = vmatprep.mubr.msk.f32.mxu0 %vm177_vm1, %v7032_v10 }
  0xf7   :  { %v10611_v15 = vpop.f32.mrb[14].mxu0 }
  0xf8   :  { %v10613_v16 = vpop.f32.mrb[15].mxu0  ;;  %8607 = vmatmul.mubr.msk.f32.gmra.mrb[120].mxu0 %vm177_vm1, %v7033_v13  ;;  %v7055_v13 = vld [vmem:[%s14045_s0 + $0x8f8] sm:$0xff] }
  0xf9   :  { %8609 = vmatprep.mubr.msk.f32.mxu0 %vm177_vm1, %v7034_v14 }
  0xfb   :  { %v10623_v19 = vpop.f32.mrb[16].mxu0 }
  0xfc   :  { %v10625_v20 = vpop.f32.mrb[17].mxu0  ;;  %8610 = vmatmul.mubr.msk.f32.gmra.mrb[122].mxu0 %vm177_vm1, %v7035_v17  ;;  %v10752_v17 = vadd.f32 %v10527_v50, %v10741_v9 }
  0xfd   :  { %8612 = vmatprep.mubr.msk.f32.mxu0 %vm177_vm1, %v7036_v18 }
  0xff   :  { %v10635_v23 = vpop.f32.mrb[18].mxu0 }
 0x100   :  { %v10637_v24 = vpop.f32.mrb[19].mxu0  ;;  %8613 = vmatmul.mubr.msk.f32.gmra.mrb[124].mxu0 %vm177_vm1, %v7037_v21 }
 0x101   :  { %8615 = vmatprep.mubr.msk.f32.mxu0 %vm177_vm1, %v7038_v22  ;;  %v10760_v22 = vadd.f32 %v10529_v51, %v10741_v9  ;;  %v10778_v51 = vadd.f32 %v10541_v55, %v10741_v9  ;;  %v10796_v55 = vadd.f32 %v10553_v59, %v10741_v9  ;;  %v10814_v59 = vadd.f32 %v10565_v63, %v10741_v9 }
 0x102   :  { %v10832_v63 = vadd.f32 %v10577_v4, %v10741_v9 }
 0x103   :  { %v10647_v27 = vpop.f32.mrb[20].mxu0 }
 0x104   :  { %v10649_v28 = vpop.f32.mrb[21].mxu0  ;;  %8616 = vmatmul.mubr.msk.f32.gmra.mrb[126].mxu0 %vm177_vm1, %v7039_v25 }
 0x105   :  { %8618 = vmatprep.mubr.msk.f32.mxu0 %vm177_vm1, %v7040_v26 }
 0x107   :  { %v10659_v31 = vpop.f32.mrb[22].mxu0 }
 0x108   :  { %v10661_v32 = vpop.f32.mrb[23].mxu0  ;;  %8619 = vmatmul.mubr.msk.f32.gmra.mrb[128].mxu0 %vm177_vm1, %v7041_v29 }
 0x109   :  { %8621 = vmatprep.mubr.msk.f32.mxu0 %vm177_vm1, %v7042_v30  ;;  %v10771_v30 = vadd.f32 %v10539_v54, %v10741_v9  ;;  %v10789_v54 = vadd.f32 %v10551_v58, %v10741_v9  ;;  %v10807_v58 = vadd.f32 %v10563_v62, %v10741_v9  ;;  %v10825_v62 = vadd.f32 %v10575_v3, %v10741_v9  ;;  %v7208_v3 = vld [vmem:[%s14047_s2 + $0x148] sm:$0xff] }
 0x10b   :  { %v10671_v35 = vpop.f32.mrb[24].mxu0 }
 0x10c   :  { %v10673_v36 = vpop.f32.mrb[25].mxu0  ;;  %8622 = vmatmul.mubr.msk.f32.gmra.mrb[130].mxu0 %vm177_vm1, %v7043_v33 }
 0x10d   :  { %8624 = vmatprep.mubr.msk.f32.mxu0 %vm177_vm1, %v7044_v34 }
 0x10f   :  { %v10683_v39 = vpop.f32.mrb[26].mxu0 }
 0x110   :  { %v10685_v40 = vpop.f32.mrb[27].mxu0  ;;  %8625 = vmatmul.mubr.msk.f32.gmra.mrb[132].mxu0 %vm177_vm1, %v7045_v37 }
 0x111   :  { %8627 = vmatprep.mubr.msk.f32.mxu0 %vm177_vm1, %v7046_v38 }
 0x113   :  { %v10695_v43 = vpop.f32.mrb[28].mxu0 }
 0x114   :  { %v10697_v45 = vpop.f32.mrb[29].mxu0  ;;  %8628 = vmatmul.mubr.msk.f32.gmra.mrb[134].mxu0 %vm177_vm1, %v7047_v41 }
 0x115   :  { %8630 = vmatprep.mubr.msk.f32.mxu0 %vm177_vm1, %v7048_v42 }
 0x117   :  { %v10707_v48 = vpop.f32.mrb[30].mxu0 }
 0x118   :  { %v10711_v52 = vpop.f32.mrb[31].mxu0  ;;  %8631 = vmatmul.mubr.msk.f32.gmra.mrb[136].mxu0 %vm177_vm1, %v7049_v46 }
 0x119   :  { %8633 = vmatprep.mubr.msk.f32.mxu0 %vm177_vm1, %v7050_v47 }
 0x11b   :  { %v10721_v57 = vpop.f32.mrb[32].mxu0 }
 0x11c   :  { %v10724_v61 = vpop.f32.mrb[33].mxu0  ;;  %8634 = vmatmul.mubr.msk.f32.gmra.mrb[138].mxu0 %vm177_vm1, %v7051_v53  ;;  %v10880_v53 = vadd.f32 %v10601_v12, %v10741_v9 }
 0x11d   :  { %8636 = vmatprep.mubr.msk.f32.mxu0 %vm177_vm1, %v7052_v56 }
 0x11f   :  { %v10737_v6 = vpop.f32.mrb[34].mxu0 }
 0x120   :  { %v10743_v10 = vpop.f32.mrb[35].mxu0  ;;  %8637 = vmatmul.mubr.msk.f32.gmra.mrb[140].mxu0 %vm177_vm1, %v7053_v1 }
 0x121   :  { %8639 = vmatprep.mubr.msk.f32.mxu0 %vm177_vm1, %v7054_v5 }
 0x123   :  { %v8482_v14 = vpop.f32.mrb[36].mxu0 }
 0x124   :  { %v10755_v18 = vadd.f32 %v8482_v14, %v10741_v9  ;;  %v860_v21 = vpop.f32.mrb[37].mxu0  ;;  %8640 = vmatmul.mubr.msk.f32.gmra.mrb[142].mxu0 %vm177_vm1, %v7055_v13  ;;  %v10856_v14 = vadd.f32 %v10589_v8, %v10741_v9 }
 0x125   :  { %v10763_v25 = vadd.f32 %v860_v21, %v10741_v9 }
 0x127   :  { %v8485_v29 = vpop.f32.mrb[38].mxu0 }
 0x128   :  { %v10774_v33 = vadd.f32 %v8485_v29, %v10741_v9  ;;  %v870_v34 = vpop.f32.mrb[39].mxu0 }
 0x129   :  { %v10781_v37 = vadd.f32 %v870_v34, %v10741_v9 }
 0x12b   :  { %v8488_v42 = vpop.f32.mrb[40].mxu0 }
 0x12c   :  { %v10792_v44 = vadd.f32 %v8488_v42, %v10741_v9  ;;  %v880_v46 = vpop.f32.mrb[41].mxu0 }
 0x12d   :  { %v10799_v47 = vadd.f32 %v880_v46, %v10741_v9 }
 0x12f   :  { %v8491_v0 = vpop.f32.mrb[42].mxu0 }
 0x130   :  { %v10810_v1 = vadd.f32 %v8491_v0, %v10741_v9  ;;  %v890_v5 = vpop.f32.mrb[43].mxu0 }
 0x131   :  { %v10817_v13 = vadd.f32 %v890_v5, %v10741_v9  ;;  %v7207_v5 = vld [vmem:[%s14047_s2 + $0x140] sm:$0xff] }
 0x132   :  { %v9514_v4 = vpack.c.bf16 %v7208_v3, %v7207_v5 }
 0x133   :  { %v8494_v29 = vpop.f32.mrb[44].mxu0 }
 0x134   :  { %v10828_v34 = vadd.f32 %v8494_v29, %v10741_v9  ;;  %v900_v42 = vpop.f32.mrb[45].mxu0  ;;  %9515 = vmatprep.subr.bf16.mxu1 %v9514_v4 }
 0x135   :  { %v10835_v46 = vadd.f32 %v900_v42, %v10741_v9  ;;  %v10849_v42 = vadd.f32 %v10587_v7, %v10741_v9  ;;  %9517 = vmatpush3.bf16.msra.mxu1 %v9514_v4  ;;  %v7209_v7 = vld [vmem:[%s14047_s2 + $0x150] sm:$0xff] }
 0x137   :  { %v8497_v60 = vpop.f32.mrb[46].mxu0 }
 0x138   :  { %v10852_v21 = vadd.f32 %v8497_v60, %v10741_v9  ;;  %v910_v0 = vpop.f32.mrb[47].mxu0  ;;  %v7210_v60 = vld [vmem:[%s14047_s2 + $0x158] sm:$0xff] }
 0x139   :  { %v10859_v56 = vadd.f32 %v910_v0, %v10741_v9  ;;  %v9518_v3 = vpack.c.bf16 %v7210_v60, %v7209_v7  ;;  %v10873_v0 = vadd.f32 %v10599_v11, %v10741_v9  ;;  %v10891_v60 = vadd.f32 %v10611_v15, %v10741_v9 }
 0x13a   :  { %v10909_v15 = vadd.f32 %v10623_v19, %v10741_v9  ;;  %v10927_v19 = vadd.f32 %v10635_v23, %v10741_v9  ;;  %v10945_v23 = vadd.f32 %v10647_v27, %v10741_v9  ;;  %v10963_v27 = vadd.f32 %v10659_v31, %v10741_v9  ;;  %v7203_v31 = vld [vmem:[%s14047_s2 + $0x120] sm:$0xff] }
 0x13b   :  { %v8500_v5 = vpop.f32.mrb[48].mxu0  ;;  %9519 = vmatprep.subr.bf16.mxu1 %v9518_v3  ;;  %v10996_v11 = vadd.f32 %v10673_v36, %v10741_v9 }
 0x13c   :  { %v10876_v29 = vadd.f32 %v8500_v5, %v10741_v9  ;;  %v920_v4 = vpop.f32.mrb[49].mxu0  ;;  %9521 = vmatpush3.bf16.msra.mxu1 %v9518_v3  ;;  %14155 = vst [vmem:[#allocation6_spill] sm:$0xff] %v10909_v15  ;;  %14159 = vst [vmem:[#allocation10_spill] sm:$0xff] %v10927_v19 }
 0x13d   :  { %v10883_v41 = vadd.f32 %v920_v4, %v10741_v9  ;;  %v10898_v4 = vadd.f32 %v10613_v16, %v10741_v9  ;;  %v10916_v16 = vadd.f32 %v10625_v20, %v10741_v9  ;;  %v10934_v20 = vadd.f32 %v10637_v24, %v10741_v9  ;;  %14163 = vst [vmem:[#allocation14_spill] sm:$0xff] %v10945_v23 }
 0x13e   :  { %v10952_v24 = vadd.f32 %v10649_v28, %v10741_v9  ;;  %14167 = vst [vmem:[#allocation18_spill] sm:$0xff] %v10963_v27  ;;  %v10970_v28 = vadd.f32 %v10661_v32, %v10741_v9  ;;  %v10987_v32 = vadd.f32 %v10671_v35, %v10741_v9  ;;  %14173 = vst [vmem:[#allocation24_spill] sm:$0xff] %v10996_v11 }
 0x13f   :  { %v8503_v7 = vpop.f32.mrb[50].mxu0  ;;  %14153 = vst [vmem:[#allocation4_spill] sm:$0xff] %v10898_v4  ;;  %14157 = vst [vmem:[#allocation8_spill] sm:$0xff] %v10916_v16 }
 0x140   :  { %v10894_v5 = vadd.f32 %v8503_v7, %v10741_v9  ;;  %v930_v12 = vpop.f32.mrb[51].mxu0  ;;  %14161 = vst [vmem:[#allocation12_spill] sm:$0xff] %v10934_v20  ;;  %14165 = vst [vmem:[#allocation16_spill] sm:$0xff] %v10952_v24 }
 0x141   :  { %v10901_v38 = vadd.f32 %v930_v12, %v10741_v9  ;;  %14169 = vst [vmem:[#allocation20_spill] sm:$0xff] %v10970_v28  ;;  %14171 = vst [vmem:[#allocation22_spill] sm:$0xff] %v10987_v32 }
 0x143   :  { %14154 = vst [vmem:[#allocation5_spill] sm:$0xff] %v10901_v38  ;;  %v8506_v8 = vpop.f32.mrb[52].mxu0 }
 0x144   :  { %v10912_v7 = vadd.f32 %v8506_v8, %v10741_v9  ;;  %v940_v50 = vpop.f32.mrb[53].mxu0 }
 0x145   :  { %v10919_v12 = vadd.f32 %v940_v50, %v10741_v9 }
 0x146   :  { %14156 = vst [vmem:[#allocation7_spill] sm:$0xff] %v10912_v7 }
 0x147   :  { %14158 = vst [vmem:[#allocation9_spill] sm:$0xff] %v10919_v12  ;;  %v8509_v26 = vpop.f32.mrb[54].mxu0 }
 0x148   :  { %v10930_v8 = vadd.f32 %v8509_v26, %v10741_v9  ;;  %v950_v49 = vpop.f32.mrb[55].mxu0 }
 0x149   :  { %v10937_v50 = vadd.f32 %v950_v49, %v10741_v9 }
 0x14a   :  { %14160 = vst [vmem:[#allocation11_spill] sm:$0xff] %v10930_v8 }
 0x14b   :  { %14162 = vst [vmem:[#allocation13_spill] sm:$0xff] %v10937_v50  ;;  %v8512_v2 = vpop.f32.mrb[56].mxu0 }
 0x14c   :  { %v10948_v26 = vadd.f32 %v8512_v2, %v10741_v9  ;;  %v960_v12 = vpop.f32.mrb[57].mxu0 }
 0x14d   :  { %v10955_v49 = vadd.f32 %v960_v12, %v10741_v9 }
 0x14e   :  { %14164 = vst [vmem:[#allocation15_spill] sm:$0xff] %v10948_v26 }
 0x14f   :  { %14166 = vst [vmem:[#allocation17_spill] sm:$0xff] %v10955_v49  ;;  %v8515_v50 = vpop.f32.mrb[58].mxu0 }
 0x150   :  { %v10966_v2 = vadd.f32 %v8515_v50, %v10741_v9  ;;  %v970_v20 = vpop.f32.mrb[59].mxu0  ;;  %v7204_v50 = vld [vmem:[%s14047_s2 + $0x128] sm:$0xff] }
 0x151   :  { %v10973_v12 = vadd.f32 %v970_v20, %v10741_v9 }
 0x152   :  { %14168 = vst [vmem:[#allocation19_spill] sm:$0xff] %v10966_v2  ;;  %v10992_v2 = vpack.c.bf16 %v7204_v50, %v7203_v31  ;;  %v11008_v31 = vadd.f32 %v10683_v39, %v10741_v9  ;;  %v11026_v39 = vadd.f32 %v10695_v43, %v10741_v9  ;;  %v11044_v43 = vadd.f32 %v10707_v48, %v10741_v9 }
 0x153   :  { %14170 = vst [vmem:[#allocation21_spill] sm:$0xff] %v10973_v12  ;;  %v8518_v49 = vpop.f32.mrb[60].mxu0  ;;  %v11062_v48 = vadd.f32 %v10721_v57, %v10741_v9  ;;  %v11080_v57 = vadd.f32 %v10737_v6, %v10741_v9 }
 0x154   :  { %v10990_v20 = vadd.f32 %v8518_v49, %v10741_v9  ;;  %v980_v3 = vpop.f32.mrb[61].mxu0  ;;  %9523 = vmatprep.subr.bf16.mxu1 %v10992_v2  ;;  %14175 = vst [vmem:[#allocation26_spill] sm:$0xff] %v11008_v31  ;;  %14179 = vst [vmem:[#allocation30_spill] sm:$0xff] %v11026_v39 }
 0x155   :  { %v10999_v12 = vadd.f32 %v980_v3, %v10741_v9  ;;  %v11015_v3 = vadd.f32 %v10685_v40, %v10741_v9  ;;  %v11033_v40 = vadd.f32 %v10697_v45, %v10741_v9  ;;  %14183 = vst [vmem:[#allocation34_spill] sm:$0xff] %v11044_v43  ;;  %v11051_v45 = vadd.f32 %v10711_v52, %v10741_v9 }
 0x156   :  { %14172 = vst [vmem:[#allocation23_spill] sm:$0xff] %v10990_v20  ;;  %14187 = vst [vmem:[#allocation38_spill] sm:$0xff] %v11062_v48  ;;  %v11069_v52 = vadd.f32 %v10724_v61, %v10741_v9  ;;  %v11087_v61 = vadd.f32 %v10743_v10, %v10741_v9 }
 0x157   :  { %14174 = vst [vmem:[#allocation25_spill] sm:$0xff] %v10999_v12  ;;  %v8521_v49 = vpop.f32.mrb[62].mxu0  ;;  %14177 = vst [vmem:[#allocation28_spill] sm:$0xff] %v11015_v3 }
 0x158   :  { %v11011_v50 = vadd.f32 %v8521_v49, %v10741_v9  ;;  %v990_v36 = vpop.f32.mrb[63].mxu0  ;;  %14181 = vst [vmem:[#allocation32_spill] sm:$0xff] %v11033_v40  ;;  %14185 = vst [vmem:[#allocation36_spill] sm:$0xff] %v11051_v45 }
 0x159   :  { %v11018_v28 = vadd.f32 %v990_v36, %v10741_v9  ;;  %14189 = vst [vmem:[#allocation40_spill] sm:$0xff] %v11069_v52  ;;  %14191 = vst [vmem:[#allocation42_spill] sm:$0xff] %v11080_v57 }
 0x15a   :  { %14176 = vst [vmem:[#allocation27_spill] sm:$0xff] %v11011_v50  ;;  %14193 = vst [vmem:[#allocation44_spill] sm:$0xff] %v11087_v61 }
 0x15b   :  { %14178 = vst [vmem:[#allocation29_spill] sm:$0xff] %v11018_v28  ;;  %v8524_v12 = vpop.f32.mrb[64].mxu0 }
 0x15c   :  { %v11029_v49 = vadd.f32 %v8524_v12, %v10741_v9  ;;  %v1000_v11 = vpop.f32.mrb[65].mxu0 }
 0x15d   :  { %v11036_v36 = vadd.f32 %v1000_v11, %v10741_v9 }
 0x15e   :  { %14180 = vst [vmem:[#allocation31_spill] sm:$0xff] %v11029_v49 }
 0x15f   :  { %14182 = vst [vmem:[#allocation33_spill] sm:$0xff] %v11036_v36  ;;  %v8527_v28 = vpop.f32.mrb[66].mxu0 }
 0x160   :  { %v11047_v12 = vadd.f32 %v8527_v28, %v10741_v9  ;;  %v1010_v3 = vpop.f32.mrb[67].mxu0 }
 0x161   :  { %v11054_v11 = vadd.f32 %v1010_v3, %v10741_v9 }
 0x162   :  { %14184 = vst [vmem:[#allocation35_spill] sm:$0xff] %v11047_v12 }
 0x163   :  { %14186 = vst [vmem:[#allocation37_spill] sm:$0xff] %v11054_v11  ;;  %v8530_v36 = vpop.f32.mrb[68].mxu0 }
 0x164   :  { %v11065_v28 = vadd.f32 %v8530_v36, %v10741_v9  ;;  %v1020_v40 = vpop.f32.mrb[69].mxu0 }
 0x165   :  { %v11072_v3 = vadd.f32 %v1020_v40, %v10741_v9 }
 0x166   :  { %14188 = vst [vmem:[#allocation39_spill] sm:$0xff] %v11065_v28 }
 0x167   :  { %14190 = vst [vmem:[#allocation41_spill] sm:$0xff] %v11072_v3  ;;  %v8533_v11 = vpop.f32.mrb[70].mxu0 }
 0x168   :  { %v11083_v36 = vadd.f32 %v8533_v11, %v10741_v9  ;;  %v1030_v45 = vpop.f32.mrb[71].mxu0 }
 0x169   :  { %v11090_v40 = vadd.f32 %v1030_v45, %v10741_v9 }
 0x16a   :  { %14192 = vst [vmem:[#allocation43_spill] sm:$0xff] %v11083_v36 }
 0x16b   :  { %14194 = vst [vmem:[#allocation45_spill] sm:$0xff] %v11090_v40  ;;  %v8536_v3 = vpop.f32.mrb[72].mxu0 }
 0x16c   :  { %v1040_v6 = vpop.f32.mrb[73].mxu0 }
 0x16f   :  { %v8539_v52 = vpop.f32.mrb[74].mxu0 }
 0x170   :  { %v1050_v28 = vpop.f32.mrb[75].mxu0 }
 0x173   :  { %v8542_v11 = vpop.f32.mrb[76].mxu0 }
 0x174   :  { %v1060_v48 = vpop.f32.mrb[77].mxu0 }
 0x177   :  { %v11096_v12 = vpop.f32.mrb[78].mxu0 }
 0x178   :  { %v11098_v43 = vpop.f32.mrb[79].mxu0 }
 0x17b   :  { %v11100_v10 = vpop.f32.mrb[80].mxu0 }
 0x17c   :  { %v11102_v45 = vpop.f32.mrb[81].mxu0 }
 0x17f   :  { %v11104_v49 = vpop.f32.mrb[82].mxu0 }
 0x180   :  { %v11106_v20 = vpop.f32.mrb[83].mxu0 }
 0x183   :  { %v11108_v36 = vpop.f32.mrb[84].mxu0 }
 0x184   :  { %v11110_v35 = vpop.f32.mrb[85].mxu0 }
 0x187   :  { %v11112_v40 = vpop.f32.mrb[86].mxu0 }
 0x188   :  { %v11114_v61 = vpop.f32.mrb[87].mxu0 }
 0x18b   :  { %v11116_v57 = vpop.f32.mrb[88].mxu0 }
 0x18c   :  { %v11118_v39 = vpop.f32.mrb[89].mxu0 }
 0x18f   :  { %v11120_v50 = vpop.f32.mrb[90].mxu0 }
 0x190   :  { %14195 = vst [vmem:[#allocation46_spill] sm:$0xff] %v11120_v50  ;;  %v11122_v31 = vpop.f32.mrb[91].mxu0 }
 0x191   :  { %14196 = vst [vmem:[#allocation47_spill] sm:$0xff] %v11122_v31 }
 0x193   :  { %v11124_v32 = vpop.f32.mrb[92].mxu0 }
 0x194   :  { %14197 = vst [vmem:[#allocation48_spill] sm:$0xff] %v11124_v32  ;;  %v11126_v27 = vpop.f32.mrb[93].mxu0 }
 0x195   :  { %14198 = vst [vmem:[#allocation49_spill] sm:$0xff] %v11126_v27 }
 0x197   :  { %v11128_v24 = vpop.f32.mrb[94].mxu0 }
 0x198   :  { %14199 = vst [vmem:[#allocation50_spill] sm:$0xff] %v11128_v24  ;;  %v11130_v26 = vpop.f32.mrb[95].mxu0 }
 0x199   :  { %14200 = vst [vmem:[#allocation51_spill] sm:$0xff] %v11130_v26 }
 0x19b   :  { %v11132_v23 = vpop.f32.mrb[96].mxu0 }
 0x19c   :  { %14201 = vst [vmem:[#allocation52_spill] sm:$0xff] %v11132_v23  ;;  %v11134_v8 = vpop.f32.mrb[97].mxu0 }
 0x19d   :  { %14202 = vst [vmem:[#allocation53_spill] sm:$0xff] %v11134_v8 }
 0x19f   :  { %v11136_v19 = vpop.f32.mrb[98].mxu0 }
 0x1a0   :  { %14203 = vst [vmem:[#allocation54_spill] sm:$0xff] %v11136_v19  ;;  %v11138_v16 = vpop.f32.mrb[99].mxu0  ;;  %v1046_v19 = vadd.f32 %v8536_v3, %v10741_v9  ;;  %v14214_v3 = vmax.f32 %v10760_v22, %v10763_v25  ;;  %v7205_v22 = vld [vmem:[%s14047_s2 + $0x130] sm:$0xff]  ;;  %v7206_v25 = vld [vmem:[%s14047_s2 + $0x138] sm:$0xff] }
 0x1a1   :  { %14204 = vst [vmem:[#allocation55_spill] sm:$0xff] %v11138_v16 }
 0x1a3   :  { %v11140_v7 = vpop.f32.mrb[100].mxu0 }
 0x1a4   :  { %14205 = vst [vmem:[#allocation56_spill] sm:$0xff] %v11140_v7  ;;  %v11142_v15 = vpop.f32.mrb[101].mxu0 }
 0x1a5   :  { %14206 = vst [vmem:[#allocation57_spill] sm:$0xff] %v11142_v15  ;;  %v1041_v15 = vadd.f32 %v1040_v6, %v10741_v9 }
 0x1a7   :  { %v11144_v31 = vpop.f32.mrb[102].mxu0 }
 0x1a8   :  { %14207 = vst [vmem:[#allocation58_spill] sm:$0xff] %v11144_v31  ;;  %v11146_v32 = vpop.f32.mrb[103].mxu0 }
 0x1a9   :  { %14208 = vst [vmem:[#allocation59_spill] sm:$0xff] %v11146_v32 }
 0x1ab   :  { %v11148_v27 = vpop.f32.mrb[104].mxu0 }
 0x1ac   :  { %14209 = vst [vmem:[#allocation60_spill] sm:$0xff] %v11148_v27  ;;  %v11150_v24 = vpop.f32.mrb[105].mxu0  ;;  %v1056_v27 = vadd.f32 %v8539_v52, %v10741_v9 }
 0x1ad   :  { %14210 = vst [vmem:[#allocation61_spill] sm:$0xff] %v11150_v24 }
 0x1af   :  { %v11152_v26 = vpop.f32.mrb[106].mxu0 }
 0x1b0   :  { %14211 = vst [vmem:[#allocation62_spill] sm:$0xff] %v11152_v26  ;;  %v11154_v23 = vpop.f32.mrb[107].mxu0 }
 0x1b1   :  { %14212 = vst [vmem:[#allocation63_spill] sm:$0xff] %v11154_v23  ;;  %v14213_v23 = vmax.f32 %v10752_v17, %v10755_v18  ;;  %v14215_v17 = vmax.f32 %v10771_v30, %v10774_v33  ;;  %v14216_v30 = vmax.f32 %v10778_v51, %v10781_v37 }
 0x1b3   :  { %v8590_v8 = vpop.f32.mrb[108].mxu0 }
 0x1b4   :  { %v1226_v16 = vadd.f32 %v8590_v8, %v10741_v9  ;;  %v1220_v7 = vpop.f32.mrb[109].mxu0  ;;  %v1051_v8 = vadd.f32 %v1050_v28, %v10741_v9 }
 0x1b5   :  { %v1221_v31 = vadd.f32 %v1220_v7, %v10741_v9 }
 0x1b6   :  { %v1436_v50 = vmax.f32 %v1046_v19, %v1226_v16 }
 0x1b7   :  { %v1435_v32 = vmax.f32 %v1041_v15, %v1221_v31  ;;  %v8593_v38 = vpop.f32.mrb[110].mxu0  ;;  %v1066_v31 = vadd.f32 %v8542_v11, %v10741_v9  ;;  %v9526_v11 = vpack.c.bf16 %v7206_v25, %v7205_v22 }
 0x1b8   :  { %v1236_v24 = vadd.f32 %v8593_v38, %v10741_v9  ;;  %v1230_v26 = vpop.f32.mrb[111].mxu0  ;;  %v11165_v4 = vmax.f32 %v14213_v23, %v1436_v50 }
 0x1b9   :  { %v11171_v6 = vmax.f32 %v14214_v3, %v1435_v32  ;;  %v1231_v15 = vadd.f32 %v1230_v26, %v10741_v9  ;;  %v1061_v26 = vadd.f32 %v1060_v48, %v10741_v9  ;;  %v14217_v48 = vmax.f32 %v10789_v54, %v10792_v44 }
 0x1ba   :  { %v1438_v7 = vmax.f32 %v1056_v27, %v1236_v24  ;;  %v1508_v16 = vmax.f32 %v11165_v4, 0.0 }
 0x1bb   :  { %v1437_v38 = vmax.f32 %v1051_v8, %v1231_v15  ;;  %v8596_v19 = vpop.f32.mrb[112].mxu0  ;;  %v1076_v8 = vadd.f32 %v11096_v12, %v10741_v9  ;;  %v1071_v12 = vadd.f32 %v11098_v43, %v10741_v9 }
 0x1bc   :  { %v1474_v18 = vmax.f32 %v14215_v17, %v1438_v7  ;;  %v1246_v23 = vadd.f32 %v8596_v19, %v10741_v9  ;;  %v1240_v50 = vpop.f32.mrb[113].mxu0  ;;  %8650 = vmatprep.mubr.msk.f32.mxu1 %vm1580_vm4, %v1508_v16  ;;  %v7211_v7 = vld [vmem:[%s14047_s2 + $0x160] sm:$0xff]  ;;  %v14218_v19 = vmax.f32 %v10796_v55, %v10799_v47  ;;  %v1086_v55 = vadd.f32 %v11100_v10, %v10741_v9 }
 0x1bd   :  { %v1473_v33 = vmax.f32 %v14216_v30, %v1437_v38  ;;  %v1241_v24 = vadd.f32 %v1240_v50, %v10741_v9  ;;  %v7212_v38 = vld [vmem:[%s14047_s2 + $0x168] sm:$0xff]  ;;  %v14219_v47 = vmax.f32 %v10807_v58, %v10810_v1 }
 0x1be   :  { %v1440_v27 = vmax.f32 %v1066_v31, %v1246_v23  ;;  %v11198_v3 = vmax.f32 %v1474_v18, 0.0  ;;  %v11226_v23 = vpack.c.bf16 %v7212_v38, %v7211_v7  ;;  %v14223_v38 = vmax.f32 %v10849_v42, %v10852_v21 }
 0x1bf   :  { %v11194_v32 = vmax.f32 %v1473_v33, 0.0  ;;  %v1439_v28 = vmax.f32 %v1061_v26, %v1241_v24  ;;  %v8599_v52 = vpop.f32.mrb[114].mxu0  ;;  %v14220_v26 = vmax.f32 %v10814_v59, %v10817_v13  ;;  %v14221_v59 = vmax.f32 %v10825_v62, %v10828_v34 }
 0x1c0   :  { %v11203_v15 = vmax.f32 %v14217_v48, %v1440_v27  ;;  %v1256_v51 = vadd.f32 %v8599_v52, %v10741_v9  ;;  %v1250_v37 = vpop.f32.mrb[115].mxu0  ;;  %v1091_v52 = vadd.f32 %v11106_v20, %v10741_v9 }
 0x1c1   :  { %v11217_v54 = vmax.f32 %v14218_v19, %v1439_v28  ;;  %v1251_v44 = vadd.f32 %v1250_v37, %v10741_v9  ;;  %8651 = vmatmul.mubr.msk.f32.vlgmr.msra.gmra.mrb[0].mxu1 %vm1580_vm4, %v11194_v32  ;;  %v1106_v37 = vadd.f32 %v11108_v36, %v10741_v9  ;;  %v14224_v19 = vmax.f32 %v10856_v14, %v10859_v56 }
 0x1c2   :  { %v1442_v31 = vmax.f32 %v1076_v8, %v1256_v51  ;;  %8653 = vmatprep.mubr.msk.f32.mxu1 %vm1580_vm4, %v11198_v3  ;;  %9525 = vmatpush3.bf16.msra.mxu1 %v10992_v2  ;;  %v1081_v2 = vadd.f32 %v11102_v45, %v10741_v9  ;;  %v1096_v45 = vadd.f32 %v11104_v49, %v10741_v9 }
 0x1c3   :  { %v1511_v17 = vmax.f32 %v11217_v54, 0.0  ;;  %v1441_v18 = vmax.f32 %v1071_v12, %v1251_v44  ;;  %v8602_v43 = vpop.f32.mrb[116].mxu0  ;;  %9527 = vmatprep.subr.bf16.mxu1 %v9526_v11  ;;  %v1101_v12 = vadd.f32 %v11110_v35, %v10741_v9  ;;  %v1116_v35 = vadd.f32 %v11112_v40, %v10741_v9 }
 0x1c4   :  { %v1478_v50 = vmax.f32 %v14219_v47, %v1442_v31  ;;  %v1266_v22 = vadd.f32 %v8602_v43, %v10741_v9  ;;  %v1260_v25 = vpop.f32.mrb[117].mxu0  ;;  %v14225_v56 = vmax.f32 %v10873_v0, %v10876_v29  ;;  %v1111_v47 = vadd.f32 %v11114_v61, %v10741_v9 }
 0x1c5   :  { %v11239_v30 = vmax.f32 %v14220_v26, %v1441_v18  ;;  %v1261_v33 = vadd.f32 %v1260_v25, %v10741_v9  ;;  %8654 = vmatmul.mubr.msk.f32.gmra.mrb[2].mxu1 %vm1580_vm4, %v1511_v17  ;;  %v1126_v26 = vadd.f32 %v11116_v57, %v10741_v9  ;;  %v14227_v61 = vmax.f32 %v10891_v60, %v10894_v5 }
 0x1c6   :  { %v11245_v10 = vmax.f32 %v1478_v50, 0.0  ;;  %v1444_v58 = vmax.f32 %v1086_v55, %v1266_v22  ;;  %9529 = vmatpush3.bf16.msra.mxu1 %v9526_v11  ;;  %v14222_v11 = vmax.f32 %v10832_v63, %v10835_v46  ;;  %v14226_v50 = vmax.f32 %v10880_v53, %v10883_v41 }
 0x1c7   :  { %v1443_v1 = vmax.f32 %v1081_v2, %v1261_v33  ;;  %v8605_v24 = vpop.f32.mrb[118].mxu0  ;;  %9531 = vmatprep.subr.bf16.mxu1 %v11226_v23 }
 0x1c8   :  { %v1480_v13 = vmax.f32 %v14221_v59, %v1444_v58  ;;  %v1276_v27 = vadd.f32 %v8605_v24, %v10741_v9  ;;  %v1270_v28 = vpop.f32.mrb[119].mxu0  ;;  %8656 = vmatprep.mubr.msk.f32.mxu1 %vm1580_vm4, %v11245_v10  ;;  %v1121_v58 = vadd.f32 %v11118_v39, %v10741_v9  ;;  %v14229_v24 = vld [vmem:[#allocation5_spill] sm:$0xff] }
 0x1c9   :  { %v1479_v8 = vmax.f32 %v14222_v11, %v1443_v1  ;;  %v1271_v48 = vadd.f32 %v1270_v28, %v10741_v9  ;;  %v14228_v1 = vld [vmem:[#allocation4_spill] sm:$0xff]  ;;  %v14231_v28 = vld [vmem:[#allocation46_spill] sm:$0xff] }
 0x1ca   :  { %v1446_v49 = vmax.f32 %v1096_v45, %v1276_v27  ;;  %v11266_v7 = vmax.f32 %v1480_v13, 0.0  ;;  %v14230_v45 = vmax.f32 %v14228_v1, %v14229_v24 }
 0x1cb   :  { %v11262_v51 = vmax.f32 %v1479_v8, 0.0  ;;  %v1445_v62 = vmax.f32 %v1091_v52, %v1271_v48  ;;  %v8608_v34 = vpop.f32.mrb[120].mxu0  ;;  %v1136_v52 = vadd.f32 %v14231_v28, %v10741_v9  ;;  %v14232_v8 = vld [vmem:[#allocation6_spill] sm:$0xff]  ;;  %v14233_v48 = vld [vmem:[#allocation7_spill] sm:$0xff] }
 0x1cc   :  { %v11271_v20 = vmax.f32 %v14223_v38, %v1446_v49  ;;  %v1286_v63 = vadd.f32 %v8608_v34, %v10741_v9  ;;  %v1280_v46 = vpop.f32.mrb[121].mxu0  ;;  %v14234_v49 = vmax.f32 %v14232_v8, %v14233_v48  ;;  %v14251_v8 = vld [vmem:[#allocation51_spill] sm:$0xff] }
 0x1cd   :  { %v1481_v44 = vmax.f32 %v14224_v19, %v1445_v62  ;;  %v1281_v31 = vadd.f32 %v1280_v46, %v10741_v9  ;;  %8657 = vmatmul.mubr.msk.f32.gmra.mrb[4].mxu1 %vm1580_vm4, %v11262_v51  ;;  %v14237_v46 = vld [vmem:[#allocation9_spill] sm:$0xff]  ;;  %v1151_v48 = vadd.f32 %v14251_v8, %v10741_v9  ;;  %v7213_v8 = vld [vmem:[%s14047_s2 + $0x170] sm:$0xff] }
 0x1ce   :  { %v1448_v36 = vmax.f32 %v1106_v37, %v1286_v63  ;;  %8659 = vmatprep.mubr.msk.f32.mxu1 %vm1580_vm4, %v11266_v7  ;;  %v14235_v37 = vld [vmem:[#allocation47_spill] sm:$0xff]  ;;  %v14236_v63 = vld [vmem:[#allocation8_spill] sm:$0xff] }
 0x1cf   :  { %v11284_v21 = vmax.f32 %v1481_v44, 0.0  ;;  %v1447_v42 = vmax.f32 %v1101_v12, %v1281_v31  ;;  %v8611_v18 = vpop.f32.mrb[122].mxu0  ;;  %v1131_v38 = vadd.f32 %v14235_v37, %v10741_v9  ;;  %v14238_v12 = vmax.f32 %v14236_v63, %v14237_v46 }
 0x1d0   :  { %v1484_v14 = vmax.f32 %v14225_v56, %v1448_v36  ;;  %v1296_v43 = vadd.f32 %v8611_v18, %v10741_v9  ;;  %v1290_v55 = vpop.f32.mrb[123].mxu0 }
 0x1d1   :  { %v11297_v22 = vmax.f32 %v14226_v50, %v1447_v42  ;;  %v1291_v25 = vadd.f32 %v1290_v55, %v10741_v9  ;;  %8660 = vmatmul.mubr.msk.f32.gmra.mrb[6].mxu1 %vm1580_vm4, %v11284_v21 }
 0x1d2   :  { %v11302_v40 = vmax.f32 %v1484_v14, 0.0  ;;  %v1450_v29 = vmax.f32 %v1116_v35, %v1296_v43  ;;  %v14239_v35 = vld [vmem:[#allocation48_spill] sm:$0xff]  ;;  %v14240_v14 = vld [vmem:[#allocation10_spill] sm:$0xff]  ;;  %v14241_v43 = vld [vmem:[#allocation11_spill] sm:$0xff] }
 0x1d3   :  { %v1449_v0 = vmax.f32 %v1111_v47, %v1291_v25  ;;  %v8614_v2 = vpop.f32.mrb[124].mxu0  ;;  %v1146_v56 = vadd.f32 %v14239_v35, %v10741_v9  ;;  %v14242_v55 = vmax.f32 %v14240_v14, %v14241_v43  ;;  %v14257_v35 = vld [vmem:[#allocation19_spill] sm:$0xff] }
 0x1d4   :  { %v1486_v33 = vmax.f32 %v14227_v61, %v1450_v29  ;;  %v1306_v41 = vadd.f32 %v8614_v2, %v10741_v9  ;;  %v1300_v53 = vpop.f32.mrb[125].mxu0  ;;  %8662 = vmatprep.mubr.msk.f32.mxu1 %vm1580_vm4, %v11302_v40  ;;  %v14243_v29 = vld [vmem:[#allocation49_spill] sm:$0xff]  ;;  %v14244_v2 = vld [vmem:[#allocation12_spill] sm:$0xff] }
 0x1d5   :  { %v1485_v59 = vmax.f32 %v14230_v45, %v1449_v0  ;;  %v1301_v13 = vadd.f32 %v1300_v53, %v10741_v9  ;;  %v1141_v0 = vadd.f32 %v14243_v29, %v10741_v9  ;;  %v14247_v45 = vld [vmem:[#allocation50_spill] sm:$0xff]  ;;  %v14261_v29 = vld [vmem:[#allocation21_spill] sm:$0xff] }
 0x1d6   :  { %v1452_v57 = vmax.f32 %v1126_v26, %v1306_v41  ;;  %v11322_v11 = vmax.f32 %v1486_v33, 0.0  ;;  %v14245_v26 = vld [vmem:[#allocation13_spill] sm:$0xff] }
 0x1d7   :  { %v11318_v27 = vmax.f32 %v1485_v59, 0.0  ;;  %v1451_v60 = vmax.f32 %v1121_v58, %v1301_v13  ;;  %v8617_v5 = vpop.f32.mrb[126].mxu0  ;;  %v14246_v61 = vmax.f32 %v14244_v2, %v14245_v26  ;;  %v1156_v59 = vadd.f32 %v14247_v45, %v10741_v9  ;;  %v14248_v13 = vld [vmem:[#allocation14_spill] sm:$0xff] }
 0x1d8   :  { %v11327_v39 = vmax.f32 %v14234_v49, %v1452_v57  ;;  %v1316_v62 = vadd.f32 %v8617_v5, %v10741_v9  ;;  %v1310_v34 = vpop.f32.mrb[127].mxu0  ;;  %v14249_v57 = vld [vmem:[#allocation15_spill] sm:$0xff]  ;;  %v14252_v49 = vld [vmem:[#allocation16_spill] sm:$0xff] }
 0x1d9   :  { %v1487_v19 = vmax.f32 %v14238_v12, %v1451_v60  ;;  %v1311_v44 = vadd.f32 %v1310_v34, %v10741_v9  ;;  %8663 = vmatmul.mubr.msk.f32.gmra.mrb[8].mxu1 %vm1580_vm4, %v11318_v27  ;;  %v14250_v60 = vmax.f32 %v14248_v13, %v14249_v57  ;;  %v14264_v13 = vld [vmem:[#allocation22_spill] sm:$0xff]  ;;  %v14265_v57 = vld [vmem:[#allocation23_spill] sm:$0xff] }
 0x1da   :  { %v1454_v31 = vmax.f32 %v1136_v52, %v1316_v62  ;;  %8665 = vmatprep.mubr.msk.f32.mxu1 %vm1580_vm4, %v11322_v11  ;;  %v14253_v62 = vld [vmem:[#allocation17_spill] sm:$0xff] }
 0x1db   :  { %v11340_v36 = vmax.f32 %v1487_v19, 0.0  ;;  %v1453_v42 = vmax.f32 %v1131_v38, %v1311_v44  ;;  %v8620_v18 = vpop.f32.mrb[128].mxu0  ;;  %v14254_v34 = vmax.f32 %v14252_v49, %v14253_v62  ;;  %v14255_v44 = vld [vmem:[#allocation52_spill] sm:$0xff]  ;;  %v14267_v49 = vld [vmem:[#allocation55_spill] sm:$0xff] }
 0x1dc   :  { %v1490_v47 = vmax.f32 %v14242_v55, %v1454_v31  ;;  %v1326_v50 = vadd.f32 %v8620_v18, %v10741_v9  ;;  %v1320_v25 = vpop.f32.mrb[129].mxu0  ;;  %v1166_v31 = vadd.f32 %v14255_v44, %v10741_v9  ;;  %v14256_v18 = vld [vmem:[#allocation18_spill] sm:$0xff]  ;;  %v1171_v62 = vadd.f32 %v14267_v49, %v10741_v9  ;;  %v14281_v49 = vld [vmem:[#allocation31_spill] sm:$0xff] }
 0x1dd   :  { %v11353_v33 = vmax.f32 %v14246_v61, %v1453_v42  ;;  %v1321_v41 = vadd.f32 %v1320_v25, %v10741_v9  ;;  %8666 = vmatmul.mubr.msk.f32.gmra.mrb[10].mxu1 %vm1580_vm4, %v11340_v36  ;;  %v14260_v25 = vld [vmem:[#allocation20_spill] sm:$0xff] }
 0x1de   :  { %v11358_v53 = vmax.f32 %v1490_v47, 0.0  ;;  %v1456_v58 = vmax.f32 %v1146_v56, %v1326_v50  ;;  %v14258_v56 = vmax.f32 %v14256_v18, %v14257_v35  ;;  %v14259_v47 = vld [vmem:[#allocation53_spill] sm:$0xff]  ;;  %v14271_v18 = vld [vmem:[#allocation56_spill] sm:$0xff] }
 0x1df   :  { %v1455_v1 = vmax.f32 %v1141_v0, %v1321_v41  ;;  %v8623_v24 = vpop.f32.mrb[130].mxu0  ;;  %v1161_v50 = vadd.f32 %v14259_v47, %v10741_v9  ;;  %v14262_v0 = vmax.f32 %v14260_v25, %v14261_v29  ;;  %v1186_v35 = vadd.f32 %v14271_v18, %v10741_v9  ;;  %v7215_v29 = vld [vmem:[%s14047_s2 + $0x180] sm:$0xff] }
 0x1e0   :  { %v1492_v5 = vmax.f32 %v14250_v60, %v1456_v58  ;;  %v1336_v28 = vadd.f32 %v8623_v24, %v10741_v9  ;;  %v1330_v52 = vpop.f32.mrb[131].mxu0  ;;  %8668 = vmatprep.mubr.msk.f32.mxu1 %vm1580_vm4, %v11358_v53  ;;  %v14263_v24 = vld [vmem:[#allocation54_spill] sm:$0xff]  ;;  %v14266_v60 = vmax.f32 %v14264_v13, %v14265_v57 }
 0x1e1   :  { %v1491_v37 = vmax.f32 %v14254_v34, %v1455_v1  ;;  %v1331_v38 = vadd.f32 %v1330_v52, %v10741_v9  ;;  %v1176_v45 = vadd.f32 %v14263_v24, %v10741_v9  ;;  %v14269_v34 = vld [vmem:[#allocation25_spill] sm:$0xff] }
 0x1e2   :  { %v1458_v63 = vmax.f32 %v1156_v59, %v1336_v28  ;;  %v11378_v42 = vmax.f32 %v1492_v5, 0.0  ;;  %v1507_v59 = vmax.f32 %v11171_v6, 0.0  ;;  %v14268_v6 = vld [vmem:[#allocation24_spill] sm:$0xff] }
 0x1e3   :  { %v11374_v46 = vmax.f32 %v1491_v37, 0.0  ;;  %v1457_v12 = vmax.f32 %v1151_v48, %v1331_v38  ;;  %v8626_v19 = vpop.f32.mrb[132].mxu0  ;;  %v7214_v48 = vld [vmem:[%s14047_s2 + $0x178] sm:$0xff]  ;;  %v14270_v37 = vmax.f32 %v14268_v6, %v14269_v34  ;;  %v14283_v6 = vld [vmem:[#allocation59_spill] sm:$0xff] }
 0x1e4   :  { %v11383_v14 = vmax.f32 %v14258_v56, %v1458_v63  ;;  %v1346_v43 = vadd.f32 %v8626_v19, %v10741_v9  ;;  %v1340_v55 = vpop.f32.mrb[133].mxu0  ;;  %v14272_v56 = vld [vmem:[#allocation26_spill] sm:$0xff]  ;;  %v1191_v34 = vadd.f32 %v14283_v6, %v10741_v9 }
 0x1e5   :  { %v1493_v2 = vmax.f32 %v14262_v0, %v1457_v12  ;;  %v1341_v26 = vadd.f32 %v1340_v55, %v10741_v9  ;;  %8669 = vmatmul.mubr.msk.f32.gmra.mrb[12].mxu1 %vm1580_vm4, %v11374_v46  ;;  %v7216_v0 = vld [vmem:[%s14047_s2 + $0x188] sm:$0xff] }
 0x1e6   :  { %v1460_v61 = vmax.f32 %v1166_v31, %v1346_v43  ;;  %8671 = vmatprep.mubr.msk.f32.mxu1 %vm1580_vm4, %v11378_v42  ;;  %v9534_v31 = vpack.c.bf16 %v7214_v48, %v7213_v8  ;;  %v14273_v43 = vld [vmem:[#allocation27_spill] sm:$0xff]  ;;  %v1513_v8 = vmax.f32 %v11239_v30, 0.0  ;;  %v14280_v48 = vld [vmem:[#allocation30_spill] sm:$0xff]  ;;  %v11593_v54 = vmax.f32 %v11383_v14, 0.0 }
 0x1e7   :  { %v11396_v41 = vmax.f32 %v1493_v2, 0.0  ;;  %v1459_v58 = vmax.f32 %v1161_v50, %v1341_v26  ;;  %v8629_v1 = vpop.f32.mrb[134].mxu0  ;;  %v14274_v55 = vmax.f32 %v14272_v56, %v14273_v43  ;;  %v14275_v2 = vld [vmem:[#allocation57_spill] sm:$0xff]  ;;  %v14282_v4 = vmax.f32 %v14280_v48, %v14281_v49  ;;  %v14287_v43 = vld [vmem:[#allocation60_spill] sm:$0xff]  ;;  %v14295_v48 = vld [vmem:[#allocation62_spill] sm:$0xff] }
 0x1e8   :  { %v11404_v5 = vmax.f32 %v14266_v60, %v1460_v61  ;;  %v1356_v28 = vadd.f32 %v8629_v1, %v10741_v9  ;;  %v1350_v52 = vpop.f32.mrb[135].mxu0  ;;  %v1181_v26 = vadd.f32 %v14275_v2, %v10741_v9  ;;  %v14276_v61 = vld [vmem:[#allocation28_spill] sm:$0xff]  ;;  %v9538_v60 = vpack.c.bf16 %v7216_v0, %v7215_v29  ;;  %v7223_v14 = vld [vmem:[%s14047_s2 + $0x1c0] sm:$0xff] }
 0x1e9   :  { %v11418_v38 = vmax.f32 %v14270_v37, %v1459_v58  ;;  %v1351_v63 = vadd.f32 %v1350_v52, %v10741_v9  ;;  %8672 = vmatmul.mubr.msk.f32.gmra.mrb[14].mxu1 %vm1580_vm4, %v11396_v41  ;;  %v14277_v58 = vld [vmem:[#allocation29_spill] sm:$0xff]  ;;  %v14284_v37 = vld [vmem:[#allocation32_spill] sm:$0xff]  ;;  %v1216_v49 = vadd.f32 %v14295_v48, %v10741_v9  ;;  %v7224_v48 = vld [vmem:[%s14047_s2 + $0x1c8] sm:$0xff] }
 0x1ea   :  { %v1462_v12 = vmax.f32 %v1176_v45, %v1356_v28  ;;  %8682 = vmatprep.mubr.msk.f32.mxu1 %vm1580_vm4, %v1507_v59  ;;  %v14278_v1 = vmax.f32 %v14276_v61, %v14277_v58  ;;  %v14279_v28 = vld [vmem:[#allocation58_spill] sm:$0xff]  ;;  %v14291_v61 = vld [vmem:[#allocation61_spill] sm:$0xff]  ;;  %v9554_v30 = vpack.c.bf16 %v7224_v48, %v7223_v14  ;;  %v7404_v14 = vld [vmem:[%s14048_s3 + $0x1a8] sm:$0xff] }
 0x1eb   :  { %v1461_v19 = vmax.f32 %v1171_v62, %v1351_v63  ;;  %v8632_v44 = vpop.f32.mrb[136].mxu0  ;;  %v1196_v52 = vadd.f32 %v14279_v28, %v10741_v9  ;;  %v14285_v63 = vld [vmem:[#allocation33_spill] sm:$0xff]  ;;  %v1201_v58 = vadd.f32 %v14291_v61, %v10741_v9  ;;  %v14306_v61 = vld [vmem:[#allocation44_spill] sm:$0xff] }
 0x1ec   :  { %v11429_v47 = vmax.f32 %v14274_v55, %v1462_v12  ;;  %v1366_v50 = vadd.f32 %v8632_v44, %v10741_v9  ;;  %v1360_v25 = vpop.f32.mrb[137].mxu0  ;;  %v14286_v12 = vmax.f32 %v14284_v37, %v14285_v63  ;;  %v1206_v55 = vadd.f32 %v14287_v43, %v10741_v9  ;;  %v7401_v48 = vld [vmem:[%s14048_s3 + $0x190] sm:$0xff] }
 0x1ed   :  { %v11443_v24 = vmax.f32 %v14278_v1, %v1461_v19  ;;  %v1361_v45 = vadd.f32 %v1360_v25, %v10741_v9  ;;  %8683 = vmatmul.mubr.msk.f32.vlgmr.msra.gmra.mrb[0].mxu1 %vm1580_vm4, %v1508_v16  ;;  %v14289_v25 = vld [vmem:[#allocation35_spill] sm:$0xff]  ;;  %v14292_v1 = vld [vmem:[#allocation36_spill] sm:$0xff] }
 0x1ee   :  { %v1464_v59 = vmax.f32 %v1186_v35, %v1366_v50  ;;  %9533 = vmatpush3.bf16.msra.mxu1 %v11226_v23  ;;  %8685 = vmatprep.mubr.msk.f32.mxu1 %vm1580_vm4, %v11194_v32  ;;  %v14288_v50 = vld [vmem:[#allocation34_spill] sm:$0xff] }
 0x1ef   :  { %v1463_v13 = vmax.f32 %v1181_v26, %v1361_v45  ;;  %v8635_v57 = vpop.f32.mrb[138].mxu0  ;;  %9535 = vmatprep.subr.bf16.mxu1 %v9534_v31  ;;  %v14290_v29 = vmax.f32 %v14288_v50, %v14289_v25  ;;  %v14293_v45 = vld [vmem:[#allocation37_spill] sm:$0xff]  ;;  %v14303_v25 = vld [vmem:[#allocation42_spill] sm:$0xff] }
 0x1f0   :  { %v11458_v62 = vmax.f32 %v14282_v4, %v1464_v59  ;;  %v1376_v16 = vadd.f32 %v8635_v57, %v10741_v9  ;;  %v1370_v23 = vpop.f32.mrb[139].mxu0  ;;  %v11497_v4 = vmax.f32 %v11297_v22, 0.0 }
 0x1f1   :  { %v11466_v19 = vmax.f32 %v14286_v12, %v1463_v13  ;;  %v1371_v44 = vadd.f32 %v1370_v23, %v10741_v9  ;;  %8686 = vmatmul.mubr.msk.f32.gmra.mrb[2].mxu1 %vm1580_vm4, %v11198_v3  ;;  %v14297_v23 = vld [vmem:[#allocation39_spill] sm:$0xff] }
 0x1f2   :  { %v1466_v18 = vmax.f32 %v1196_v52, %v1376_v16  ;;  %8688 = vmatprep.mubr.msk.f32.mxu1 %vm1580_vm4, %v1513_v8  ;;  %9537 = vmatpush3.bf16.msra.mxu1 %v9534_v31  ;;  %v14294_v31 = vmax.f32 %v14292_v1, %v14293_v45  ;;  %v14296_v16 = vld [vmem:[#allocation38_spill] sm:$0xff]  ;;  %v14299_v12 = vld [vmem:[#allocation63_spill] sm:$0xff] }
 0x1f3   :  { %v1465_v35 = vmax.f32 %v1191_v34, %v1371_v44  ;;  %v8638_v56 = vpop.f32.mrb[140].mxu0  ;;  %9539 = vmatprep.subr.bf16.mxu1 %v9538_v60  ;;  %v14298_v6 = vmax.f32 %v14296_v16, %v14297_v23  ;;  %v1211_v44 = vadd.f32 %v14299_v12, %v10741_v9  ;;  %v11642_v16 = vmax.f32 %v11443_v24, 0.0  ;;  %v7229_v12 = vld [vmem:[%s14047_s2 + $0x1f0] sm:$0xff] }
 0x1f4   :  { %v11479_v0 = vmax.f32 %v14290_v29, %v1466_v18  ;;  %v1386_v2 = vadd.f32 %v8638_v56, %v10741_v9  ;;  %v1380_v26 = vpop.f32.mrb[141].mxu0  ;;  %v14300_v18 = vld [vmem:[#allocation40_spill] sm:$0xff]  ;;  %v14304_v29 = vld [vmem:[#allocation43_spill] sm:$0xff]  ;;  %v11649_v23 = vmax.f32 %v11429_v47, 0.0  ;;  %v7227_v47 = vld [vmem:[%s14047_s2 + $0x1e0] sm:$0xff] }
 0x1f5   :  { %v11487_v59 = vmax.f32 %v14294_v31, %v1465_v35  ;;  %v1381_v13 = vadd.f32 %v1380_v26, %v10741_v9  ;;  %8689 = vmatmul.mubr.msk.f32.gmra.mrb[4].mxu1 %vm1580_vm4, %v11245_v10  ;;  %v14301_v35 = vld [vmem:[#allocation41_spill] sm:$0xff]  ;;  %v7217_v31 = vld [vmem:[%s14047_s2 + $0x190] sm:$0xff] }
 0x1f6   :  { %v1468_v57 = vmax.f32 %v1206_v55, %v1386_v2  ;;  %8691 = vmatprep.mubr.msk.f32.mxu1 %vm1580_vm4, %v11262_v51  ;;  %v14302_v56 = vmax.f32 %v14300_v18, %v14301_v35  ;;  %v14305_v2 = vmax.f32 %v14303_v25, %v14304_v29  ;;  %v7384_v18 = vld [vmem:[%s14048_s3 + $0x108] sm:$0xff]  ;;  %v7383_v35 = vld [vmem:[%s14048_s3 + $0x100] sm:$0xff] }
 0x1f7   :  { %v1467_v28 = vmax.f32 %v1201_v58, %v1381_v13  ;;  %v8641_v52 = vpop.f32.mrb[142].mxu0  ;;  %v14307_v58 = vld [vmem:[#allocation45_spill] sm:$0xff] }
 0x1f8   :  { %v11502_v34 = vmax.f32 %v14298_v6, %v1468_v57  ;;  %v1396_v37 = vadd.f32 %v8641_v52, %v10741_v9  ;;  %v1390_v63 = vpop.f32.mrb[143].mxu0  ;;  %v14308_v1 = vmax.f32 %v14306_v61, %v14307_v58  ;;  %v7219_v57 = vld [vmem:[%s14047_s2 + $0x1a0] sm:$0xff]  ;;  %v1512_v52 = vmax.f32 %v11203_v15, 0.0  ;;  %v7225_v6 = vld [vmem:[%s14047_s2 + $0x1d0] sm:$0xff]  ;;  %v7236_v58 = vld [vmem:[%s14047_s2 + $0x228] sm:$0xff] }
 0x1f9   :  { %v11510_v43 = vmax.f32 %v14302_v56, %v1467_v28  ;;  %v1391_v55 = vadd.f32 %v1390_v63, %v10741_v9  ;;  %8692 = vmatmul.mubr.msk.f32.gmra.mrb[6].mxu1 %vm1580_vm4, %v11266_v7  ;;  %v11532_v9 = vmax.f32 %v11353_v33, 0.0  ;;  %v7218_v33 = vld [vmem:[%s14047_s2 + $0x198] sm:$0xff]  ;;  %v7220_v28 = vld [vmem:[%s14047_s2 + $0x1a8] sm:$0xff]  ;;  %v11582_v15 = vmax.f32 %v11327_v39, 0.0  ;;  %v7235_v61 = vld [vmem:[%s14047_s2 + $0x220] sm:$0xff] }
 0x1fa   :  { %v1470_v22 = vmax.f32 %v1216_v49, %v1396_v37  ;;  %8694 = vmatprep.mubr.msk.f32.mxu1 %vm1580_vm4, %v11497_v4  ;;  %v9542_v13 = vpack.c.bf16 %v7218_v33, %v7217_v31  ;;  %v7222_v39 = vld [vmem:[%s14047_s2 + $0x1b8] sm:$0xff]  ;;  %v11639_v49 = vmax.f32 %v11404_v5, 0.0  ;;  %v7228_v37 = vld [vmem:[%s14047_s2 + $0x1e8] sm:$0xff]  ;;  %v7237_v33 = vld [vmem:[%s14047_s2 + $0x230] sm:$0xff] }
 0x1fb   :  { %v1469_v50 = vmax.f32 %v1211_v44, %v1391_v55  ;;  %v7226_v5 = vld [vmem:[%s14047_s2 + $0x1d8] sm:$0xff]  ;;  %v9562_v63 = vpack.c.bf16 %v7228_v37, %v7227_v47  ;;  %v1539_v31 = vmax.f32 %v11510_v43, 0.0 }
 0x1fc   :  { %v11520_v26 = vmax.f32 %v14305_v2, %v1470_v22  ;;  %v9558_v24 = vpack.c.bf16 %v7226_v5, %v7225_v6  ;;  %v7230_v44 = vld [vmem:[%s14047_s2 + $0x1f8] sm:$0xff]  ;;  %v7387_v22 = vld [vmem:[%s14048_s3 + $0x120] sm:$0xff]  ;;  %v7408_v5 = vld [vmem:[%s14048_s3 + $0x1c8] sm:$0xff] }
 0x1fd   :  { %v11525_v45 = vmax.f32 %v14308_v1, %v1469_v50  ;;  %8695 = vmatmul.mubr.msk.f32.gmra.mrb[8].mxu1 %vm1580_vm4, %v11302_v40  ;;  %v9566_v56 = vpack.c.bf16 %v7230_v44, %v7229_v12  ;;  %v7232_v50 = vld [vmem:[%s14047_s2 + $0x208] sm:$0xff]  ;;  %v9588_v25 = vpack.c.bf16 %v7387_v22, %v7383_v35  ;;  %v9578_v1 = vpack.c.bf16 %v7236_v58, %v7235_v61  ;;  %v7386_v43 = vld [vmem:[%s14048_s3 + $0x118] sm:$0xff]  ;;  %v7411_v12 = vld [vmem:[%s14048_s3 + $0x1e0] sm:$0xff] }
 0x1fe   :  { %8697 = vmatprep.mubr.msk.f32.mxu1 %vm1580_vm4, %v11318_v27  ;;  %v7410_v47 = vld [vmem:[%s14048_s3 + $0x1d8] sm:$0xff]  ;;  %v7413_v35 = vld [vmem:[%s14048_s3 + $0x1f0] sm:$0xff]  ;;  %v3614_v22 = vld [vmem:[%s14044_s1] sm:$0xff] }
 0x201   :  { %8698 = vmatmul.mubr.msk.f32.gmra.mrb[10].mxu1 %vm1580_vm4, %v11322_v11 }
 0x202   :  { %8700 = vmatprep.mubr.msk.f32.mxu1 %vm1580_vm4, %v11532_v9 }
 0x205   :  { %8701 = vmatmul.mubr.msk.f32.gmra.mrb[12].mxu1 %vm1580_vm4, %v11358_v53 }
 0x206   :  { %8703 = vmatprep.mubr.msk.f32.mxu1 %vm1580_vm4, %v11374_v46 }
 0x209   :  { %8704 = vmatmul.mubr.msk.f32.gmra.mrb[14].mxu1 %vm1580_vm4, %v11378_v42 }
 0x20a   :  { %8714 = vmatprep.mubr.msk.f32.mxu1 %vm1580_vm4, %v11194_v32  ;;  %v9546_v32 = vpack.c.bf16 %v7220_v28, %v7219_v57  ;;  %v7389_v57 = vld [vmem:[%s14048_s3 + $0x130] sm:$0xff] }
 0x20d   :  { %8715 = vmatmul.mubr.msk.f32.vlgmr.msra.gmra.mrb[0].mxu1 %vm1580_vm4, %v11198_v3  ;;  %v1518_v3 = vmax.f32 %v11271_v20, 0.0  ;;  %v7233_v20 = vld [vmem:[%s14047_s2 + $0x210] sm:$0xff] }
 0x20e   :  { %9541 = vmatpush3.bf16.msra.mxu1 %v9538_v60  ;;  %8717 = vmatprep.mubr.msk.f32.mxu1 %vm1580_vm4, %v1511_v17  ;;  %v7221_v17 = vld [vmem:[%s14047_s2 + $0x1b0] sm:$0xff] }
 0x20f   :  { %9543 = vmatprep.subr.bf16.mxu1 %v9542_v13  ;;  %v9550_v60 = vpack.c.bf16 %v7222_v39, %v7221_v17  ;;  %v7406_v17 = vld [vmem:[%s14048_s3 + $0x1b8] sm:$0xff]  ;;  %v7400_v39 = vld [vmem:[%s14048_s3 + $0x188] sm:$0xff] }
 0x211   :  { %8718 = vmatmul.mubr.msk.f32.gmra.mrb[2].mxu1 %vm1580_vm4, %v1512_v52 }
 0x212   :  { %8720 = vmatprep.mubr.msk.f32.mxu1 %vm1580_vm4, %v11262_v51  ;;  %9545 = vmatpush3.bf16.msra.mxu1 %v9542_v13 }
 0x213   :  { %9547 = vmatprep.subr.bf16.mxu1 %v9546_v32 }
 0x215   :  { %8721 = vmatmul.mubr.msk.f32.gmra.mrb[4].mxu1 %vm1580_vm4, %v11266_v7 }
 0x216   :  { %8723 = vmatprep.mubr.msk.f32.mxu1 %vm1580_vm4, %v11284_v21 }
 0x219   :  { %8724 = vmatmul.mubr.msk.f32.gmra.mrb[6].mxu1 %vm1580_vm4, %v1518_v3 }
 0x21a   :  { %8726 = vmatprep.mubr.msk.f32.mxu1 %vm1580_vm4, %v11318_v27 }
 0x21d   :  { %8727 = vmatmul.mubr.msk.f32.gmra.mrb[8].mxu1 %vm1580_vm4, %v11322_v11 }
 0x21e   :  { %8729 = vmatprep.mubr.msk.f32.mxu1 %vm1580_vm4, %v11340_v36 }
 0x221   :  { %8730 = vmatmul.mubr.msk.f32.gmra.mrb[10].mxu1 %vm1580_vm4, %v11582_v15 }
 0x222   :  { %8732 = vmatprep.mubr.msk.f32.mxu1 %vm1580_vm4, %v11374_v46 }
 0x225   :  { %8733 = vmatmul.mubr.msk.f32.gmra.mrb[12].mxu1 %vm1580_vm4, %v11378_v42 }
 0x226   :  { %8735 = vmatprep.mubr.msk.f32.mxu1 %vm1580_vm4, %v11396_v41 }
 0x229   :  { %8736 = vmatmul.mubr.msk.f32.gmra.mrb[14].mxu1 %vm1580_vm4, %v11593_v54 }
 0x22a   :  { %8746 = vmatprep.mubr.msk.f32.mxu1 %vm1580_vm4, %v1513_v8  ;;  %v1531_v8 = vmax.f32 %v11418_v38, 0.0  ;;  %v1540_v38 = vmax.f32 %v11502_v34, 0.0  ;;  %v7390_v34 = vld [vmem:[%s14048_s3 + $0x138] sm:$0xff] }
 0x22b   :  { %v9602_v13 = vpack.c.bf16 %v7390_v34, %v7386_v43 }
 0x22d   :  { %8747 = vmatmul.mubr.msk.f32.vlgmr.msra.gmra.mrb[0].mxu1 %vm1580_vm4, %v11245_v10 }
 0x22e   :  { %9549 = vmatpush3.bf16.msra.mxu1 %v9546_v32  ;;  %8749 = vmatprep.mubr.msk.f32.mxu1 %vm1580_vm4, %v11262_v51  ;;  %v7391_v32 = vld [vmem:[%s14048_s3 + $0x140] sm:$0xff] }
 0x22f   :  { %9551 = vmatprep.subr.bf16.mxu1 %v9550_v60 }
 0x231   :  { %8750 = vmatmul.mubr.msk.f32.gmra.mrb[2].mxu1 %vm1580_vm4, %v11266_v7 }
 0x232   :  { %8752 = vmatprep.mubr.msk.f32.mxu1 %vm1580_vm4, %v11497_v4  ;;  %9553 = vmatpush3.bf16.msra.mxu1 %v9550_v60 }
 0x233   :  { %9555 = vmatprep.subr.bf16.mxu1 %v9554_v30 }
 0x235   :  { %8753 = vmatmul.mubr.msk.f32.gmra.mrb[4].mxu1 %vm1580_vm4, %v11302_v40 }
 0x236   :  { %8755 = vmatprep.mubr.msk.f32.mxu1 %vm1580_vm4, %v11318_v27 }
 0x239   :  { %8756 = vmatmul.mubr.msk.f32.gmra.mrb[6].mxu1 %vm1580_vm4, %v11322_v11 }
 0x23a   :  { %8758 = vmatprep.mubr.msk.f32.mxu1 %vm1580_vm4, %v11532_v9 }
 0x23d   :  { %8759 = vmatmul.mubr.msk.f32.gmra.mrb[8].mxu1 %vm1580_vm4, %v11358_v53 }
 0x23e   :  { %8761 = vmatprep.mubr.msk.f32.mxu1 %vm1580_vm4, %v11374_v46 }
 0x241   :  { %8762 = vmatmul.mubr.msk.f32.gmra.mrb[10].mxu1 %vm1580_vm4, %v11378_v42 }
 0x242   :  { %8764 = vmatprep.mubr.msk.f32.mxu1 %vm1580_vm4, %v1531_v8 }
 0x245   :  { %8765 = vmatmul.mubr.msk.f32.gmra.mrb[12].mxu1 %vm1580_vm4, %v11639_v49 }
 0x246   :  { %8767 = vmatprep.mubr.msk.f32.mxu1 %vm1580_vm4, %v11642_v16 }
 0x249   :  { %8768 = vmatmul.mubr.msk.f32.gmra.mrb[14].mxu1 %vm1580_vm4, %v11649_v23 }
 0x24a   :  { %8778 = vmatprep.mubr.msk.f32.mxu1 %vm1580_vm4, %v11245_v10  ;;  %v11696_v10 = vmax.f32 %v11466_v19, 0.0  ;;  %v7388_v19 = vld [vmem:[%s14048_s3 + $0x128] sm:$0xff] }
 0x24b   :  { %v9586_v55 = vpack.c.bf16 %v7388_v19, %v7384_v18  ;;  %v7409_v19 = vld [vmem:[%s14048_s3 + $0x1d0] sm:$0xff] }
 0x24d   :  { %8779 = vmatmul.mubr.msk.f32.vlgmr.msra.gmra.mrb[0].mxu1 %vm1580_vm4, %v11262_v51  ;;  %9587 = vmatprep.subr.bf16.mxu0 %v9586_v55  ;;  %v14100_v55 = vmov 0.0  }
 0x24e   :  { %9557 = vmatpush3.bf16.msra.mxu1 %v9554_v30  ;;  %8781 = vmatprep.mubr.msk.f32.mxu1 %vm1580_vm4, %v11266_v7  ;;  %v7405_v30 = vld [vmem:[%s14048_s3 + $0x1b0] sm:$0xff] }
 0x24f   :  { %9559 = vmatprep.subr.bf16.mxu1 %v9558_v24  ;;  %9589 = vmatpush1.bf16.msra.mxu0 %v9588_v25  ;;  %v3480_v25 = vld [vmem:[%s14045_s0 + $0x50] sm:$0xff] }
 0x250   :  { %3252 = vmatprep.mubr.f32.mxu0 %v14100_v55 }
 0x251   :  { %8782 = vmatmul.mubr.msk.f32.gmra.mrb[2].mxu1 %vm1580_vm4, %v11284_v21 }
 0x252   :  { %8784 = vmatprep.mubr.msk.f32.mxu1 %vm1580_vm4, %v11302_v40  ;;  %9561 = vmatpush3.bf16.msra.mxu1 %v9558_v24  ;;  %v7412_v24 = vld [vmem:[%s14048_s3 + $0x1e8] sm:$0xff] }
 0x253   :  { %9563 = vmatprep.subr.bf16.mxu1 %v9562_v63  ;;  %v9598_v37 = vpack.c.bf16 %v7412_v24, %v7408_v5 }
 0x255   :  { %8785 = vmatmul.mubr.msk.f32.gmra.mrb[4].mxu1 %vm1580_vm4, %v11318_v27 }
 0x256   :  { %8787 = vmatprep.mubr.msk.f32.mxu1 %vm1580_vm4, %v11322_v11 }
 0x259   :  { %8788 = vmatmul.mubr.msk.f32.gmra.mrb[6].mxu1 %vm1580_vm4, %v11340_v36 }
 0x25a   :  { %8790 = vmatprep.mubr.msk.f32.mxu1 %vm1580_vm4, %v11358_v53 }
 0x25d   :  { %8791 = vmatmul.mubr.msk.f32.gmra.mrb[8].mxu1 %vm1580_vm4, %v11374_v46 }
 0x25e   :  { %8793 = vmatprep.mubr.msk.f32.mxu1 %vm1580_vm4, %v11378_v42 }
 0x261   :  { %8794 = vmatmul.mubr.msk.f32.gmra.mrb[10].mxu1 %vm1580_vm4, %v11396_v41 }
 0x262   :  { %8796 = vmatprep.mubr.msk.f32.mxu1 %vm1580_vm4, %v11639_v49 }
 0x265   :  { %8797 = vmatmul.mubr.msk.f32.gmra.mrb[12].mxu1 %vm1580_vm4, %v11642_v16 }
 0x266   :  { %8799 = vmatprep.mubr.msk.f32.mxu1 %vm1580_vm4, %v11649_v23 }
 0x269   :  { %8800 = vmatmul.mubr.msk.f32.gmra.mrb[14].mxu1 %vm1580_vm4, %v11696_v10 }
 0x26a   :  { %8810 = vmatprep.mubr.msk.f32.mxu1 %vm1580_vm4, %v11262_v51  ;;  %v7231_v51 = vld [vmem:[%s14047_s2 + $0x200] sm:$0xff] }
 0x26b   :  { %v9570_v29 = vpack.c.bf16 %v7232_v50, %v7231_v51  ;;  %v3615_v51 = vld [vmem:[%s14044_s1 + $0x8] sm:$0x1] }
 0x26c   :  { %v9642_v50 = vpack.c.bf16 %v3615_v51, %v3614_v22  ;;  %v3477_v22 = vld [vmem:[%s14045_s0 + $0x38] sm:$0xff]  ;;  %v3478_v51 = vld [vmem:[%s14045_s0 + $0x40] sm:$0xff] }
 0x26d   :  { %8811 = vmatmul.mubr.msk.f32.vlgmr.msra.gmra.mrb[0].mxu1 %vm1580_vm4, %v11266_v7  ;;  %v1536_v7 = vmax.f32 %v11458_v62, 0.0  ;;  %v7397_v62 = vld [vmem:[%s14048_s3 + $0x170] sm:$0xff] }
 0x26e   :  { %9565 = vmatpush3.bf16.msra.mxu1 %v9562_v63  ;;  %8813 = vmatprep.mubr.msk.f32.mxu1 %vm1580_vm4, %v11284_v21  ;;  %v7234_v21 = vld [vmem:[%s14047_s2 + $0x218] sm:$0xff] }
 0x26f   :  { %9567 = vmatprep.subr.bf16.mxu1 %v9566_v56  ;;  %v9574_v2 = vpack.c.bf16 %v7234_v21, %v7233_v20  ;;  %v7414_v63 = vld [vmem:[%s14048_s3 + $0x1f8] sm:$0xff]  ;;  %v11967_v20 = vld [vmem:[%s14046_s5 + $0x8] sm:$0x3f] }
 0x270   :  { %v9614_v44 = vpack.c.bf16 %v7414_v63, %v7410_v47 }
 0x271   :  { %8814 = vmatmul.mubr.msk.f32.gmra.mrb[2].mxu1 %vm1580_vm4, %v1518_v3  ;;  %v7395_v3 = vld [vmem:[%s14048_s3 + $0x160] sm:$0xff] }
 0x272   :  { %8816 = vmatprep.mubr.msk.f32.mxu1 %vm1580_vm4, %v11318_v27  ;;  %9569 = vmatpush3.bf16.msra.mxu1 %v9566_v56  ;;  %v9616_v56 = vpack.c.bf16 %v7413_v35, %v7409_v19  ;;  %v3474_v19 = vld [vmem:[%s14045_s0 + $0x20] sm:$0xff]  ;;  %v3475_v35 = vld [vmem:[%s14045_s0 + $0x28] sm:$0xff] }
 0x273   :  { %9571 = vmatprep.subr.bf16.mxu1 %v9570_v29 }
 0x275   :  { %8817 = vmatmul.mubr.msk.f32.gmra.mrb[4].mxu1 %vm1580_vm4, %v11322_v11 }
 0x276   :  { %8819 = vmatprep.mubr.msk.f32.mxu1 %vm1580_vm4, %v11340_v36 }
 0x279   :  { %8820 = vmatmul.mubr.msk.f32.gmra.mrb[6].mxu1 %vm1580_vm4, %v11582_v15 }
 0x27a   :  { %8822 = vmatprep.mubr.msk.f32.mxu1 %vm1580_vm4, %v11374_v46 }
 0x27d   :  { %8823 = vmatmul.mubr.msk.f32.gmra.mrb[8].mxu1 %vm1580_vm4, %v11378_v42 }
 0x27e   :  { %8825 = vmatprep.mubr.msk.f32.mxu1 %vm1580_vm4, %v11396_v41 }
 0x281   :  { %8826 = vmatmul.mubr.msk.f32.gmra.mrb[10].mxu1 %vm1580_vm4, %v11593_v54 }
 0x282   :  { %8828 = vmatprep.mubr.msk.f32.mxu1 %vm1580_vm4, %v11642_v16 }
 0x285   :  { %8829 = vmatmul.mubr.msk.f32.gmra.mrb[12].mxu1 %vm1580_vm4, %v11649_v23 }
 0x286   :  { %8831 = vmatprep.mubr.msk.f32.mxu1 %vm1580_vm4, %v11696_v10 }
 0x289   :  { %8832 = vmatmul.mubr.msk.f32.gmra.mrb[14].mxu1 %vm1580_vm4, %v1536_v7 }
 0x28a   :  { %8842 = vmatprep.mubr.msk.f32.mxu1 %vm1580_vm4, %v11497_v4  ;;  %v1537_v4 = vmax.f32 %v11487_v59, 0.0  ;;  %v7238_v59 = vld [vmem:[%s14047_s2 + $0x238] sm:$0xff] }
 0x28d   :  { %8843 = vmatmul.mubr.msk.f32.vlgmr.msra.gmra.mrb[0].mxu1 %vm1580_vm4, %v11302_v40 }
 0x28e   :  { %9573 = vmatpush3.bf16.msra.mxu1 %v9570_v29  ;;  %8845 = vmatprep.mubr.msk.f32.mxu1 %vm1580_vm4, %v11318_v27  ;;  %v14310_v29 = vld [vmem:[#allocation3_spill] sm:$0xff] }
 0x28f   :  { %9575 = vmatprep.subr.bf16.mxu1 %v9574_v2 }
 0x291   :  { %8846 = vmatmul.mubr.msk.f32.gmra.mrb[2].mxu1 %vm1580_vm4, %v11322_v11 }
 0x292   :  { %8848 = vmatprep.mubr.msk.f32.mxu1 %vm1580_vm4, %v11532_v9  ;;  %9577 = vmatpush3.bf16.msra.mxu1 %v9574_v2  ;;  %v1538_v9 = vmax.f32 %v11479_v0, 0.0  ;;  %v9582_v0 = vpack.c.bf16 %v7238_v59, %v7237_v33 }
 0x293   :  { %9579 = vmatprep.subr.bf16.mxu1 %v9578_v1 }
 0x295   :  { %8849 = vmatmul.mubr.msk.f32.gmra.mrb[4].mxu1 %vm1580_vm4, %v11358_v53 }
 0x296   :  { %8851 = vmatprep.mubr.msk.f32.mxu1 %vm1580_vm4, %v11374_v46 }
 0x299   :  { %8852 = vmatmul.mubr.msk.f32.gmra.mrb[6].mxu1 %vm1580_vm4, %v11378_v42 }
 0x29a   :  { %8854 = vmatprep.mubr.msk.f32.mxu1 %vm1580_vm4, %v1531_v8  ;;  %v9594_v8 = vpack.c.bf16 %v7404_v14, %v7400_v39 }
 0x29d   :  { %8855 = vmatmul.mubr.msk.f32.gmra.mrb[8].mxu1 %vm1580_vm4, %v11639_v49 }
 0x29e   :  { %8857 = vmatprep.mubr.msk.f32.mxu1 %vm1580_vm4, %v11642_v16 }
 0x2a1   :  { %8858 = vmatmul.mubr.msk.f32.gmra.mrb[10].mxu1 %vm1580_vm4, %v11649_v23 }
 0x2a2   :  { %8860 = vmatprep.mubr.msk.f32.mxu1 %vm1580_vm4, %v1537_v4 }
 0x2a5   :  { %8861 = vmatmul.mubr.msk.f32.gmra.mrb[12].mxu1 %vm1580_vm4, %v1538_v9 }
 0x2a6   :  { %8863 = vmatprep.mubr.msk.f32.mxu1 %vm1580_vm4, %v1539_v31 }
 0x2a9   :  { %8864 = vmatmul.mubr.msk.f32.gmra.mrb[14].mxu1 %vm1580_vm4, %v1540_v38 }
 0x2aa   :  { %8874 = vmatprep.mubr.msk.f32.mxu1 %vm1580_vm4, %v11302_v40  ;;  %v1541_v40 = vmax.f32 %v11525_v45, 0.0 }
 0x2ad   :  { %8875 = vmatmul.mubr.msk.f32.vlgmr.msra.gmra.mrb[0].mxu1 %vm1580_vm4, %v11318_v27 }
 0x2ae   :  { %9581 = vmatpush3.bf16.msra.mxu1 %v9578_v1  ;;  %8877 = vmatprep.mubr.msk.f32.mxu1 %vm1580_vm4, %v11322_v11 }
 0x2af   :  { %9583 = vmatprep.subr.bf16.mxu1 %v9582_v0 }
 0x2b1   :  { %8878 = vmatmul.mubr.msk.f32.gmra.mrb[2].mxu1 %vm1580_vm4, %v11340_v36 }
 0x2b2   :  { %8880 = vmatprep.mubr.msk.f32.mxu1 %vm1580_vm4, %v11358_v53  ;;  %9585 = vmatpush3.bf16.msra.mxu1 %v9582_v0  ;;  %v7385_v53 = vld [vmem:[%s14048_s3 + $0x110] sm:$0xff] }
 0x2b3   :  { %9603 = vmatprep.subr.bf16.mxu1 %v9602_v13  ;;  %v9604_v28 = vpack.c.bf16 %v7389_v57, %v7385_v53 }
 0x2b5   :  { %8881 = vmatmul.mubr.msk.f32.gmra.mrb[4].mxu1 %vm1580_vm4, %v11374_v46 }
 0x2b6   :  { %8883 = vmatprep.mubr.msk.f32.mxu1 %vm1580_vm4, %v11378_v42 }
 0x2b9   :  { %8884 = vmatmul.mubr.msk.f32.gmra.mrb[6].mxu1 %vm1580_vm4, %v11396_v41 }
 0x2ba   :  { %8886 = vmatprep.mubr.msk.f32.mxu1 %vm1580_vm4, %v11639_v49  ;;  %v9612_v49 = vpack.c.bf16 %v7405_v30, %v7401_v48 }
 0x2bd   :  { %8887 = vmatmul.mubr.msk.f32.gmra.mrb[8].mxu1 %vm1580_vm4, %v11642_v16 }
 0x2be   :  { %8889 = vmatprep.mubr.msk.f32.mxu1 %vm1580_vm4, %v11649_v23 }
 0x2c1   :  { %8890 = vmatmul.mubr.msk.f32.gmra.mrb[10].mxu1 %vm1580_vm4, %v11696_v10 }
 0x2c2   :  { %8892 = vmatprep.mubr.msk.f32.mxu1 %vm1580_vm4, %v1538_v9 }
 0x2c5   :  { %8893 = vmatmul.mubr.msk.f32.gmra.mrb[12].mxu1 %vm1580_vm4, %v1539_v31 }
 0x2c6   :  { %8895 = vmatprep.mubr.msk.f32.mxu1 %vm1580_vm4, %v1540_v38 }
 0x2c9   :  { %8896 = vmatmul.mubr.msk.f32.gmra.mrb[14].mxu1 %vm1580_vm4, %v1541_v40 }
 0x2ca   :  { %8906 = vmatprep.mubr.msk.f32.mxu1 %vm1580_vm4, %v11318_v27  ;;  %v1542_v27 = vmax.f32 %v11520_v26, 0.0  ;;  %v7396_v26 = vld [vmem:[%s14048_s3 + $0x168] sm:$0xff] }
 0x2cd   :  { %8907 = vmatmul.mubr.msk.f32.vlgmr.msra.gmra.mrb[0].mxu1 %vm1580_vm4, %v11322_v11  ;;  %v7394_v11 = vld [vmem:[%s14048_s3 + $0x158] sm:$0xff] }
 0x2ce   :  { %8909 = vmatprep.mubr.msk.f32.mxu1 %vm1580_vm4, %v11340_v36  ;;  %9605 = vmatpush1.bf16.msra.mxu1 %v9604_v28  ;;  %v7398_v36 = vld [vmem:[%s14048_s3 + $0x178] sm:$0xff] }
 0x2d1   :  { %8910 = vmatmul.mubr.msk.f32.gmra.mrb[2].mxu1 %vm1580_vm4, %v11582_v15  ;;  %v9592_v15 = vpack.c.bf16 %v7395_v3, %v7391_v32 }
 0x2d2   :  { %8912 = vmatprep.mubr.msk.f32.mxu1 %vm1580_vm4, %v11374_v46  ;;  %v7392_v46 = vld [vmem:[%s14048_s3 + $0x148] sm:$0xff] }
 0x2d3   :  { %v9590_v52 = vpack.c.bf16 %v7396_v26, %v7392_v46 }
 0x2d5   :  { %8913 = vmatmul.mubr.msk.f32.gmra.mrb[4].mxu1 %vm1580_vm4, %v11378_v42  ;;  %v9606_v42 = vpack.c.bf16 %v7398_v36, %v7394_v11  ;;  %9591 = vmatprep.subr.bf16.mxu0 %v9590_v52 }
 0x2d6   :  { %8915 = vmatprep.mubr.msk.f32.mxu1 %vm1580_vm4, %v11396_v41  ;;  %v7393_v41 = vld [vmem:[%s14048_s3 + $0x150] sm:$0xff]  ;;  %9593 = vmatpush1.bf16.msra.mxu0 %v9592_v15 }
 0x2d7   :  { %v9608_v45 = vpack.c.bf16 %v7397_v62, %v7393_v41  ;;  %9607 = vmatprep.subr.bf16.mxu1 %v9606_v42  ;;  %9595 = vmatprep.subr.bf16.mxu0 %v9594_v8 }
 0x2d9   :  { %8916 = vmatmul.mubr.msk.f32.gmra.mrb[6].mxu1 %vm1580_vm4, %v11593_v54  ;;  %v7402_v54 = vld [vmem:[%s14048_s3 + $0x198] sm:$0xff] }
 0x2da   :  { %8918 = vmatprep.mubr.msk.f32.mxu1 %vm1580_vm4, %v11642_v16  ;;  %9609 = vmatpush1.bf16.msra.mxu1 %v9608_v45  ;;  %v9610_v60 = vpack.c.bf16 %v7406_v17, %v7402_v54  ;;  %v7399_v16 = vld [vmem:[%s14048_s3 + $0x180] sm:$0xff] }
 0x2dc   :  { %9611 = vmatprep.subr.bf16.mxu1 %v9610_v60 }
 0x2dd   :  { %8919 = vmatmul.mubr.msk.f32.gmra.mrb[8].mxu1 %vm1580_vm4, %v11649_v23  ;;  %v7403_v23 = vld [vmem:[%s14048_s3 + $0x1a0] sm:$0xff] }
 0x2de   :  { %8921 = vmatprep.mubr.msk.f32.mxu1 %vm1580_vm4, %v11696_v10  ;;  %v9596_v6 = vpack.c.bf16 %v7403_v23, %v7399_v16  ;;  %9613 = vmatpush1.bf16.msra.mxu1 %v9612_v49  ;;  %v7407_v10 = vld [vmem:[%s14048_s3 + $0x1c0] sm:$0xff] }
 0x2df   :  { %v9600_v18 = vpack.c.bf16 %v7411_v12, %v7407_v10  ;;  %9615 = vmatprep.subr.bf16.mxu1 %v9614_v44  ;;  %v3470_v10 = vld [vmem:[%s14045_s0] sm:$0xff]  ;;  %v3471_v12 = vld [vmem:[%s14045_s0 + $0x8] sm:$0xff]  ;;  %v3472_v44 = vld [vmem:[%s14045_s0 + $0x10] sm:$0xff] }
 0x2e0   :  { %9597 = vmatpush1.bf16.msra.mxu0 %v9596_v6 }
 0x2e1   :  { %8922 = vmatmul.mubr.msk.f32.gmra.mrb[10].mxu1 %vm1580_vm4, %v1536_v7  ;;  %9599 = vmatprep.subr.bf16.mxu0 %v9598_v37  ;;  %v14099_v7 = vsub.s32 1, %v14310_v29 }
 0x2e2   :  { %8924 = vmatprep.mubr.msk.f32.mxu1 %vm1580_vm4, %v1539_v31  ;;  %9617 = vmatpush1.bf16.msra.mxu1 %v9616_v56  ;;  %v3476_v56 = vld [vmem:[%s14045_s0 + $0x30] sm:$0xff] }
 0x2e3   :  { %9644 = vmatprep.subr.msk.bf16.mxu1 %vm10085_vm3, %v9642_v50  ;;  %v3109_v21 = vrot.slane %v11967_v20, %v14099_v7  ;;  %v4988_v7 = vld [vmem:[%s14047_s2 + $0x20] sm:$0xff] }
 0x2e4   :  { %9601 = vmatpush1.bf16.msra.mxu0 %v9600_v18  ;;  %v3473_v18 = vld [vmem:[%s14045_s0 + $0x18] sm:$0xff] }
 0x2e5   :  { %8925 = vmatmul.mubr.msk.f32.gmra.mrb[12].mxu1 %vm1580_vm4, %v1540_v38 }
 0x2e6   :  { %8927 = vmatprep.mubr.msk.f32.mxu1 %vm1580_vm4, %v1541_v40 }
 0x2e9   :  { %8928 = vmatmul.mubr.msk.f32.gmra.mrb[14].mxu1 %vm1580_vm4, %v1542_v27 }
 0x2ea   :  { %3335 = vmatprep.mubr.f32.mxu1 %v14100_v55 }
 0x3a0   :  { %v8908_v2 = vpop.f32.mrb[0].mxu1 }
 0x3a1   :  { %v3111_v61 = vadd.f32 %v8908_v2, %v3109_v21  ;;  %v3011_v58 = vpop.f32.mrb[1].mxu1  ;;  %v3482_v2 = vld [vmem:[%s14045_s0 + $0x60] sm:$0xff] }
 0x3a2   :  { %v3110_v1 = vadd.f32 %v3109_v21, %v3011_v58  ;;  %v3484_v58 = vld [vmem:[%s14045_s0 + $0x70] sm:$0xff] }
 0x3a4   :  { %v3126_v4 = vmax.f32 %v3110_v1, %v3111_v61  ;;  %v8911_v9 = vpop.f32.mrb[2].mxu1  ;;  %v3483_v61 = vld [vmem:[%s14045_s0 + $0x68] sm:$0xff]  ;;  %v3485_v1 = vld [vmem:[%s14045_s0 + $0x78] sm:$0xff] }
 0x3a5   :  { %v3113_v31 = vadd.f32 %v8911_v9, %v3109_v21  ;;  %v3021_v38 = vpop.f32.mrb[3].mxu1  ;;  %v3487_v9 = vld [vmem:[%s14045_s0 + $0x88] sm:$0xff] }
 0x3a6   :  { %v3112_v33 = vadd.f32 %v3109_v21, %v3021_v38  ;;  %v3489_v38 = vld [vmem:[%s14045_s0 + $0x98] sm:$0xff] }
 0x3a8   :  { %v3130_v59 = vmax.f32 %v3112_v33, %v3113_v31  ;;  %v8914_v0 = vpop.f32.mrb[4].mxu1  ;;  %v3488_v31 = vld [vmem:[%s14045_s0 + $0x90] sm:$0xff]  ;;  %v3490_v33 = vld [vmem:[%s14045_s0 + $0xa0] sm:$0xff] }
 0x3a9   :  { %v3115_v43 = vadd.f32 %v8914_v0, %v3109_v21  ;;  %v3031_v34 = vpop.f32.mrb[5].mxu1  ;;  %v3492_v0 = vld [vmem:[%s14045_s0 + $0xb0] sm:$0xff] }
 0x3aa   :  { %v3114_v13 = vadd.f32 %v3109_v21, %v3031_v34  ;;  %v3494_v34 = vld [vmem:[%s14045_s0 + $0xc0] sm:$0xff] }
 0x3ac   :  { %v3127_v40 = vmax.f32 %v3114_v13, %v3115_v43  ;;  %v8917_v53 = vpop.f32.mrb[6].mxu1  ;;  %v3493_v43 = vld [vmem:[%s14045_s0 + $0xb8] sm:$0xff]  ;;  %v3495_v13 = vld [vmem:[%s14045_s0 + $0xc8] sm:$0xff] }
 0x3ad   :  { %v3117_v57 = vadd.f32 %v8917_v53, %v3109_v21  ;;  %v3041_v28 = vpop.f32.mrb[7].mxu1  ;;  %v3497_v53 = vld [vmem:[%s14045_s0 + $0xd8] sm:$0xff] }
 0x3ae   :  { %v3128_v27 = vmax.f32 %v3126_v4, %v3127_v40  ;;  %v3116_v11 = vadd.f32 %v3109_v21, %v3041_v28  ;;  %v3486_v4 = vld [vmem:[%s14045_s0 + $0x80] sm:$0xff]  ;;  %v3496_v40 = vld [vmem:[%s14045_s0 + $0xd0] sm:$0xff]  ;;  %v3499_v28 = vld [vmem:[%s14045_s0 + $0xe8] sm:$0xff] }
 0x3b0   :  { %v3129_v36 = vmax.f32 %v3128_v27, 0.0  ;;  %v3131_v46 = vmax.f32 %v3116_v11, %v3117_v57  ;;  %v8920_v42 = vpop.f32.mrb[8].mxu1  ;;  %v3498_v57 = vld [vmem:[%s14045_s0 + $0xe0] sm:$0xff]  ;;  %v14102_v27 = vmov 0.0|0.0  }
 0x3b1   :  { %v3119_v41 = vadd.f32 %v8920_v42, %v3109_v21  ;;  %v3051_v62 = vpop.f32.mrb[9].mxu1  ;;  %9618 = vmatprep.subr.bf16.mxu0 %v14102_v27  ;;  %v7423_v11 = vld [vmem:[%s14049_s4 + $0x80] sm:$0xff] }
 0x3b2   :  { %v3132_v26 = vmax.f32 %v3130_v59, %v3131_v46  ;;  %v3118_v45 = vadd.f32 %v3109_v21, %v3051_v62  ;;  %7415 = vmatmul.mubr.msk.f32.vlgmr.msra.gmra.mrb[144].mxu0 %vm3175_vm5, %v3129_v36  ;;  %7419 = vmatmul.mubr.msk.f32.vlgmr.msra.gmra.mrb[16].mxu1 %vm3175_vm5, %v3129_v36  ;;  %v3491_v59 = vld [vmem:[%s14045_s0 + $0xa8] sm:$0xff]  ;;  %v3500_v46 = vld [vmem:[%s14045_s0 + $0xf0] sm:$0xff] }
 0x3b3   :  { %3257 = vmatprep.mubr.f32.mxu0 %v14100_v55  ;;  %3339 = vmatprep.mubr.f32.mxu1 %v14100_v55  ;;  %v7424_v36 = vld [vmem:[%s14049_s4 + $0x88] sm:$0xff]  ;;  %v7425_v62 = vld [vmem:[%s14049_s4 + $0x90] sm:$0xff] }
 0x3b4   :  { %v3133_v52 = vmax.f32 %v3132_v26, 0.0  ;;  %v3134_v32 = vmax.f32 %v3118_v45, %v3119_v41  ;;  %v8923_v3 = vpop.f32.mrb[10].mxu1  ;;  %9647 = vmatpush3.bf16.msk.msra.mxu1 %vm10085_vm3, %v9642_v50  ;;  %v3479_v50 = vld [vmem:[%s14045_s0 + $0x48] sm:$0xff]  ;;  %v9619_v42 = vpack.c.bf16 %v7424_v36, %v7423_v11  ;;  %v3501_v41 = vld [vmem:[%s14045_s0 + $0xf8] sm:$0xff]  ;;  %v3502_v45 = vld [vmem:[%s14045_s0 + $0x100] sm:$0xff] }
 0x3b5   :  { %v3121_v15 = vadd.f32 %v8923_v3, %v3109_v21  ;;  %v3061_v54 = vpop.f32.mrb[11].mxu1  ;;  %v7426_v26 = vld [vmem:[%s14049_s4 + $0x98] sm:$0xff]  ;;  %v7427_v3 = vld [vmem:[%s14049_s4 + $0xa0] sm:$0xff]  ;;  %v3535_v11 = vld [vmem:[%s14045_s0 + $0x208] sm:$0xff] }
 0x3b6   :  { %v3120_v17 = vadd.f32 %v3109_v21, %v3061_v54  ;;  %7416 = vmatmul.mubr.msk.f32.gmra.mrb[146].mxu0 %vm3175_vm5, %v3133_v52  ;;  %7420 = vmatmul.mubr.msk.f32.gmra.mrb[18].mxu1 %vm3175_vm5, %v3133_v52  ;;  %v9622_v52 = vpack.c.bf16 %v7426_v26, %v7425_v62  ;;  %v3504_v54 = vld [vmem:[%s14045_s0 + $0x110] sm:$0xff]  ;;  %v3541_v26 = vld [vmem:[%s14045_s0 + $0x238] sm:$0xff] }
 0x3b7   :  { %3262 = vmatprep.mubr.f32.mxu0 %v14100_v55  ;;  %3343 = vmatprep.mubr.f32.mxu1 %v14100_v55  ;;  %v3536_v36 = vld [vmem:[%s14045_s0 + $0x210] sm:$0xff] }
 0x3b8   :  { %v3138_v39 = vmax.f32 %v3120_v17, %v3121_v15  ;;  %v8926_v60 = vpop.f32.mrb[12].mxu1  ;;  %9620 = vmatpush3.bf16.msra.mxu0 %v9619_v42  ;;  %v7428_v15 = vld [vmem:[%s14049_s4 + $0xa8] sm:$0xff]  ;;  %v3538_v42 = vld [vmem:[%s14045_s0 + $0x220] sm:$0xff]  ;;  %v3540_v62 = vld [vmem:[%s14045_s0 + $0x230] sm:$0xff] }
 0x3b9   :  { %v3123_v14 = vadd.f32 %v8926_v60, %v3109_v21  ;;  %v3071_v48 = vpop.f32.mrb[13].mxu1  ;;  %9621 = vmatprep.subr.bf16.mxu0 %v14102_v27  ;;  %v9625_v17 = vpack.c.bf16 %v7428_v15, %v7427_v3  ;;  %v7429_v60 = vld [vmem:[%s14049_s4 + $0xb0] sm:$0xff]  ;;  %v3545_v3 = vld [vmem:[%s14045_s0 + $0x258] sm:$0xff]  ;;  %v3546_v15 = vld [vmem:[%s14045_s0 + $0x260] sm:$0xff] }
 0x3ba   :  { %v3122_v30 = vadd.f32 %v3109_v21, %v3071_v48  ;;  %v3506_v48 = vld [vmem:[%s14045_s0 + $0x120] sm:$0xff] }
 0x3bc   :  { %v3135_v8 = vmax.f32 %v3122_v30, %v3123_v14  ;;  %v8929_v49 = vpop.f32.mrb[14].mxu1  ;;  %9623 = vmatpush3.bf16.msra.mxu0 %v9622_v52  ;;  %v7430_v14 = vld [vmem:[%s14049_s4 + $0xb8] sm:$0xff]  ;;  %v3543_v52 = vld [vmem:[%s14045_s0 + $0x248] sm:$0xff] }
 0x3bd   :  { %v3125_v16 = vadd.f32 %v8929_v49, %v3109_v21  ;;  %v3081_v23 = vpop.f32.mrb[15].mxu1  ;;  %9624 = vmatprep.subr.bf16.mxu0 %v14102_v27  ;;  %v9628_v30 = vpack.c.bf16 %v7430_v14, %v7429_v60  ;;  %v7431_v49 = vld [vmem:[%s14049_s4 + $0xc0] sm:$0xff]  ;;  %v3551_v14 = vld [vmem:[%s14045_s0 + $0x288] sm:$0xff] }
 0x3be   :  { %v3136_v6 = vmax.f32 %v3134_v32, %v3135_v8  ;;  %v3124_v5 = vadd.f32 %v3109_v21, %v3081_v23  ;;  %v3481_v21 = vld [vmem:[%s14045_s0 + $0x58] sm:$0xff]  ;;  %v3503_v32 = vld [vmem:[%s14045_s0 + $0x108] sm:$0xff]  ;;  %v3508_v23 = vld [vmem:[%s14045_s0 + $0x130] sm:$0xff] }
 0x3bf   :  { %v3507_v8 = vld [vmem:[%s14045_s0 + $0x128] sm:$0xff]  ;;  %v3550_v60 = vld [vmem:[%s14045_s0 + $0x280] sm:$0xff] }
 0x3c0   :  { %v3137_v24 = vmax.f32 %v3136_v6, 0.0  ;;  %v3139_v47 = vmax.f32 %v3124_v5, %v3125_v16  ;;  %9626 = vmatpush3.bf16.msra.mxu0 %v9625_v17  ;;  %v7432_v16 = vld [vmem:[%s14049_s4 + $0xc8] sm:$0xff]  ;;  %v3509_v5 = vld [vmem:[%s14045_s0 + $0x138] sm:$0xff]  ;;  %v3548_v17 = vld [vmem:[%s14045_s0 + $0x270] sm:$0xff] }
 0x3c1   :  { %9627 = vmatprep.subr.bf16.mxu0 %v14102_v27  ;;  %v9631_v6 = vpack.c.bf16 %v7432_v16, %v7431_v49  ;;  %v3555_v49 = vld [vmem:[%s14045_s0 + $0x2a8] sm:$0xff]  ;;  %v3556_v16 = vld [vmem:[%s14045_s0 + $0x2b0] sm:$0xff] }
 0x3c2   :  { %v3140_v37 = vmax.f32 %v3138_v39, %v3139_v47  ;;  %7417 = vmatmul.mubr.msk.f32.gmra.mrb[148].mxu0 %vm3175_vm5, %v3137_v24  ;;  %7421 = vmatmul.mubr.msk.f32.gmra.mrb[20].mxu1 %vm3175_vm5, %v3137_v24  ;;  %v3505_v39 = vld [vmem:[%s14045_s0 + $0x118] sm:$0xff]  ;;  %v7433_v24 = vld [vmem:[%s14049_s4 + $0xd0] sm:$0xff] }
 0x3c3   :  { %3266 = vmatprep.mubr.f32.mxu0 %v14100_v55  ;;  %3348 = vmatprep.mubr.f32.mxu1 %v14100_v55  ;;  %v7434_v47 = vld [vmem:[%s14049_s4 + $0xd8] sm:$0xff] }
 0x3c4   :  { %v3141_v63 = vmax.f32 %v3140_v37, 0.0  ;;  %9629 = vmatpush3.bf16.msra.mxu0 %v9628_v30  ;;  %v3510_v37 = vld [vmem:[%s14045_s0 + $0x140] sm:$0xff]  ;;  %v3553_v30 = vld [vmem:[%s14045_s0 + $0x298] sm:$0xff] }
 0x3c5   :  { %9630 = vmatprep.subr.bf16.mxu0 %v14102_v27 }
 0x3c6   :  { %7418 = vmatmul.mubr.msk.f32.gmra.mrb[150].mxu0 %vm3175_vm5, %v3141_v63  ;;  %7422 = vmatmul.mubr.msk.f32.gmra.mrb[22].mxu1 %vm3175_vm5, %v3141_v63  ;;  %v9634_v63 = vpack.c.bf16 %v7434_v47, %v7433_v24  ;;  %v3560_v24 = vld [vmem:[%s14045_s0 + $0x2d0] sm:$0xff]  ;;  %v3561_v47 = vld [vmem:[%s14045_s0 + $0x2d8] sm:$0xff] }
 0x3c7   :  { %8969 = vmatprep.mubr.msk.f32.mxu1 %vm177_vm1, %v3470_v10  ;;  %v3511_v10 = vld [vmem:[%s14045_s0 + $0x148] sm:$0xff]  ;;  %8962 = vmatprep.mubr.msk.f32.mxu0 %vm10043_vm6, %v14100_v55 }
 0x3c8   :  { %9632 = vmatpush3.bf16.msra.mxu0 %v9631_v6  ;;  %v3558_v6 = vld [vmem:[%s14045_s0 + $0x2c0] sm:$0xff] }
 0x3c9   :  { %9633 = vmatprep.subr.bf16.mxu0 %v14102_v27 }
 0x3ca   :  { %8970 = vmatmul.mubr.msk.f32.vlgmr.msra.gmra.mrb[24].mxu1 %vm177_vm1, %v3471_v12  ;;  %v7435_v12 = vld [vmem:[%s14049_s4 + $0xe0] sm:$0xff] }
 0x3cb   :  { %8972 = vmatprep.mubr.msk.f32.mxu1 %vm177_vm1, %v3472_v44  ;;  %v7436_v44 = vld [vmem:[%s14049_s4 + $0xe8] sm:$0xff] }
 0x3cc   :  { %9635 = vmatpush3.bf16.msra.mxu0 %v9634_v63  ;;  %v3563_v63 = vld [vmem:[%s14045_s0 + $0x2e8] sm:$0xff] }
 0x3cd   :  { %9636 = vmatprep.subr.bf16.mxu0 %v14102_v27 }
 0x3ce   :  { %8973 = vmatmul.mubr.msk.f32.gmra.mrb[26].mxu1 %vm177_vm1, %v3473_v18  ;;  %v3512_v18 = vld [vmem:[%s14045_s0 + $0x150] sm:$0xff] }
 0x3cf   :  { %8975 = vmatprep.mubr.msk.f32.mxu1 %vm177_vm1, %v3474_v19  ;;  %v9637_v19 = vpack.c.bf16 %v7436_v44, %v7435_v12  ;;  %v3565_v12 = vld [vmem:[%s14045_s0 + $0x2f8] sm:$0xff]  ;;  %v3566_v44 = vld [vmem:[%s14045_s0 + $0x300] sm:$0xff] }
 0x3d1   :  { %9638 = vmatpush3.bf16.msra.mxu0 %v9637_v19 }
 0x3d2   :  { %8976 = vmatmul.mubr.msk.f32.gmra.mrb[28].mxu1 %vm177_vm1, %v3475_v35  ;;  %v3513_v35 = vld [vmem:[%s14045_s0 + $0x158] sm:$0xff]  ;;  %9639 = vmatprep.subr.bf16.mxu0 %v14102_v27 }
 0x3d3   :  { %8978 = vmatprep.mubr.msk.f32.mxu1 %vm177_vm1, %v3476_v56  ;;  %v7437_v56 = vld [vmem:[%s14049_s4 + $0xf0] sm:$0xff] }
 0x3d6   :  { %8979 = vmatmul.mubr.msk.f32.gmra.mrb[30].mxu1 %vm177_vm1, %v3477_v22  ;;  %v7438_v22 = vld [vmem:[%s14049_s4 + $0xf8] sm:$0xff] }
 0x3d7   :  { %8981 = vmatprep.mubr.msk.f32.mxu1 %vm177_vm1, %v3478_v51  ;;  %v3514_v51 = vld [vmem:[%s14045_s0 + $0x160] sm:$0xff] }
 0x3da   :  { %8982 = vmatmul.mubr.msk.f32.gmra.mrb[32].mxu1 %vm177_vm1, %v3479_v50  ;;  %v9640_v50 = vpack.c.bf16 %v7438_v22, %v7437_v56  ;;  %v3567_v22 = vld [vmem:[%s14045_s0 + $0x308] sm:$0xff] }
 0x3db   :  { %8984 = vmatprep.mubr.msk.f32.mxu1 %vm177_vm1, %v3480_v25  ;;  %v3515_v25 = vld [vmem:[%s14045_s0 + $0x168] sm:$0xff] }
 0x3dc   :  { %9641 = vmatpush3.bf16.msra.mxu0 %v9640_v50 }
 0x3de   :  { %8985 = vmatmul.mubr.msk.f32.gmra.mrb[34].mxu1 %vm177_vm1, %v3481_v21  ;;  %v3516_v21 = vld [vmem:[%s14045_s0 + $0x170] sm:$0xff] }
 0x3df   :  { %8987 = vmatprep.mubr.msk.f32.mxu1 %vm177_vm1, %v3482_v2  ;;  %v3517_v2 = vld [vmem:[%s14045_s0 + $0x178] sm:$0xff] }
 0x3e2   :  { %8988 = vmatmul.mubr.msk.f32.gmra.mrb[36].mxu1 %vm177_vm1, %v3483_v61  ;;  %v3518_v61 = vld [vmem:[%s14045_s0 + $0x180] sm:$0xff] }
 0x3e3   :  { %8990 = vmatprep.mubr.msk.f32.mxu1 %vm177_vm1, %v3484_v58  ;;  %v3519_v58 = vld [vmem:[%s14045_s0 + $0x188] sm:$0xff] }
 0x3e6   :  { %8991 = vmatmul.mubr.msk.f32.gmra.mrb[38].mxu1 %vm177_vm1, %v3485_v1  ;;  %v3520_v1 = vld [vmem:[%s14045_s0 + $0x190] sm:$0xff] }
 0x3e7   :  { %8993 = vmatprep.mubr.msk.f32.mxu1 %vm177_vm1, %v3486_v4  ;;  %v3521_v4 = vld [vmem:[%s14045_s0 + $0x198] sm:$0xff] }
 0x3ea   :  { %8994 = vmatmul.mubr.msk.f32.gmra.mrb[40].mxu1 %vm177_vm1, %v3487_v9  ;;  %v3522_v9 = vld [vmem:[%s14045_s0 + $0x1a0] sm:$0xff] }
 0x3eb   :  { %8996 = vmatprep.mubr.msk.f32.mxu1 %vm177_vm1, %v3488_v31  ;;  %v3523_v31 = vld [vmem:[%s14045_s0 + $0x1a8] sm:$0xff] }
 0x3ee   :  { %8997 = vmatmul.mubr.msk.f32.gmra.mrb[42].mxu1 %vm177_vm1, %v3489_v38  ;;  %v3524_v38 = vld [vmem:[%s14045_s0 + $0x1b0] sm:$0xff] }
 0x3ef   :  { %8999 = vmatprep.mubr.msk.f32.mxu1 %vm177_vm1, %v3490_v33  ;;  %v3525_v33 = vld [vmem:[%s14045_s0 + $0x1b8] sm:$0xff] }
 0x3f2   :  { %9000 = vmatmul.mubr.msk.f32.gmra.mrb[44].mxu1 %vm177_vm1, %v3491_v59  ;;  %v3526_v59 = vld [vmem:[%s14045_s0 + $0x1c0] sm:$0xff] }
 0x3f3   :  { %9002 = vmatprep.mubr.msk.f32.mxu1 %vm177_vm1, %v3492_v0  ;;  %v3527_v0 = vld [vmem:[%s14045_s0 + $0x1c8] sm:$0xff] }
 0x3f6   :  { %9003 = vmatmul.mubr.msk.f32.gmra.mrb[46].mxu1 %vm177_vm1, %v3493_v43  ;;  %v3528_v43 = vld [vmem:[%s14045_s0 + $0x1d0] sm:$0xff] }
 0x3f7   :  { %9005 = vmatprep.mubr.msk.f32.mxu1 %vm177_vm1, %v3494_v34  ;;  %v3529_v34 = vld [vmem:[%s14045_s0 + $0x1d8] sm:$0xff] }
 0x3fa   :  { %9006 = vmatmul.mubr.msk.f32.gmra.mrb[48].mxu1 %vm177_vm1, %v3495_v13  ;;  %v3530_v13 = vld [vmem:[%s14045_s0 + $0x1e0] sm:$0xff] }
 0x3fb   :  { %9008 = vmatprep.mubr.msk.f32.mxu1 %vm177_vm1, %v3496_v40  ;;  %v3531_v40 = vld [vmem:[%s14045_s0 + $0x1e8] sm:$0xff] }
 0x3fe   :  { %9009 = vmatmul.mubr.msk.f32.gmra.mrb[50].mxu1 %vm177_vm1, %v3497_v53  ;;  %v3532_v53 = vld [vmem:[%s14045_s0 + $0x1f0] sm:$0xff] }
 0x3ff   :  { %9011 = vmatprep.mubr.msk.f32.mxu1 %vm177_vm1, %v3498_v57  ;;  %v3533_v57 = vld [vmem:[%s14045_s0 + $0x1f8] sm:$0xff] }
 0x402   :  { %9012 = vmatmul.mubr.msk.f32.gmra.mrb[52].mxu1 %vm177_vm1, %v3499_v28  ;;  %v3534_v28 = vld [vmem:[%s14045_s0 + $0x200] sm:$0xff] }
 0x403   :  { %9014 = vmatprep.mubr.msk.f32.mxu1 %vm177_vm1, %v3500_v46  ;;  %v3537_v46 = vld [vmem:[%s14045_s0 + $0x218] sm:$0xff] }
 0x406   :  { %9015 = vmatmul.mubr.msk.f32.gmra.mrb[54].mxu1 %vm177_vm1, %v3501_v41  ;;  %v3539_v41 = vld [vmem:[%s14045_s0 + $0x228] sm:$0xff] }
 0x407   :  { %9017 = vmatprep.mubr.msk.f32.mxu1 %vm177_vm1, %v3502_v45  ;;  %v3542_v45 = vld [vmem:[%s14045_s0 + $0x240] sm:$0xff] }
 0x40a   :  { %9018 = vmatmul.mubr.msk.f32.gmra.mrb[56].mxu1 %vm177_vm1, %v3503_v32  ;;  %v3544_v32 = vld [vmem:[%s14045_s0 + $0x250] sm:$0xff] }
 0x40b   :  { %9020 = vmatprep.mubr.msk.f32.mxu1 %vm177_vm1, %v3504_v54  ;;  %v3547_v54 = vld [vmem:[%s14045_s0 + $0x268] sm:$0xff] }
 0x40e   :  { %9021 = vmatmul.mubr.msk.f32.gmra.mrb[58].mxu1 %vm177_vm1, %v3505_v39  ;;  %v3549_v39 = vld [vmem:[%s14045_s0 + $0x278] sm:$0xff] }
 0x40f   :  { %9023 = vmatprep.mubr.msk.f32.mxu1 %vm177_vm1, %v3506_v48  ;;  %v3552_v48 = vld [vmem:[%s14045_s0 + $0x290] sm:$0xff] }
 0x412   :  { %9024 = vmatmul.mubr.msk.f32.gmra.mrb[60].mxu1 %vm177_vm1, %v3507_v8  ;;  %v3554_v8 = vld [vmem:[%s14045_s0 + $0x2a0] sm:$0xff] }
 0x413   :  { %9026 = vmatprep.mubr.msk.f32.mxu1 %vm177_vm1, %v3508_v23  ;;  %v3557_v23 = vld [vmem:[%s14045_s0 + $0x2b8] sm:$0xff] }
 0x416   :  { %9027 = vmatmul.mubr.msk.f32.gmra.mrb[62].mxu1 %vm177_vm1, %v3509_v5  ;;  %v3559_v5 = vld [vmem:[%s14045_s0 + $0x2c8] sm:$0xff] }
 0x417   :  { %9029 = vmatprep.mubr.msk.f32.mxu1 %vm177_vm1, %v3510_v37  ;;  %v3562_v37 = vld [vmem:[%s14045_s0 + $0x2e0] sm:$0xff] }
 0x41a   :  { %9030 = vmatmul.mubr.msk.f32.gmra.mrb[64].mxu1 %vm177_vm1, %v3511_v10  ;;  %v3564_v10 = vld [vmem:[%s14045_s0 + $0x2f0] sm:$0xff] }
 0x41b   :  { %9032 = vmatprep.mubr.msk.f32.mxu1 %vm177_vm1, %v3512_v18 }
 0x41e   :  { %9033 = vmatmul.mubr.msk.f32.gmra.mrb[66].mxu1 %vm177_vm1, %v3513_v35 }
 0x41f   :  { %9035 = vmatprep.mubr.msk.f32.mxu1 %vm177_vm1, %v3514_v51  ;;  %v3568_v51 = vld [vmem:[%s14045_s0 + $0x310] sm:$0xff] }
 0x422   :  { %9036 = vmatmul.mubr.msk.f32.gmra.mrb[68].mxu1 %vm177_vm1, %v3515_v25 }
 0x423   :  { %9038 = vmatprep.mubr.msk.f32.mxu1 %vm177_vm1, %v3516_v21 }
 0x426   :  { %9039 = vmatmul.mubr.msk.f32.gmra.mrb[70].mxu1 %vm177_vm1, %v3517_v2 }
 0x427   :  { %9041 = vmatprep.mubr.msk.f32.mxu1 %vm177_vm1, %v3518_v61 }
 0x42a   :  { %9042 = vmatmul.mubr.msk.f32.gmra.mrb[72].mxu1 %vm177_vm1, %v3519_v58  ;;  %v3569_v58 = vld [vmem:[%s14045_s0 + $0x318] sm:$0xff] }
 0x42b   :  { %9044 = vmatprep.mubr.msk.f32.mxu1 %vm177_vm1, %v3520_v1  ;;  %v3570_v1 = vld [vmem:[%s14045_s0 + $0x320] sm:$0xff] }
 0x42e   :  { %9045 = vmatmul.mubr.msk.f32.gmra.mrb[74].mxu1 %vm177_vm1, %v3521_v4  ;;  %v3571_v4 = vld [vmem:[%s14045_s0 + $0x328] sm:$0xff] }
 0x42f   :  { %9047 = vmatprep.mubr.msk.f32.mxu1 %vm177_vm1, %v3522_v9  ;;  %v3572_v9 = vld [vmem:[%s14045_s0 + $0x330] sm:$0xff] }
 0x432   :  { %9048 = vmatmul.mubr.msk.f32.gmra.mrb[76].mxu1 %vm177_vm1, %v3523_v31  ;;  %v3573_v31 = vld [vmem:[%s14045_s0 + $0x338] sm:$0xff] }
 0x433   :  { %9050 = vmatprep.mubr.msk.f32.mxu1 %vm177_vm1, %v3524_v38  ;;  %v3574_v38 = vld [vmem:[%s14045_s0 + $0x340] sm:$0xff] }
 0x436   :  { %9051 = vmatmul.mubr.msk.f32.gmra.mrb[78].mxu1 %vm177_vm1, %v3525_v33 }
 0x437   :  { %9053 = vmatprep.mubr.msk.f32.mxu1 %vm177_vm1, %v3526_v59 }
 0x43a   :  { %9054 = vmatmul.mubr.msk.f32.gmra.mrb[80].mxu1 %vm177_vm1, %v3527_v0  ;;  %v14098_v0 = vsub.s32 2, %v14310_v29 }
 0x43b   :  { %9056 = vmatprep.mubr.msk.f32.mxu1 %vm177_vm1, %v3528_v43 }
 0x43e   :  { %9057 = vmatmul.mubr.msk.f32.gmra.mrb[82].mxu1 %vm177_vm1, %v3529_v34 }
 0x43f   :  { %9059 = vmatprep.mubr.msk.f32.mxu1 %vm177_vm1, %v3530_v13 }
 0x442   :  { %9060 = vmatmul.mubr.msk.f32.gmra.mrb[84].mxu1 %vm177_vm1, %v3531_v40  ;;  %v3575_v40 = vld [vmem:[%s14045_s0 + $0x348] sm:$0xff] }
 0x443   :  { %9062 = vmatprep.mubr.msk.f32.mxu1 %vm177_vm1, %v3532_v53  ;;  %v3576_v53 = vld [vmem:[%s14045_s0 + $0x350] sm:$0xff] }
 0x446   :  { %9063 = vmatmul.mubr.msk.f32.gmra.mrb[86].mxu1 %vm177_vm1, %v3533_v57 }
 0x447   :  { %9065 = vmatprep.mubr.msk.f32.mxu1 %vm177_vm1, %v3534_v28 }
 0x44a   :  { %9066 = vmatmul.mubr.msk.f32.gmra.mrb[88].mxu1 %vm177_vm1, %v3535_v11  ;;  %v3360_v11 = vrot.slane %v11967_v20, %v14098_v0 }
 0x44b   :  { %9068 = vmatprep.mubr.msk.f32.mxu1 %vm177_vm1, %v3536_v36 }
 0x44e   :  { %9069 = vmatmul.mubr.msk.f32.gmra.mrb[90].mxu1 %vm177_vm1, %v3537_v46 }
 0x44f   :  { %9071 = vmatprep.mubr.msk.f32.mxu1 %vm177_vm1, %v3538_v42 }
 0x452   :  { %9072 = vmatmul.mubr.msk.f32.gmra.mrb[92].mxu1 %vm177_vm1, %v3539_v41  ;;  %v3577_v41 = vld [vmem:[%s14045_s0 + $0x358] sm:$0xff] }
 0x453   :  { %9074 = vmatprep.mubr.msk.f32.mxu1 %vm177_vm1, %v3540_v62  ;;  %v3578_v62 = vld [vmem:[%s14045_s0 + $0x360] sm:$0xff] }
 0x456   :  { %9075 = vmatmul.mubr.msk.f32.gmra.mrb[94].mxu1 %vm177_vm1, %v3541_v26 }
 0x457   :  { %9077 = vmatprep.mubr.msk.f32.mxu1 %vm177_vm1, %v3542_v45 }
 0x45a   :  { %9078 = vmatmul.mubr.msk.f32.gmra.mrb[96].mxu1 %vm177_vm1, %v3543_v52 }
 0x45b   :  { %9080 = vmatprep.mubr.msk.f32.mxu1 %vm177_vm1, %v3544_v32  ;;  %v3579_v32 = vld [vmem:[%s14045_s0 + $0x368] sm:$0xff] }
 0x45e   :  { %9081 = vmatmul.mubr.msk.f32.gmra.mrb[98].mxu1 %vm177_vm1, %v3545_v3  ;;  %v3580_v3 = vld [vmem:[%s14045_s0 + $0x370] sm:$0xff] }
 0x45f   :  { %9083 = vmatprep.mubr.msk.f32.mxu1 %vm177_vm1, %v3546_v15 }
 0x462   :  { %9084 = vmatmul.mubr.msk.f32.gmra.mrb[100].mxu1 %vm177_vm1, %v3547_v54 }
 0x463   :  { %9086 = vmatprep.mubr.msk.f32.mxu1 %vm177_vm1, %v3548_v17  ;;  %v3581_v17 = vld [vmem:[%s14045_s0 + $0x378] sm:$0xff] }
 0x466   :  { %9087 = vmatmul.mubr.msk.f32.gmra.mrb[102].mxu1 %vm177_vm1, %v3549_v39  ;;  %v3582_v39 = vld [vmem:[%s14045_s0 + $0x380] sm:$0xff] }
 0x467   :  { %9089 = vmatprep.mubr.msk.f32.mxu1 %vm177_vm1, %v3550_v60 }
 0x46a   :  { %9090 = vmatmul.mubr.msk.f32.gmra.mrb[104].mxu1 %vm177_vm1, %v3551_v14 }
 0x46b   :  { %9092 = vmatprep.mubr.msk.f32.mxu1 %vm177_vm1, %v3552_v48  ;;  %v3583_v48 = vld [vmem:[%s14045_s0 + $0x388] sm:$0xff] }
 0x46e   :  { %9093 = vmatmul.mubr.msk.f32.gmra.mrb[106].mxu1 %vm177_vm1, %v3553_v30  ;;  %v3584_v30 = vld [vmem:[%s14045_s0 + $0x390] sm:$0xff] }
 0x46f   :  { %9095 = vmatprep.mubr.msk.f32.mxu1 %vm177_vm1, %v3554_v8 }
 0x472   :  { %9096 = vmatmul.mubr.msk.f32.gmra.mrb[108].mxu1 %vm177_vm1, %v3555_v49 }
 0x473   :  { %9098 = vmatprep.mubr.msk.f32.mxu1 %vm177_vm1, %v3556_v16  ;;  %v3585_v16 = vld [vmem:[%s14045_s0 + $0x398] sm:$0xff] }
 0x476   :  { %9099 = vmatmul.mubr.msk.f32.gmra.mrb[110].mxu1 %vm177_vm1, %v3557_v23  ;;  %v3586_v23 = vld [vmem:[%s14045_s0 + $0x3a0] sm:$0xff] }
 0x477   :  { %9101 = vmatprep.mubr.msk.f32.mxu1 %vm177_vm1, %v3558_v6 }
 0x47a   :  { %9102 = vmatmul.mubr.msk.f32.gmra.mrb[112].mxu1 %vm177_vm1, %v3559_v5 }
 0x47b   :  { %9104 = vmatprep.mubr.msk.f32.mxu1 %vm177_vm1, %v3560_v24  ;;  %v3587_v24 = vld [vmem:[%s14045_s0 + $0x3a8] sm:$0xff] }
 0x47e   :  { %9105 = vmatmul.mubr.msk.f32.gmra.mrb[114].mxu1 %vm177_vm1, %v3561_v47  ;;  %v3588_v47 = vld [vmem:[%s14045_s0 + $0x3b0] sm:$0xff] }
 0x47f   :  { %9107 = vmatprep.mubr.msk.f32.mxu1 %vm177_vm1, %v3562_v37 }
 0x482   :  { %9108 = vmatmul.mubr.msk.f32.gmra.mrb[116].mxu1 %vm177_vm1, %v3563_v63 }
 0x483   :  { %9110 = vmatprep.mubr.msk.f32.mxu1 %vm177_vm1, %v3564_v10  ;;  %v3589_v10 = vld [vmem:[%s14045_s0 + $0x3b8] sm:$0xff] }
 0x485   :  { %v3254_v18 = vpop.f32.mrb[144].mxu0  ;;  %v3337_v19 = vpop.f32.mrb[16].mxu1 }
 0x486   :  { %v3256_v35 = vpop.f32.mrb[145].mxu0  ;;  %v3338_v56 = vpop.f32.mrb[17].mxu1  ;;  %9111 = vmatmul.mubr.msk.f32.gmra.mrb[118].mxu1 %vm177_vm1, %v3565_v12  ;;  %v3590_v12 = vld [vmem:[%s14045_s0 + $0x3c0] sm:$0xff]  ;;  %v3591_v19 = vld [vmem:[%s14045_s0 + $0x3c8] sm:$0xff] }
 0x487   :  { %9113 = vmatprep.mubr.msk.f32.mxu1 %vm177_vm1, %v3566_v44  ;;  %v3592_v35 = vld [vmem:[%s14045_s0 + $0x3d0] sm:$0xff] }
 0x489   :  { %v3259_v50 = vpop.f32.mrb[146].mxu0  ;;  %v3341_v25 = vpop.f32.mrb[18].mxu1 }
 0x48a   :  { %v3260_v21 = vpop.f32.mrb[147].mxu0  ;;  %v3342_v2 = vpop.f32.mrb[19].mxu1  ;;  %9114 = vmatmul.mubr.msk.f32.gmra.mrb[120].mxu1 %vm177_vm1, %v3567_v22  ;;  %v3594_v50 = vld [vmem:[%s14045_s0 + $0x3e0] sm:$0xff] }
 0x48b   :  { %v3354_v61 = vadd.f32 %v3260_v21, %v3254_v18  ;;  %9116 = vmatprep.mubr.msk.f32.mxu1 %vm177_vm1, %v3568_v51  ;;  %v3593_v51 = vld [vmem:[%s14045_s0 + $0x3d8] sm:$0xff]  ;;  %v3595_v2 = vld [vmem:[%s14045_s0 + $0x3e8] sm:$0xff] }
 0x48e   :  { %9117 = vmatmul.mubr.msk.f32.gmra.mrb[122].mxu1 %vm177_vm1, %v3569_v58 }
 0x48f   :  { %9119 = vmatprep.mubr.msk.f32.mxu1 %vm177_vm1, %v3570_v1 }
 0x492   :  { %9120 = vmatmul.mubr.msk.f32.gmra.mrb[124].mxu1 %vm177_vm1, %v3571_v4  ;;  %v3597_v4 = vld [vmem:[%s14045_s0 + $0x3f8] sm:$0xff] }
 0x493   :  { %9122 = vmatprep.mubr.msk.f32.mxu1 %vm177_vm1, %v3572_v9  ;;  %v3598_v9 = vld [vmem:[%s14045_s0 + $0x400] sm:$0xff] }
 0x495   :  { %v3264_v33 = vpop.f32.mrb[148].mxu0  ;;  %v3345_v59 = vpop.f32.mrb[20].mxu1 }
 0x496   :  { %v3355_v43 = vadd.f32 %v3354_v61, %v3345_v59  ;;  %v3265_v34 = vpop.f32.mrb[149].mxu0  ;;  %v3347_v13 = vpop.f32.mrb[21].mxu1  ;;  %9123 = vmatmul.mubr.msk.f32.gmra.mrb[126].mxu1 %vm177_vm1, %v3573_v31  ;;  %v3596_v61 = vld [vmem:[%s14045_s0 + $0x3f0] sm:$0xff]  ;;  %v3599_v33 = vld [vmem:[%s14045_s0 + $0x408] sm:$0xff] }
 0x497   :  { %9125 = vmatprep.mubr.msk.f32.mxu1 %vm177_vm1, %v3574_v38  ;;  %v3600_v59 = vld [vmem:[%s14045_s0 + $0x410] sm:$0xff]  ;;  %v3601_v13 = vld [vmem:[%s14045_s0 + $0x418] sm:$0xff] }
 0x499   :  { %v3268_v57 = vpop.f32.mrb[150].mxu0  ;;  %v3350_v28 = vpop.f32.mrb[22].mxu1 }
 0x49a   :  { %v3269_v36 = vpop.f32.mrb[151].mxu0  ;;  %v3351_v46 = vpop.f32.mrb[23].mxu1  ;;  %9126 = vmatmul.mubr.msk.f32.gmra.mrb[128].mxu1 %vm177_vm1, %v3575_v40  ;;  %v3602_v40 = vld [vmem:[%s14045_s0 + $0x420] sm:$0xff]  ;;  %v3603_v28 = vld [vmem:[%s14045_s0 + $0x428] sm:$0xff] }
 0x49b   :  { %v3356_v42 = vadd.f32 %v3355_v43, %v3351_v46  ;;  %9128 = vmatprep.mubr.msk.f32.mxu1 %vm177_vm1, %v3576_v53 }
 0x49d   :  { %v3361_v26 = vadd.f32 %v3360_v11, %v3356_v42  ;;  %v12484_v45 = vpop.f32.mrb[24].mxu1  ;;  %v3604_v11 = vld [vmem:[%s14045_s0 + $0x430] sm:$0xff]  ;;  %v3605_v42 = vld [vmem:[%s14045_s0 + $0x438] sm:$0xff] }
 0x49e   :  { %v12486_v52 = vpop.f32.mrb[25].mxu1  ;;  %9129 = vmatmul.mubr.msk.f32.gmra.mrb[130].mxu1 %vm177_vm1, %v3577_v41  ;;  %v3606_v41 = vld [vmem:[%s14045_s0 + $0x440] sm:$0xff] }
 0x49f   :  { %v3362_v20 = vmax.f32 %v3361_v26, 0.0  ;;  %9131 = vmatprep.mubr.msk.f32.mxu1 %vm177_vm1, %v3578_v62 }
 0x4a1   :  { %8963 = vmatmul.mubr.f32.vlgmr.msra.gmra.mrb[152].mxu0 %v3362_v20  ;;  %v12496_v15 = vpop.f32.mrb[26].mxu1  ;;  %v3607_v20 = vld [vmem:[%s14045_s0 + $0x448] sm:$0xff] }
 0x4a2   :  { %v12498_v54 = vpop.f32.mrb[27].mxu1  ;;  %9132 = vmatmul.mubr.msk.f32.gmra.mrb[132].mxu1 %vm177_vm1, %v3579_v32  ;;  %v3608_v32 = vld [vmem:[%s14045_s0 + $0x450] sm:$0xff] }
 0x4a3   :  { %9134 = vmatprep.mubr.msk.f32.mxu1 %vm177_vm1, %v3580_v3 }
 0x4a5   :  { %v12508_v60 = vpop.f32.mrb[28].mxu1 }
 0x4a6   :  { %v12510_v14 = vpop.f32.mrb[29].mxu1  ;;  %9135 = vmatmul.mubr.msk.f32.gmra.mrb[134].mxu1 %vm177_vm1, %v3581_v17 }
 0x4a7   :  { %9137 = vmatprep.mubr.msk.f32.mxu1 %vm177_vm1, %v3582_v39  ;;  %v3609_v39 = vld [vmem:[%s14045_s0 + $0x458] sm:$0xff] }
 0x4a9   :  { %v12520_v8 = vpop.f32.mrb[30].mxu1 }
 0x4aa   :  { %v12522_v49 = vpop.f32.mrb[31].mxu1  ;;  %9138 = vmatmul.mubr.msk.f32.gmra.mrb[136].mxu1 %vm177_vm1, %v3583_v48  ;;  %v3610_v48 = vld [vmem:[%s14045_s0 + $0x460] sm:$0xff] }
 0x4ab   :  { %9140 = vmatprep.mubr.msk.f32.mxu1 %vm177_vm1, %v3584_v30 }
 0x4ad   :  { %v12532_v6 = vpop.f32.mrb[32].mxu1 }
 0x4ae   :  { %v12534_v5 = vpop.f32.mrb[33].mxu1  ;;  %9141 = vmatmul.mubr.msk.f32.gmra.mrb[138].mxu1 %vm177_vm1, %v3585_v16 }
 0x4af   :  { %9143 = vmatprep.mubr.msk.f32.mxu1 %vm177_vm1, %v3586_v23  ;;  %v3469_v23 = vld [vmem:[%s14046_s5] sm:$0x3f] }
 0x4b1   :  { %v12544_v37 = vpop.f32.mrb[34].mxu1 }
 0x4b2   :  { %v12546_v63 = vpop.f32.mrb[35].mxu1  ;;  %9144 = vmatmul.mubr.msk.f32.gmra.mrb[140].mxu1 %vm177_vm1, %v3587_v24  ;;  %v3611_v24 = vld [vmem:[%s14045_s0 + $0x468] sm:$0xff] }
 0x4b3   :  { %9146 = vmatprep.mubr.msk.f32.mxu1 %vm177_vm1, %v3588_v47  ;;  %v3612_v47 = vld [vmem:[%s14045_s0 + $0x470] sm:$0xff] }
 0x4b5   :  { %v12556_v44 = vpop.f32.mrb[36].mxu1 }
 0x4b6   :  { %v12558_v18 = vpop.f32.mrb[37].mxu1  ;;  %9147 = vmatmul.mubr.msk.f32.gmra.mrb[142].mxu1 %vm177_vm1, %v3589_v10 }
 0x4b7   :  { %9149 = vmatprep.mubr.msk.f32.mxu1 %vm177_vm1, %v3590_v12  ;;  %v14311_v12 = vsub.s32 0, %v14310_v29 }
 0x4b9   :  { %v12568_v56 = vpop.f32.mrb[38].mxu1 }
 0x4ba   :  { %v12570_v22 = vpop.f32.mrb[39].mxu1  ;;  %9150 = vmatmul.mubr.msk.f32.gmra.mrb[144].mxu1 %vm177_vm1, %v3591_v19  ;;  %v12695_v19 = vrot.slane %v3469_v23, %v14311_v12 }
 0x4bb   :  { %9152 = vmatprep.mubr.msk.f32.mxu1 %vm177_vm1, %v3592_v35 }
 0x4bd   :  { %v12580_v25 = vpop.f32.mrb[40].mxu1 }
 0x4be   :  { %v12582_v21 = vpop.f32.mrb[41].mxu1  ;;  %9153 = vmatmul.mubr.msk.f32.gmra.mrb[146].mxu1 %vm177_vm1, %v3593_v51  ;;  %v3613_v51 = vld [vmem:[%s14045_s0 + $0x478] sm:$0xff] }
 0x4bf   :  { %9155 = vmatprep.mubr.msk.f32.mxu1 %vm177_vm1, %v3594_v50 }
 0x4c1   :  { %v12592_v58 = vpop.f32.mrb[42].mxu1 }
 0x4c2   :  { %v12594_v1 = vpop.f32.mrb[43].mxu1  ;;  %9156 = vmatmul.mubr.msk.f32.gmra.mrb[148].mxu1 %vm177_vm1, %v3595_v2  ;;  %v12706_v2 = vadd.f32 %v12484_v45, %v12695_v19 }
 0x4c3   :  { %9158 = vmatprep.mubr.msk.f32.mxu1 %vm177_vm1, %v3596_v61 }
 0x4c5   :  { %v12604_v31 = vpop.f32.mrb[44].mxu1 }
 0x4c6   :  { %v12606_v38 = vpop.f32.mrb[45].mxu1  ;;  %9159 = vmatmul.mubr.msk.f32.gmra.mrb[150].mxu1 %vm177_vm1, %v3597_v4 }
 0x4c7   :  { %9161 = vmatprep.mubr.msk.f32.mxu1 %vm177_vm1, %v3598_v9  ;;  %v12714_v9 = vadd.f32 %v12486_v52, %v12695_v19 }
 0x4c9   :  { %v12616_v43 = vpop.f32.mrb[46].mxu1 }
 0x4ca   :  { %v12618_v34 = vpop.f32.mrb[47].mxu1  ;;  %9162 = vmatmul.mubr.msk.f32.gmra.mrb[152].mxu1 %vm177_vm1, %v3599_v33 }
 0x4cb   :  { %9164 = vmatprep.mubr.msk.f32.mxu1 %vm177_vm1, %v3600_v59 }
 0x4cd   :  { %v12628_v53 = vpop.f32.mrb[48].mxu1 }
 0x4ce   :  { %v12630_v57 = vpop.f32.mrb[49].mxu1  ;;  %9165 = vmatmul.mubr.msk.f32.gmra.mrb[154].mxu1 %vm177_vm1, %v3601_v13 }
 0x4cf   :  { %9167 = vmatprep.mubr.msk.f32.mxu1 %vm177_vm1, %v3602_v40  ;;  %v12726_v40 = vadd.f32 %v12496_v15, %v12695_v19  ;;  %v12744_v15 = vadd.f32 %v12508_v60, %v12695_v19  ;;  %v12762_v60 = vadd.f32 %v12520_v8, %v12695_v19  ;;  %v12780_v8 = vadd.f32 %v12532_v6, %v12695_v19  ;;  %v4989_v6 = vld [vmem:[%s14047_s2 + $0x28] sm:$0xff] }
 0x4d1   :  { %v12640_v36 = vpop.f32.mrb[50].mxu1 }
 0x4d2   :  { %v12642_v46 = vpop.f32.mrb[51].mxu1  ;;  %9168 = vmatmul.mubr.msk.f32.gmra.mrb[156].mxu1 %vm177_vm1, %v3603_v28 }
 0x4d3   :  { %9170 = vmatprep.mubr.msk.f32.mxu1 %vm177_vm1, %v3604_v11  ;;  %v12733_v11 = vadd.f32 %v12498_v54, %v12695_v19  ;;  %v12751_v54 = vadd.f32 %v12510_v14, %v12695_v19  ;;  %v12769_v14 = vadd.f32 %v12522_v49, %v12695_v19  ;;  %v12787_v49 = vadd.f32 %v12534_v5, %v12695_v19 }
 0x4d4   :  { %v9648_v5 = vpack.c.bf16 %v4989_v6, %v4988_v7  ;;  %v4990_v7 = vld [vmem:[%s14047_s2 + $0x30] sm:$0xff] }
 0x4d5   :  { %v12652_v62 = vpop.f32.mrb[52].mxu1 }
 0x4d6   :  { %v12654_v26 = vpop.f32.mrb[53].mxu1  ;;  %9171 = vmatmul.mubr.msk.f32.gmra.mrb[158].mxu1 %vm177_vm1, %v3605_v42  ;;  %9649 = vmatprep.subr.bf16.mxu0 %v9648_v5 }
 0x4d7   :  { %9173 = vmatprep.mubr.msk.f32.mxu1 %vm177_vm1, %v3606_v41  ;;  %9651 = vmatpush3.bf16.msra.mxu0 %v9648_v5 }
 0x4d9   :  { %v12664_v3 = vpop.f32.mrb[54].mxu1 }
 0x4da   :  { %v12666_v17 = vpop.f32.mrb[55].mxu1  ;;  %9174 = vmatmul.mubr.msk.f32.gmra.mrb[160].mxu1 %vm177_vm1, %v3607_v20 }
 0x4db   :  { %9176 = vmatprep.mubr.msk.f32.mxu1 %vm177_vm1, %v3608_v32 }
 0x4dd   :  { %v12676_v30 = vpop.f32.mrb[56].mxu1 }
 0x4de   :  { %v12678_v16 = vpop.f32.mrb[57].mxu1  ;;  %9177 = vmatmul.mubr.msk.f32.gmra.mrb[162].mxu1 %vm177_vm1, %v3609_v39 }
 0x4df   :  { %9179 = vmatprep.mubr.msk.f32.mxu1 %vm177_vm1, %v3610_v48 }
 0x4e1   :  { %v12691_v10 = vpop.f32.mrb[58].mxu1 }
 0x4e2   :  { %v12697_v35 = vpop.f32.mrb[59].mxu1  ;;  %9180 = vmatmul.mubr.msk.f32.gmra.mrb[164].mxu1 %vm177_vm1, %v3611_v24 }
 0x4e3   :  { %9182 = vmatprep.mubr.msk.f32.mxu1 %vm177_vm1, %v3612_v47  ;;  %v12835_v47 = vadd.f32 %v12558_v18, %v12695_v19 }
 0x4e5   :  { %v9025_v50 = vpop.f32.mrb[60].mxu1 }
 0x4e6   :  { %v12709_v61 = vadd.f32 %v9025_v50, %v12695_v19  ;;  %v4301_v4 = vpop.f32.mrb[61].mxu1  ;;  %9183 = vmatmul.mubr.msk.f32.gmra.mrb[166].mxu1 %vm177_vm1, %v3613_v51 }
 0x4e7   :  { %v12717_v33 = vadd.f32 %v4301_v4, %v12695_v19  ;;  %6689 = vmatprep.mubr.f32.mxu1 %v14100_v55 }
 0x4e9   :  { %v9028_v13 = vpop.f32.mrb[62].mxu1 }
 0x4ea   :  { %v12729_v28 = vadd.f32 %v9028_v13, %v12695_v19  ;;  %v4311_v52 = vpop.f32.mrb[63].mxu1 }
 0x4eb   :  { %v12736_v42 = vadd.f32 %v4311_v52, %v12695_v19  ;;  %v12811_v52 = vadd.f32 %v12546_v63, %v12695_v19 }
 0x4ed   :  { %v9031_v32 = vpop.f32.mrb[64].mxu1 }
 0x4ee   :  { %v12747_v39 = vadd.f32 %v9031_v32, %v12695_v19  ;;  %v4321_v48 = vpop.f32.mrb[65].mxu1 }
 0x4ef   :  { %v12754_v23 = vadd.f32 %v4321_v48, %v12695_v19 }
 0x4f1   :  { %v9034_v12 = vpop.f32.mrb[66].mxu1 }
 0x4f2   :  { %v12765_v51 = vadd.f32 %v9034_v12, %v12695_v19  ;;  %v4331_v50 = vpop.f32.mrb[67].mxu1 }
 0x4f3   :  { %v12772_v4 = vadd.f32 %v4331_v50, %v12695_v19 }
 0x4f5   :  { %v9037_v32 = vpop.f32.mrb[68].mxu1 }
 0x4f6   :  { %v12783_v48 = vadd.f32 %v9037_v32, %v12695_v19  ;;  %v4341_v12 = vpop.f32.mrb[69].mxu1 }
 0x4f7   :  { %v12790_v50 = vadd.f32 %v4341_v12, %v12695_v19  ;;  %v12804_v12 = vadd.f32 %v12544_v37, %v12695_v19 }
 0x4f9   :  { %v9040_v55 = vpop.f32.mrb[70].mxu1 }
 0x4fa   :  { %v12807_v27 = vadd.f32 %v9040_v55, %v12695_v19  ;;  %v4351_v0 = vpop.f32.mrb[71].mxu1  ;;  %v4991_v55 = vld [vmem:[%s14047_s2 + $0x38] sm:$0xff] }
 0x4fb   :  { %v12814_v13 = vadd.f32 %v4351_v0, %v12695_v19  ;;  %v9652_v6 = vpack.c.bf16 %v4991_v55, %v4990_v7  ;;  %v12828_v0 = vadd.f32 %v12556_v44, %v12695_v19  ;;  %v12846_v55 = vadd.f32 %v12568_v56, %v12695_v19 }
 0x4fc   :  { %v12864_v56 = vadd.f32 %v12580_v25, %v12695_v19  ;;  %v12882_v25 = vadd.f32 %v12592_v58, %v12695_v19  ;;  %v12900_v58 = vadd.f32 %v12604_v31, %v12695_v19  ;;  %v12918_v31 = vadd.f32 %v12616_v43, %v12695_v19  ;;  %v4984_v43 = vld [vmem:[%s14047_s2] sm:$0xff] }
 0x4fd   :  { %v9043_v63 = vpop.f32.mrb[72].mxu1  ;;  %9653 = vmatprep.subr.bf16.mxu0 %v9652_v6  ;;  %14312 = vst [vmem:[#allocation4_spill] sm:$0xff] %v12846_v55  ;;  %v12951_v44 = vadd.f32 %v12630_v57, %v12695_v19 }
 0x4fe   :  { %v12831_v32 = vadd.f32 %v9043_v63, %v12695_v19  ;;  %v4361_v5 = vpop.f32.mrb[73].mxu1  ;;  %9655 = vmatpush3.bf16.msra.mxu0 %v9652_v6  ;;  %14316 = vst [vmem:[#allocation7_spill] sm:$0xff] %v12864_v56  ;;  %14320 = vst [vmem:[#allocation48_spill] sm:$0xff] %v12882_v25 }
 0x4ff   :  { %v12838_v24 = vadd.f32 %v4361_v5, %v12695_v19  ;;  %v12853_v5 = vadd.f32 %v12570_v22, %v12695_v19  ;;  %v12871_v22 = vadd.f32 %v12582_v21, %v12695_v19  ;;  %v12889_v21 = vadd.f32 %v12594_v1, %v12695_v19  ;;  %14324 = vst [vmem:[#allocation12_spill] sm:$0xff] %v12900_v58 }
 0x500   :  { %v12907_v1 = vadd.f32 %v12606_v38, %v12695_v19  ;;  %14328 = vst [vmem:[#allocation15_spill] sm:$0xff] %v12918_v31  ;;  %v12925_v38 = vadd.f32 %v12618_v34, %v12695_v19  ;;  %v12942_v34 = vadd.f32 %v12628_v53, %v12695_v19  ;;  %14334 = vst [vmem:[#allocation19_spill] sm:$0xff] %v12951_v44 }
 0x501   :  { %v9046_v7 = vpop.f32.mrb[74].mxu1  ;;  %14314 = vst [vmem:[#allocation46_spill] sm:$0xff] %v12853_v5  ;;  %14318 = vst [vmem:[#allocation8_spill] sm:$0xff] %v12871_v22 }
 0x502   :  { %v12849_v63 = vadd.f32 %v9046_v7, %v12695_v19  ;;  %v4371_v18 = vpop.f32.mrb[75].mxu1  ;;  %14322 = vst [vmem:[#allocation11_spill] sm:$0xff] %v12889_v21  ;;  %14326 = vst [vmem:[#allocation50_spill] sm:$0xff] %v12907_v1 }
 0x503   :  { %v12856_v20 = vadd.f32 %v4371_v18, %v12695_v19  ;;  %14330 = vst [vmem:[#allocation16_spill] sm:$0xff] %v12925_v38  ;;  %14332 = vst [vmem:[#allocation52_spill] sm:$0xff] %v12942_v34 }
 0x504   :  { %14313 = vst [vmem:[#allocation5_spill] sm:$0xff] %v12849_v63 }
 0x505   :  { %14315 = vst [vmem:[#allocation6_spill] sm:$0xff] %v12856_v20  ;;  %v9049_v37 = vpop.f32.mrb[76].mxu1 }
 0x506   :  { %v12867_v7 = vadd.f32 %v9049_v37, %v12695_v19  ;;  %v4381_v41 = vpop.f32.mrb[77].mxu1 }
 0x507   :  { %v12874_v18 = vadd.f32 %v4381_v41, %v12695_v19 }
 0x508   :  { %14317 = vst [vmem:[#allocation47_spill] sm:$0xff] %v12867_v7 }
 0x509   :  { %14319 = vst [vmem:[#allocation9_spill] sm:$0xff] %v12874_v18  ;;  %v9052_v45 = vpop.f32.mrb[78].mxu1 }
 0x50a   :  { %v12885_v37 = vadd.f32 %v9052_v45, %v12695_v19  ;;  %v4391_v59 = vpop.f32.mrb[79].mxu1 }
 0x50b   :  { %v12892_v41 = vadd.f32 %v4391_v59, %v12695_v19 }
 0x50c   :  { %14321 = vst [vmem:[#allocation10_spill] sm:$0xff] %v12885_v37 }
 0x50d   :  { %14323 = vst [vmem:[#allocation49_spill] sm:$0xff] %v12892_v41  ;;  %v9055_v18 = vpop.f32.mrb[80].mxu1 }
 0x50e   :  { %v12903_v45 = vadd.f32 %v9055_v18, %v12695_v19  ;;  %v4401_v22 = vpop.f32.mrb[81].mxu1 }
 0x50f   :  { %v12910_v59 = vadd.f32 %v4401_v22, %v12695_v19 }
 0x510   :  { %14325 = vst [vmem:[#allocation13_spill] sm:$0xff] %v12903_v45 }
 0x511   :  { %14327 = vst [vmem:[#allocation14_spill] sm:$0xff] %v12910_v59  ;;  %v9058_v41 = vpop.f32.mrb[82].mxu1 }
 0x512   :  { %v12921_v18 = vadd.f32 %v9058_v41, %v12695_v19  ;;  %v4411_v21 = vpop.f32.mrb[83].mxu1  ;;  %v4985_v41 = vld [vmem:[%s14047_s2 + $0x8] sm:$0xff] }
 0x513   :  { %v12928_v22 = vadd.f32 %v4411_v21, %v12695_v19 }
 0x514   :  { %14329 = vst [vmem:[#allocation51_spill] sm:$0xff] %v12921_v18  ;;  %v12947_v18 = vpack.c.bf16 %v4985_v41, %v4984_v43  ;;  %v12963_v43 = vadd.f32 %v12640_v36, %v12695_v19  ;;  %v12981_v36 = vadd.f32 %v12652_v62, %v12695_v19  ;;  %v12999_v62 = vadd.f32 %v12664_v3, %v12695_v19 }
 0x515   :  { %14331 = vst [vmem:[#allocation17_spill] sm:$0xff] %v12928_v22  ;;  %v9061_v59 = vpop.f32.mrb[84].mxu1  ;;  %v13017_v3 = vadd.f32 %v12676_v30, %v12695_v19  ;;  %v13035_v30 = vadd.f32 %v12691_v10, %v12695_v19 }
 0x516   :  { %v12945_v21 = vadd.f32 %v9061_v59, %v12695_v19  ;;  %v4421_v6 = vpop.f32.mrb[85].mxu1  ;;  %9657 = vmatprep.subr.bf16.mxu0 %v12947_v18  ;;  %14336 = vst [vmem:[#allocation20_spill] sm:$0xff] %v12963_v43  ;;  %14340 = vst [vmem:[#allocation23_spill] sm:$0xff] %v12981_v36 }
 0x517   :  { %v12954_v22 = vadd.f32 %v4421_v6, %v12695_v19  ;;  %v12970_v6 = vadd.f32 %v12642_v46, %v12695_v19  ;;  %v12988_v46 = vadd.f32 %v12654_v26, %v12695_v19  ;;  %14344 = vst [vmem:[#allocation56_spill] sm:$0xff] %v12999_v62  ;;  %v13006_v26 = vadd.f32 %v12666_v17, %v12695_v19 }
 0x518   :  { %14333 = vst [vmem:[#allocation18_spill] sm:$0xff] %v12945_v21  ;;  %14348 = vst [vmem:[#allocation28_spill] sm:$0xff] %v13017_v3  ;;  %v13024_v17 = vadd.f32 %v12678_v16, %v12695_v19  ;;  %v13042_v16 = vadd.f32 %v12697_v35, %v12695_v19 }
 0x519   :  { %14335 = vst [vmem:[#allocation53_spill] sm:$0xff] %v12954_v22  ;;  %v9064_v59 = vpop.f32.mrb[86].mxu1  ;;  %14338 = vst [vmem:[#allocation54_spill] sm:$0xff] %v12970_v6 }
 0x51a   :  { %v12966_v41 = vadd.f32 %v9064_v59, %v12695_v19  ;;  %v4431_v57 = vpop.f32.mrb[87].mxu1  ;;  %14342 = vst [vmem:[#allocation24_spill] sm:$0xff] %v12988_v46  ;;  %14346 = vst [vmem:[#allocation27_spill] sm:$0xff] %v13006_v26 }
 0x51b   :  { %v12973_v38 = vadd.f32 %v4431_v57, %v12695_v19  ;;  %14350 = vst [vmem:[#allocation58_spill] sm:$0xff] %v13024_v17  ;;  %14352 = vst [vmem:[#allocation31_spill] sm:$0xff] %v13035_v30 }
 0x51c   :  { %14337 = vst [vmem:[#allocation21_spill] sm:$0xff] %v12966_v41  ;;  %14354 = vst [vmem:[#allocation32_spill] sm:$0xff] %v13042_v16 }
 0x51d   :  { %14339 = vst [vmem:[#allocation22_spill] sm:$0xff] %v12973_v38  ;;  %v9067_v22 = vpop.f32.mrb[88].mxu1 }
 0x51e   :  { %v12984_v59 = vadd.f32 %v9067_v22, %v12695_v19  ;;  %v4441_v44 = vpop.f32.mrb[89].mxu1 }
 0x51f   :  { %v12991_v57 = vadd.f32 %v4441_v44, %v12695_v19 }
 0x520   :  { %14341 = vst [vmem:[#allocation55_spill] sm:$0xff] %v12984_v59 }
 0x521   :  { %14343 = vst [vmem:[#allocation25_spill] sm:$0xff] %v12991_v57  ;;  %v9070_v38 = vpop.f32.mrb[90].mxu1 }
 0x522   :  { %v13002_v22 = vadd.f32 %v9070_v38, %v12695_v19  ;;  %v4451_v6 = vpop.f32.mrb[91].mxu1 }
 0x523   :  { %v13009_v44 = vadd.f32 %v4451_v6, %v12695_v19 }
 0x524   :  { %14345 = vst [vmem:[#allocation26_spill] sm:$0xff] %v13002_v22 }
 0x525   :  { %14347 = vst [vmem:[#allocation57_spill] sm:$0xff] %v13009_v44  ;;  %v9073_v57 = vpop.f32.mrb[92].mxu1 }
 0x526   :  { %v13020_v38 = vadd.f32 %v9073_v57, %v12695_v19  ;;  %v4461_v46 = vpop.f32.mrb[93].mxu1 }
 0x527   :  { %v13027_v6 = vadd.f32 %v4461_v46, %v12695_v19 }
 0x528   :  { %14349 = vst [vmem:[#allocation29_spill] sm:$0xff] %v13020_v38 }
 0x529   :  { %14351 = vst [vmem:[#allocation30_spill] sm:$0xff] %v13027_v6  ;;  %v9076_v44 = vpop.f32.mrb[94].mxu1 }
 0x52a   :  { %v13038_v57 = vadd.f32 %v9076_v44, %v12695_v19  ;;  %v4471_v26 = vpop.f32.mrb[95].mxu1 }
 0x52b   :  { %v13045_v46 = vadd.f32 %v4471_v26, %v12695_v19 }
 0x52c   :  { %14353 = vst [vmem:[#allocation59_spill] sm:$0xff] %v13038_v57 }
 0x52d   :  { %14355 = vst [vmem:[#allocation33_spill] sm:$0xff] %v13045_v46  ;;  %v9079_v6 = vpop.f32.mrb[96].mxu1 }
 0x52e   :  { %v4481_v10 = vpop.f32.mrb[97].mxu1 }
 0x531   :  { %v9082_v17 = vpop.f32.mrb[98].mxu1 }
 0x532   :  { %v4491_v38 = vpop.f32.mrb[99].mxu1 }
 0x535   :  { %v13051_v44 = vpop.f32.mrb[100].mxu1 }
 0x536   :  { %v13053_v3 = vpop.f32.mrb[101].mxu1 }
 0x539   :  { %v13055_v22 = vpop.f32.mrb[102].mxu1 }
 0x53a   :  { %v13057_v35 = vpop.f32.mrb[103].mxu1 }
 0x53d   :  { %v13059_v26 = vpop.f32.mrb[104].mxu1 }
 0x53e   :  { %v13061_v62 = vpop.f32.mrb[105].mxu1 }
 0x541   :  { %v13063_v21 = vpop.f32.mrb[106].mxu1 }
 0x542   :  { %v13065_v57 = vpop.f32.mrb[107].mxu1 }
 0x545   :  { %v13067_v53 = vpop.f32.mrb[108].mxu1 }
 0x546   :  { %v13069_v46 = vpop.f32.mrb[109].mxu1 }
 0x549   :  { %v13071_v16 = vpop.f32.mrb[110].mxu1 }
 0x54a   :  { %v13073_v30 = vpop.f32.mrb[111].mxu1 }
 0x54d   :  { %v13075_v59 = vpop.f32.mrb[112].mxu1 }
 0x54e   :  { %14356 = vst [vmem:[#allocation60_spill] sm:$0xff] %v13075_v59  ;;  %v13077_v36 = vpop.f32.mrb[113].mxu1 }
 0x54f   :  { %14357 = vst [vmem:[#allocation34_spill] sm:$0xff] %v13077_v36  ;;  %v4482_v36 = vadd.f32 %v4481_v10, %v12695_v19  ;;  %v4492_v10 = vadd.f32 %v4491_v38, %v12695_v19  ;;  %v4502_v38 = vadd.f32 %v13053_v3, %v12695_v19  ;;  %v14380_v3 = vmax.f32 %v12744_v15, %v12747_v39 }
 0x551   :  { %v13079_v41 = vpop.f32.mrb[114].mxu1 }
 0x552   :  { %14358 = vst [vmem:[#allocation35_spill] sm:$0xff] %v13079_v41  ;;  %v13081_v43 = vpop.f32.mrb[115].mxu1 }
 0x553   :  { %14359 = vst [vmem:[#allocation61_spill] sm:$0xff] %v13081_v43 }
 0x555   :  { %v13083_v34 = vpop.f32.mrb[116].mxu1 }
 0x556   :  { %14360 = vst [vmem:[#allocation36_spill] sm:$0xff] %v13083_v34  ;;  %v13085_v31 = vpop.f32.mrb[117].mxu1 }
 0x557   :  { %14361 = vst [vmem:[#allocation37_spill] sm:$0xff] %v13085_v31 }
 0x559   :  { %v13087_v1 = vpop.f32.mrb[118].mxu1 }
 0x55a   :  { %14362 = vst [vmem:[#allocation62_spill] sm:$0xff] %v13087_v1  ;;  %v13089_v45 = vpop.f32.mrb[119].mxu1 }
 0x55b   :  { %14363 = vst [vmem:[#allocation38_spill] sm:$0xff] %v13089_v45  ;;  %v14147_v45 = vsub.s32 3, %v14310_v29 }
 0x55d   :  { %v13091_v58 = vpop.f32.mrb[120].mxu1 }
 0x55e   :  { %14364 = vst [vmem:[#allocation39_spill] sm:$0xff] %v13091_v58  ;;  %v13093_v37 = vpop.f32.mrb[121].mxu1 }
 0x55f   :  { %14365 = vst [vmem:[#allocation63_spill] sm:$0xff] %v13093_v37 }
 0x561   :  { %v13095_v25 = vpop.f32.mrb[122].mxu1 }
 0x562   :  { %14366 = vst [vmem:[#allocation40_spill] sm:$0xff] %v13095_v25  ;;  %v13097_v7 = vpop.f32.mrb[123].mxu1 }
 0x563   :  { %14367 = vst [vmem:[#allocation41_spill] sm:$0xff] %v13097_v7  ;;  %v10037_v7 = vld [vmem:[%s14046_s5 + $0x8] sm:$0x3f] }
 0x565   :  { %v13099_v56 = vpop.f32.mrb[124].mxu1 }
 0x566   :  { %14368 = vst [vmem:[#allocation42_spill] sm:$0xff] %v13099_v56  ;;  %v13101_v41 = vpop.f32.mrb[125].mxu1  ;;  %v3383_v56 = vrot.slane %v10037_v7, %v14147_v45 }
 0x567   :  { %14369 = vst [vmem:[#allocation43_spill] sm:$0xff] %v13101_v41  ;;  %v3457_v41 = vsub.s32 4, %v14310_v29 }
 0x569   :  { %v13103_v43 = vpop.f32.mrb[126].mxu1 }
 0x56a   :  { %14370 = vst [vmem:[#allocation44_spill] sm:$0xff] %v13103_v43  ;;  %v13105_v34 = vpop.f32.mrb[127].mxu1 }
 0x56b   :  { %14371 = vst [vmem:[#allocation45_spill] sm:$0xff] %v13105_v34 }
 0x56d   :  { %v13107_v31 = vpop.f32.mrb[128].mxu1 }
 0x56e   :  { %14372 = vst [vmem:[#allocation2_spill] sm:$0xff] %v13107_v31  ;;  %v13110_v1 = vpop.f32.mrb[129].mxu1 }
 0x56f   :  { %14373 = vst [vmem:[#allocation3_spill] sm:$0xff] %v13110_v1  ;;  %v3458_v1 = vrot.slane %v10037_v7, %v3457_v41  ;;  %v14376_v7 = vmax.f32 %v12706_v2, %v12709_v61 }
 0x571   :  { %v13112_v58 = vpop.f32.mrb[130].mxu1 }
 0x572   :  { %14374 = vst [vmem:[#allocation64_spill] sm:$0xff] %v13112_v58  ;;  %v13120_v43 = vpop.f32.mrb[131].mxu1  ;;  %v4487_v58 = vadd.f32 %v9079_v6, %v12695_v19 }
 0x573   :  { %14375 = vst [vmem:[#allocation65_spill] sm:$0xff] %v13120_v43 }
 0x574   :  { %v3450_v34 = vpop.f32.mrb[152].mxu0 }
 0x575   :  { %v3451_v25 = vadd.f32 %v3450_v34, %v3383_v56  ;;  %v8964_v31 = vpop.f32.mrb[153].mxu0  ;;  %v9133_v37 = vpop.f32.mrb[132].mxu1 }
 0x576   :  { %v4667_v20 = vadd.f32 %v9133_v37, %v12695_v19  ;;  %v4661_v5 = vpop.f32.mrb[133].mxu1  ;;  %v4497_v31 = vadd.f32 %v9082_v17, %v12695_v19 }
 0x577   :  { %v3454_v63 = vmax.f32 %v3451_v25, 0.0  ;;  %v4662_v45 = vadd.f32 %v4661_v5, %v12695_v19  ;;  %v14377_v5 = vmax.f32 %v12714_v9, %v12717_v33 }
 0x578   :  { %v4877_v55 = vmax.f32 %v4487_v58, %v4667_v20 }
 0x579   :  { %v4876_v43 = vmax.f32 %v4482_v36, %v4662_v45  ;;  %v9136_v59 = vpop.f32.mrb[134].mxu1  ;;  %v3459_v56 = vmul.f32 %v3458_v1, %v3454_v63  ;;  %v14378_v1 = vmax.f32 %v12726_v40, %v12729_v28  ;;  %v14379_v40 = vmax.f32 %v12733_v11, %v12736_v42 }
 0x57a   :  { %v13132_v34 = vmax.f32 %v14376_v7, %v4877_v55  ;;  %v4677_v37 = vadd.f32 %v9136_v59, %v12695_v19  ;;  %v4671_v6 = vpop.f32.mrb[135].mxu1  ;;  %v4507_v55 = vadd.f32 %v13051_v44, %v12695_v19  ;;  %v4987_v59 = vld [vmem:[%s14047_s2 + $0x18] sm:$0xff] }
 0x57b   :  { %v13139_v20 = vmax.f32 %v14377_v5, %v4876_v43  ;;  %v4672_v25 = vadd.f32 %v4671_v6, %v12695_v19  ;;  %v3461_v63 = vsel %vm3460_vm7, %v3459_v56, 0.0  ;;  %v4986_v43 = vld [vmem:[%s14047_s2 + $0x10] sm:$0xff]  ;;  %v4517_v6 = vadd.f32 %v13055_v22, %v12695_v19 }
 0x57c   :  { %v4949_v58 = vmax.f32 %v13132_v34, 0.0  ;;  %v4879_v45 = vmax.f32 %v4497_v31, %v4677_v37  ;;  %3462 = vadd.xlane.f32.xlu0 %v3461_v63  ;;  %v9660_v37 = vpack.c.bf16 %v4987_v59, %v4986_v43  ;;  %v4993_v63 = vld [vmem:[%s14047_s2 + $0x48] sm:$0xff]  ;;  %v4512_v22 = vadd.f32 %v13057_v35, %v12695_v19 }
 0x57d   :  { %v4878_v2 = vmax.f32 %v4492_v10, %v4672_v25  ;;  %v9139_v61 = vpop.f32.mrb[136].mxu1  ;;  %v4992_v25 = vld [vmem:[%s14047_s2 + $0x40] sm:$0xff]  ;;  %v14383_v43 = vmax.f32 %v12769_v14, %v12772_v4  ;;  %v14384_v14 = vmax.f32 %v12780_v8, %v12783_v48 }
 0x57e   :  { %v4915_v36 = vmax.f32 %v14378_v1, %v4879_v45  ;;  %v4687_v9 = vadd.f32 %v9139_v61, %v12695_v19  ;;  %v4681_v33 = vpop.f32.mrb[137].mxu1  ;;  %9193 = vmatprep.mubr.msk.f32.mxu0 %vm1580_vm4, %v4949_v58  ;;  %v14381_v45 = vmax.f32 %v12751_v54, %v12754_v23  ;;  %v13197_v1 = vpack.c.bf16 %v4993_v63, %v4992_v25 }
 0x57f   :  { %v4914_v28 = vmax.f32 %v14379_v40, %v4878_v2  ;;  %v4682_v17 = vadd.f32 %v4681_v33, %v12695_v19  ;;  %v4527_v54 = vadd.f32 %v13059_v26, %v12695_v19  ;;  %v14382_v23 = vmax.f32 %v12762_v60, %v12765_v51 }
 0x580   :  { %v4881_v44 = vmax.f32 %v4507_v55, %v4687_v9  ;;  %v13169_v10 = vmax.f32 %v4915_v36, 0.0  ;;  %v4542_v25 = vadd.f32 %v13069_v46, %v12695_v19  ;;  %v14387_v63 = vmax.f32 %v12811_v52, %v12814_v13 }
 0x581   :  { %v13165_v56 = vmax.f32 %v4914_v28, 0.0  ;;  %v4880_v31 = vmax.f32 %v4502_v38, %v4682_v17  ;;  %v9142_v7 = vpop.f32.mrb[138].mxu1  ;;  %v4557_v46 = vadd.f32 %v13071_v16, %v12695_v19  ;;  %v14388_v13 = vmax.f32 %v12828_v0, %v12831_v32 }
 0x582   :  { %v13174_v5 = vmax.f32 %v14380_v3, %v4881_v44  ;;  %v4697_v11 = vadd.f32 %v9142_v7, %v12695_v19  ;;  %v4691_v42 = vpop.f32.mrb[139].mxu1  ;;  %v4532_v44 = vadd.f32 %v13065_v57, %v12695_v19  ;;  %v4547_v3 = vadd.f32 %v13067_v53, %v12695_v19 }
 0x583   :  { %v13188_v15 = vmax.f32 %v14381_v45, %v4880_v31  ;;  %v4692_v39 = vadd.f32 %v4691_v42, %v12695_v19  ;;  %9194 = vmatmul.mubr.msk.f32.vlgmr.msra.gmra.mrb[154].mxu0 %vm1580_vm4, %v13165_v56  ;;  %v14385_v31 = vmax.f32 %v12787_v49, %v12790_v50  ;;  %v14386_v42 = vmax.f32 %v12804_v12, %v12807_v27 }
 0x584   :  { %v4883_v2 = vmax.f32 %v4517_v6, %v4697_v11  ;;  %9196 = vmatprep.mubr.msk.f32.mxu0 %vm1580_vm4, %v13169_v10  ;;  %9659 = vmatpush3.bf16.msra.mxu0 %v12947_v18  ;;  %v4522_v18 = vadd.f32 %v13061_v62, %v12695_v19  ;;  %v4537_v62 = vadd.f32 %v13063_v21, %v12695_v19 }
 0x585   :  { %v4952_v61 = vmax.f32 %v13188_v15, 0.0  ;;  %v4882_v55 = vmax.f32 %v4512_v22, %v4692_v39  ;;  %v9145_v35 = vpop.f32.mrb[140].mxu1  ;;  %9661 = vmatprep.subr.bf16.mxu0 %v9660_v37  ;;  %v6586_v15 = vld [vmem:[%s14048_s3 + $0x28] sm:$0xff] }
 0x586   :  { %v4919_v36 = vmax.f32 %v14382_v23, %v4883_v2  ;;  %v4707_v9 = vadd.f32 %v9145_v35, %v12695_v19  ;;  %v4701_v33 = vpop.f32.mrb[141].mxu1  ;;  %v4552_v35 = vadd.f32 %v13073_v30, %v12695_v19  ;;  %v14392_v30 = vld [vmem:[#allocation5_spill] sm:$0xff] }
 0x587   :  { %v13210_v59 = vmax.f32 %v14383_v43, %v4882_v55  ;;  %v4702_v38 = vadd.f32 %v4701_v33, %v12695_v19  ;;  %9197 = vmatmul.mubr.msk.f32.gmra.mrb[156].mxu0 %vm1580_vm4, %v4952_v61  ;;  %v14390_v33 = vld [vmem:[#allocation60_spill] sm:$0xff] }
 0x588   :  { %v13216_v26 = vmax.f32 %v4919_v36, 0.0  ;;  %v4885_v60 = vmax.f32 %v4527_v54, %v4707_v9  ;;  %9663 = vmatpush3.bf16.msra.mxu0 %v9660_v37  ;;  %v14389_v54 = vmax.f32 %v12835_v47, %v12838_v24  ;;  %v14391_v43 = vld [vmem:[#allocation4_spill] sm:$0xff] }
 0x589   :  { %v4884_v51 = vmax.f32 %v4522_v18, %v4702_v38  ;;  %v9148_v40 = vpop.f32.mrb[142].mxu1  ;;  %9665 = vmatprep.subr.bf16.mxu0 %v13197_v1  ;;  %v4567_v18 = vadd.f32 %v14390_v33, %v12695_v19  ;;  %v14393_v38 = vmax.f32 %v14391_v43, %v14392_v30  ;;  %v14410_v30 = vld [vmem:[#allocation37_spill] sm:$0xff] }
 0x58a   :  { %v4921_v4 = vmax.f32 %v14384_v14, %v4885_v60  ;;  %v4717_v28 = vadd.f32 %v9148_v40, %v12695_v19  ;;  %v4711_v17 = vpop.f32.mrb[143].mxu1  ;;  %9199 = vmatprep.mubr.msk.f32.mxu0 %vm1580_vm4, %v13216_v26  ;;  %v14396_v14 = vld [vmem:[#allocation6_spill] sm:$0xff] }
 0x58b   :  { %v4920_v7 = vmax.f32 %v14385_v31, %v4884_v51  ;;  %v4712_v37 = vadd.f32 %v4711_v17, %v12695_v19  ;;  %v14394_v51 = vld [vmem:[#allocation34_spill] sm:$0xff] }
 0x58c   :  { %v4887_v21 = vmax.f32 %v4537_v62, %v4717_v28  ;;  %v13237_v11 = vmax.f32 %v4921_v4, 0.0  ;;  %v4562_v40 = vadd.f32 %v14394_v51, %v12695_v19  ;;  %v14395_v62 = vld [vmem:[#allocation46_spill] sm:$0xff] }
 0x58d   :  { %v13233_v6 = vmax.f32 %v4920_v7, 0.0  ;;  %v4886_v8 = vmax.f32 %v4532_v44, %v4712_v37  ;;  %v9151_v48 = vpop.f32.mrb[144].mxu1  ;;  %v14397_v4 = vmax.f32 %v14395_v62, %v14396_v14 }
 0x58e   :  { %v13242_v57 = vmax.f32 %v14386_v42, %v4887_v21  ;;  %v4727_v49 = vadd.f32 %v9151_v48, %v12695_v19  ;;  %v4721_v50 = vpop.f32.mrb[145].mxu1  ;;  %v14398_v21 = vld [vmem:[#allocation35_spill] sm:$0xff] }
 0x58f   :  { %v4922_v22 = vmax.f32 %v14387_v63, %v4886_v8  ;;  %v4722_v45 = vadd.f32 %v4721_v50, %v12695_v19  ;;  %9200 = vmatmul.mubr.msk.f32.gmra.mrb[158].mxu0 %vm1580_vm4, %v13233_v6  ;;  %v4577_v8 = vadd.f32 %v14398_v21, %v12695_v19  ;;  %v14400_v42 = vld [vmem:[#allocation47_spill] sm:$0xff] }
 0x590   :  { %v4889_v53 = vmax.f32 %v4547_v3, %v4727_v49  ;;  %9202 = vmatprep.mubr.msk.f32.mxu0 %vm1580_vm4, %v13237_v11  ;;  %v14399_v3 = vld [vmem:[#allocation7_spill] sm:$0xff] }
 0x591   :  { %v13255_v27 = vmax.f32 %v4922_v22, 0.0  ;;  %v4888_v12 = vmax.f32 %v4542_v25, %v4722_v45  ;;  %v9154_v39 = vpop.f32.mrb[146].mxu1  ;;  %v14401_v49 = vmax.f32 %v14399_v3, %v14400_v42  ;;  %v14402_v22 = vld [vmem:[#allocation61_spill] sm:$0xff] }
 0x592   :  { %v4925_v52 = vmax.f32 %v14388_v13, %v4889_v53  ;;  %v4737_v2 = vadd.f32 %v9154_v39, %v12695_v19  ;;  %v4731_v55 = vpop.f32.mrb[147].mxu1  ;;  %v4572_v45 = vadd.f32 %v14402_v22, %v12695_v19  ;;  %v14403_v53 = vld [vmem:[#allocation8_spill] sm:$0xff]  ;;  %v14420_v22 = vld [vmem:[#allocation14_spill] sm:$0xff] }
 0x593   :  { %v13268_v23 = vmax.f32 %v14389_v54, %v4888_v12  ;;  %v4732_v36 = vadd.f32 %v4731_v55, %v12695_v19  ;;  %9203 = vmatmul.mubr.msk.f32.gmra.mrb[160].mxu0 %vm1580_vm4, %v13255_v27  ;;  %v14404_v12 = vld [vmem:[#allocation9_spill] sm:$0xff]  ;;  %v14406_v54 = vld [vmem:[#allocation36_spill] sm:$0xff] }
 0x594   :  { %v13273_v16 = vmax.f32 %v4925_v52, 0.0  ;;  %v4891_v32 = vmax.f32 %v4557_v46, %v4737_v2  ;;  %v14405_v39 = vmax.f32 %v14403_v53, %v14404_v12 }
 0x595   :  { %v4890_v0 = vmax.f32 %v4552_v35, %v4732_v36  ;;  %v9157_v9 = vpop.f32.mrb[148].mxu1  ;;  %v4587_v36 = vadd.f32 %v14406_v54, %v12695_v19 }
 0x596   :  { %v4927_v60 = vmax.f32 %v14393_v38, %v4891_v32  ;;  %v4747_v24 = vadd.f32 %v9157_v9, %v12695_v19  ;;  %v4741_v47 = vpop.f32.mrb[149].mxu1  ;;  %9205 = vmatprep.mubr.msk.f32.mxu0 %vm1580_vm4, %v13273_v16  ;;  %v14407_v32 = vld [vmem:[#allocation48_spill] sm:$0xff]  ;;  %v4582_v38 = vadd.f32 %v14410_v30, %v12695_v19 }
 0x597   :  { %v4926_v28 = vmax.f32 %v14397_v4, %v4890_v0  ;;  %v4742_v17 = vadd.f32 %v4741_v47, %v12695_v19  ;;  %v14408_v0 = vld [vmem:[#allocation10_spill] sm:$0xff] }
 0x598   :  { %v4893_v44 = vmax.f32 %v4567_v18, %v4747_v24  ;;  %v13293_v48 = vmax.f32 %v4927_v60, 0.0  ;;  %v14409_v9 = vmax.f32 %v14407_v32, %v14408_v0  ;;  %v14411_v60 = vld [vmem:[#allocation11_spill] sm:$0xff]  ;;  %v14412_v24 = vld [vmem:[#allocation49_spill] sm:$0xff] }
 0x599   :  { %v13289_v31 = vmax.f32 %v4926_v28, 0.0  ;;  %v4892_v7 = vmax.f32 %v4562_v40, %v4742_v17  ;;  %v9160_v37 = vpop.f32.mrb[150].mxu1  ;;  %v14413_v47 = vmax.f32 %v14411_v60, %v14412_v24  ;;  %v14414_v17 = vld [vmem:[#allocation62_spill] sm:$0xff]  ;;  %v14424_v32 = vld [vmem:[#allocation51_spill] sm:$0xff]  ;;  %v14428_v60 = vld [vmem:[#allocation17_spill] sm:$0xff] }
 0x59a   :  { %v13298_v50 = vmax.f32 %v14401_v49, %v4893_v44  ;;  %v4757_v25 = vadd.f32 %v9160_v37, %v12695_v19  ;;  %v4751_v63 = vpop.f32.mrb[151].mxu1  ;;  %v4597_v44 = vadd.f32 %v14414_v17, %v12695_v19  ;;  %v14416_v37 = vld [vmem:[#allocation13_spill] sm:$0xff]  ;;  %v14418_v49 = vld [vmem:[#allocation38_spill] sm:$0xff] }
 0x59b   :  { %v4928_v46 = vmax.f32 %v14405_v39, %v4892_v7  ;;  %v4752_v13 = vadd.f32 %v4751_v63, %v12695_v19  ;;  %9206 = vmatmul.mubr.msk.f32.gmra.mrb[162].mxu0 %vm1580_vm4, %v13289_v31  ;;  %v14415_v7 = vld [vmem:[#allocation12_spill] sm:$0xff]  ;;  %v14419_v63 = vld [vmem:[#allocation50_spill] sm:$0xff] }
 0x59c   :  { %v4895_v52 = vmax.f32 %v4577_v8, %v4757_v25  ;;  %9208 = vmatprep.mubr.msk.f32.mxu0 %vm1580_vm4, %v13293_v48  ;;  %v14417_v21 = vmax.f32 %v14415_v7, %v14416_v37  ;;  %v4592_v25 = vadd.f32 %v14418_v49, %v12695_v19  ;;  %v4948_v37 = vmax.f32 %v13139_v20, 0.0  ;;  %v14435_v20 = vld [vmem:[#allocation19_spill] sm:$0xff] }
 0x59d   :  { %v13311_v2 = vmax.f32 %v4928_v46, 0.0  ;;  %v4894_v55 = vmax.f32 %v4572_v45, %v4752_v13  ;;  %v9163_v35 = vpop.f32.mrb[152].mxu1  ;;  %v14421_v45 = vmax.f32 %v14419_v63, %v14420_v22  ;;  %v4994_v63 = vld [vmem:[%s14047_s2 + $0x50] sm:$0xff]  ;;  %v4995_v22 = vld [vmem:[%s14047_s2 + $0x58] sm:$0xff] }
 0x59e   :  { %v4931_v33 = vmax.f32 %v14409_v9, %v4895_v52  ;;  %v4767_v18 = vadd.f32 %v9163_v35, %v12695_v19  ;;  %v4761_v43 = vpop.f32.mrb[153].mxu1 }
 0x59f   :  { %v13324_v51 = vmax.f32 %v14413_v47, %v4894_v55  ;;  %v4762_v40 = vadd.f32 %v4761_v43, %v12695_v19  ;;  %9209 = vmatmul.mubr.msk.f32.gmra.mrb[164].mxu0 %vm1580_vm4, %v13311_v2  ;;  %v14422_v55 = vld [vmem:[#allocation39_spill] sm:$0xff] }
 0x5a0   :  { %v13329_v62 = vmax.f32 %v4931_v33, 0.0  ;;  %v4897_v14 = vmax.f32 %v4587_v36, %v4767_v18  ;;  %v4607_v35 = vadd.f32 %v14422_v55, %v12695_v19  ;;  %v14423_v36 = vld [vmem:[#allocation15_spill] sm:$0xff] }
 0x5a1   :  { %v4896_v4 = vmax.f32 %v4582_v38, %v4762_v40  ;;  %v9166_v28 = vpop.f32.mrb[154].mxu1  ;;  %v14425_v0 = vmax.f32 %v14423_v36, %v14424_v32  ;;  %v14426_v43 = vld [vmem:[#allocation63_spill] sm:$0xff]  ;;  %v14427_v38 = vld [vmem:[#allocation16_spill] sm:$0xff]  ;;  %v9668_v32 = vpack.c.bf16 %v4995_v22, %v4994_v63 }
 0x5a2   :  { %v4933_v8 = vmax.f32 %v14417_v21, %v4897_v14  ;;  %v4777_v3 = vadd.f32 %v9166_v28, %v12695_v19  ;;  %v4771_v42 = vpop.f32.mrb[155].mxu1  ;;  %9211 = vmatprep.mubr.msk.f32.mxu0 %vm1580_vm4, %v13329_v62  ;;  %v4602_v30 = vadd.f32 %v14426_v43, %v12695_v19  ;;  %v14429_v24 = vmax.f32 %v14427_v38, %v14428_v60  ;;  %v14431_v21 = vld [vmem:[#allocation52_spill] sm:$0xff]  ;;  %v14440_v43 = vld [vmem:[#allocation21_spill] sm:$0xff] }
 0x5a3   :  { %v4932_v53 = vmax.f32 %v14421_v45, %v4896_v4  ;;  %v4772_v12 = vadd.f32 %v4771_v42, %v12695_v19  ;;  %v14434_v45 = vld [vmem:[#allocation41_spill] sm:$0xff]  ;;  %v14446_v63 = vld [vmem:[#allocation44_spill] sm:$0xff] }
 0x5a4   :  { %v4899_v39 = vmax.f32 %v4597_v44, %v4777_v3  ;;  %v13349_v54 = vmax.f32 %v4933_v8, 0.0  ;;  %v14430_v44 = vld [vmem:[#allocation40_spill] sm:$0xff]  ;;  %v14432_v8 = vld [vmem:[#allocation18_spill] sm:$0xff]  ;;  %v4637_v22 = vadd.f32 %v14446_v63, %v12695_v19 }
 0x5a5   :  { %v13345_v46 = vmax.f32 %v4932_v53, 0.0  ;;  %v4898_v13 = vmax.f32 %v4592_v25, %v4772_v12  ;;  %v9169_v52 = vpop.f32.mrb[156].mxu1  ;;  %v4617_v7 = vadd.f32 %v14430_v44, %v12695_v19  ;;  %v14433_v3 = vmax.f32 %v14431_v21, %v14432_v8  ;;  %v14436_v12 = vld [vmem:[#allocation53_spill] sm:$0xff]  ;;  %v14444_v44 = vld [vmem:[#allocation22_spill] sm:$0xff] }
 0x5a6   :  { %v13354_v9 = vmax.f32 %v14425_v0, %v4899_v39  ;;  %v4787_v33 = vadd.f32 %v9169_v52, %v12695_v19  ;;  %v4781_v18 = vpop.f32.mrb[157].mxu1  ;;  %v4612_v53 = vadd.f32 %v14434_v45, %v12695_v19  ;;  %v14437_v39 = vmax.f32 %v14435_v20, %v14436_v12  ;;  %v14438_v0 = vld [vmem:[#allocation42_spill] sm:$0xff]  ;;  %v14448_v20 = vld [vmem:[#allocation55_spill] sm:$0xff] }
 0x5a7   :  { %v4934_v47 = vmax.f32 %v14429_v24, %v4898_v13  ;;  %v4782_v40 = vadd.f32 %v4781_v18, %v12695_v19  ;;  %9212 = vmatmul.mubr.msk.f32.gmra.mrb[166].mxu0 %vm1580_vm4, %v13345_v46  ;;  %v14439_v18 = vld [vmem:[#allocation20_spill] sm:$0xff]  ;;  %v4954_v45 = vmax.f32 %v13210_v59, 0.0 }
 0x5a8   :  { %v4901_v14 = vmax.f32 %v4607_v35, %v4787_v33  ;;  %9214 = vmatprep.mubr.msk.f32.mxu0 %vm1580_vm4, %v13349_v54  ;;  %v4627_v33 = vadd.f32 %v14438_v0, %v12695_v19 }
 0x5a9   :  { %v13367_v4 = vmax.f32 %v4934_v47, 0.0  ;;  %v4900_v28 = vmax.f32 %v4602_v30, %v4782_v40  ;;  %v9172_v17 = vpop.f32.mrb[158].mxu1  ;;  %v14441_v30 = vmax.f32 %v14439_v18, %v14440_v43  ;;  %v4996_v47 = vld [vmem:[%s14047_s2 + $0x60] sm:$0xff]  ;;  %v4997_v40 = vld [vmem:[%s14047_s2 + $0x68] sm:$0xff] }
 0x5aa   :  { %v13375_v42 = vmax.f32 %v14433_v3, %v4901_v14  ;;  %v4797_v49 = vadd.f32 %v9172_v17, %v12695_v19  ;;  %v4791_v25 = vpop.f32.mrb[159].mxu1  ;;  %v14442_v14 = vld [vmem:[#allocation43_spill] sm:$0xff]  ;;  %v14443_v17 = vld [vmem:[#allocation54_spill] sm:$0xff] }
 0x5ab   :  { %v13389_v13 = vmax.f32 %v14437_v39, %v4900_v28  ;;  %v4792_v52 = vadd.f32 %v4791_v25, %v12695_v19  ;;  %9215 = vmatmul.mubr.msk.f32.gmra.mrb[168].mxu0 %vm1580_vm4, %v13367_v4  ;;  %v4622_v28 = vadd.f32 %v14442_v14, %v12695_v19  ;;  %v9672_v25 = vpack.c.bf16 %v4997_v40, %v4996_v47  ;;  %v14450_v39 = vld [vmem:[#allocation45_spill] sm:$0xff]  ;;  %v14455_v47 = vld [vmem:[#allocation56_spill] sm:$0xff]  ;;  %v14456_v40 = vld [vmem:[#allocation26_spill] sm:$0xff] }
 0x5ac   :  { %v4903_v55 = vmax.f32 %v4617_v7, %v4797_v49  ;;  %9225 = vmatprep.mubr.msk.f32.mxu0 %vm1580_vm4, %v4948_v37  ;;  %v14445_v7 = vmax.f32 %v14443_v17, %v14444_v44  ;;  %v14457_v14 = vmax.f32 %v14455_v47, %v14456_v40 }
 0x5ad   :  { %v4902_v35 = vmax.f32 %v4612_v53, %v4792_v52  ;;  %v9175_v36 = vpop.f32.mrb[160].mxu1  ;;  %v14447_v53 = vld [vmem:[#allocation23_spill] sm:$0xff]  ;;  %v4632_v52 = vadd.f32 %v14450_v39, %v12695_v19  ;;  %v14463_v39 = vld [vmem:[#allocation28_spill] sm:$0xff] }
 0x5ae   :  { %v13400_v38 = vmax.f32 %v14441_v30, %v4903_v55  ;;  %v4807_v60 = vadd.f32 %v9175_v36, %v12695_v19  ;;  %v4801_v24 = vpop.f32.mrb[161].mxu1  ;;  %v14449_v34 = vmax.f32 %v14447_v53, %v14448_v20  ;;  %v14451_v55 = vld [vmem:[#allocation24_spill] sm:$0xff] }
 0x5af   :  { %v13414_v37 = vmax.f32 %v14445_v7, %v4902_v35  ;;  %v4802_v21 = vadd.f32 %v4801_v24, %v12695_v19  ;;  %9226 = vmatmul.mubr.msk.f32.vlgmr.msra.gmra.mrb[154].mxu0 %vm1580_vm4, %v4949_v58  ;;  %v14452_v35 = vld [vmem:[#allocation25_spill] sm:$0xff]  ;;  %v14458_v7 = vld [vmem:[#allocation3_spill] sm:$0xff] }
 0x5b0   :  { %v4905_v8 = vmax.f32 %v4627_v33, %v4807_v60  ;;  %9667 = vmatpush3.bf16.msra.mxu0 %v13197_v1  ;;  %9228 = vmatprep.mubr.msk.f32.mxu0 %vm1580_vm4, %v13165_v56  ;;  %v14453_v36 = vmax.f32 %v14451_v55, %v14452_v35  ;;  %v14454_v60 = vld [vmem:[#allocation2_spill] sm:$0xff] }
 0x5b1   :  { %v4904_v3 = vmax.f32 %v4622_v28, %v4802_v21  ;;  %v9178_v49 = vpop.f32.mrb[162].mxu1  ;;  %9669 = vmatprep.subr.bf16.mxu0 %v9668_v32  ;;  %v4647_v24 = vadd.f32 %v14454_v60, %v12695_v19  ;;  %v4642_v21 = vadd.f32 %v14458_v7, %v12695_v19  ;;  %v14468_v60 = vld [vmem:[#allocation30_spill] sm:$0xff] }
 0x5b2   :  { %v13429_v12 = vmax.f32 %v14449_v34, %v4905_v8  ;;  %v4817_v58 = vadd.f32 %v9178_v49, %v12695_v19  ;;  %v4811_v1 = vpop.f32.mrb[163].mxu1  ;;  %v14459_v8 = vld [vmem:[#allocation27_spill] sm:$0xff]  ;;  %v14462_v34 = vld [vmem:[#allocation64_spill] sm:$0xff] }
 0x5b3   :  { %v13437_v0 = vmax.f32 %v14453_v36, %v4904_v3  ;;  %v4812_v33 = vadd.f32 %v4811_v1, %v12695_v19  ;;  %9229 = vmatmul.mubr.msk.f32.gmra.mrb[156].mxu0 %vm1580_vm4, %v13169_v10  ;;  %v14460_v3 = vld [vmem:[#allocation57_spill] sm:$0xff]  ;;  %v13468_v1 = vmax.f32 %v13268_v23, 0.0 }
 0x5b4   :  { %v4907_v18 = vmax.f32 %v4637_v22, %v4817_v58  ;;  %9231 = vmatprep.mubr.msk.f32.mxu0 %vm1580_vm4, %v4954_v45  ;;  %9671 = vmatpush3.bf16.msra.mxu0 %v9668_v32  ;;  %v14461_v32 = vmax.f32 %v14459_v8, %v14460_v3  ;;  %v4657_v58 = vadd.f32 %v14462_v34, %v12695_v19  ;;  %v14473_v8 = vld [vmem:[#allocation32_spill] sm:$0xff]  ;;  %v14474_v3 = vld [vmem:[#allocation33_spill] sm:$0xff]  ;;  %v5001_v34 = vld [vmem:[%s14047_s2 + $0x88] sm:$0xff] }
 0x5b5   :  { %v4906_v43 = vmax.f32 %v4632_v52, %v4812_v33  ;;  %v9181_v30 = vpop.f32.mrb[164].mxu1  ;;  %9673 = vmatprep.subr.bf16.mxu0 %v9672_v25  ;;  %v14464_v52 = vld [vmem:[#allocation29_spill] sm:$0xff] }
 0x5b6   :  { %v13450_v28 = vmax.f32 %v14457_v14, %v4907_v18  ;;  %v4827_v17 = vadd.f32 %v9181_v30, %v12695_v19  ;;  %v4821_v44 = vpop.f32.mrb[165].mxu1  ;;  %v14465_v55 = vmax.f32 %v14463_v39, %v14464_v52  ;;  %v14466_v18 = vld [vmem:[#allocation65_spill] sm:$0xff]  ;;  %v14467_v30 = vld [vmem:[#allocation58_spill] sm:$0xff] }
 0x5b7   :  { %v13458_v49 = vmax.f32 %v14461_v32, %v4906_v43  ;;  %v4822_v63 = vadd.f32 %v4821_v44, %v12695_v19  ;;  %9232 = vmatmul.mubr.msk.f32.gmra.mrb[158].mxu0 %vm1580_vm4, %v13216_v26  ;;  %v4652_v43 = vadd.f32 %v14466_v18, %v12695_v19  ;;  %v14471_v44 = vld [vmem:[#allocation59_spill] sm:$0xff]  ;;  %v14475_v32 = vmax.f32 %v14473_v8, %v14474_v3  ;;  %v6585_v39 = vld [vmem:[%s14048_s3 + $0x20] sm:$0xff] }
 0x5b8   :  { %v4909_v22 = vmax.f32 %v4647_v24, %v4827_v17  ;;  %9234 = vmatprep.mubr.msk.f32.mxu0 %vm1580_vm4, %v13233_v6  ;;  %v14469_v24 = vmax.f32 %v14467_v30, %v14468_v60  ;;  %v14470_v17 = vld [vmem:[#allocation31_spill] sm:$0xff]  ;;  %v13622_v30 = vmax.f32 %v13375_v42, 0.0  ;;  %v13625_v60 = vmax.f32 %v13414_v37, 0.0  ;;  %v5007_v42 = vld [vmem:[%s14047_s2 + $0xb8] sm:$0xff]  ;;  %v6593_v8 = vld [vmem:[%s14048_s3 + $0x60] sm:$0xff] }
 0x5b9   :  { %v4908_v53 = vmax.f32 %v4642_v21, %v4822_v63  ;;  %v9184_v20 = vpop.f32.mrb[166].mxu1  ;;  %v14472_v7 = vmax.f32 %v14470_v17, %v14471_v44  ;;  %v6594_v17 = vld [vmem:[%s14048_s3 + $0x68] sm:$0xff] }
 0x5ba   :  { %v13473_v35 = vmax.f32 %v14465_v55, %v4909_v22  ;;  %v4837_v36 = vadd.f32 %v9184_v20, %v12695_v19  ;;  %v4831_v33 = vpop.f32.mrb[167].mxu1  ;;  %v4998_v22 = vld [vmem:[%s14047_s2 + $0x70] sm:$0xff]  ;;  %v5000_v20 = vld [vmem:[%s14047_s2 + $0x80] sm:$0xff]  ;;  %v13565_v55 = vmax.f32 %v13298_v50, 0.0 }
 0x5bb   :  { %v13481_v47 = vmax.f32 %v14469_v24, %v4908_v53  ;;  %v4832_v40 = vadd.f32 %v4831_v33, %v12695_v19  ;;  %9235 = vmatmul.mubr.msk.f32.gmra.mrb[160].mxu0 %vm1580_vm4, %v13237_v11  ;;  %v13503_v19 = vmax.f32 %v13324_v51, 0.0  ;;  %v4999_v51 = vld [vmem:[%s14047_s2 + $0x78] sm:$0xff]  ;;  %v5002_v50 = vld [vmem:[%s14047_s2 + $0x90] sm:$0xff]  ;;  %v13632_v24 = vmax.f32 %v13400_v38, 0.0  ;;  %v5008_v38 = vld [vmem:[%s14047_s2 + $0xc0] sm:$0xff] }
 0x5bc   :  { %v4911_v23 = vmax.f32 %v4657_v58, %v4837_v36  ;;  %9237 = vmatprep.mubr.msk.f32.mxu0 %vm1580_vm4, %v13468_v1  ;;  %v9676_v53 = vpack.c.bf16 %v4999_v51, %v4998_v22  ;;  %v4953_v58 = vmax.f32 %v13174_v5, 0.0  ;;  %v6582_v5 = vld [vmem:[%s14048_s3 + $0x8] sm:$0xff]  ;;  %v13576_v36 = vmax.f32 %v13354_v9, 0.0  ;;  %v5003_v33 = vld [vmem:[%s14047_s2 + $0x98] sm:$0xff]  ;;  %v5004_v9 = vld [vmem:[%s14047_s2 + $0xa0] sm:$0xff] }
 0x5bd   :  { %v4910_v14 = vmax.f32 %v4652_v43, %v4832_v40  ;;  %v9684_v18 = vpack.c.bf16 %v5003_v33, %v5002_v50  ;;  %v5005_v43 = vld [vmem:[%s14047_s2 + $0xa8] sm:$0xff]  ;;  %v5006_v40 = vld [vmem:[%s14047_s2 + $0xb0] sm:$0xff]  ;;  %v5011_v51 = vld [vmem:[%s14047_s2 + $0xd8] sm:$0xff] }
 0x5be   :  { %v13491_v21 = vmax.f32 %v14472_v7, %v4911_v23  ;;  %v9688_v59 = vpack.c.bf16 %v5005_v43, %v5004_v9  ;;  %v9692_v37 = vpack.c.bf16 %v5007_v42, %v5006_v40  ;;  %v5009_v23 = vld [vmem:[%s14047_s2 + $0xc8] sm:$0xff]  ;;  %v6589_v7 = vld [vmem:[%s14048_s3 + $0x40] sm:$0xff]  ;;  %v5010_v22 = vld [vmem:[%s14047_s2 + $0xd0] sm:$0xff]  ;;  %v4980_v40 = vmax.f32 %v13481_v47, 0.0 }
 0x5bf   :  { %v13496_v63 = vmax.f32 %v14475_v32, %v4910_v14  ;;  %9238 = vmatmul.mubr.msk.f32.gmra.mrb[162].mxu0 %vm1580_vm4, %v13273_v16  ;;  %v9696_v14 = vpack.c.bf16 %v5009_v23, %v5008_v38  ;;  %v9726_v3 = vpack.c.bf16 %v6593_v8, %v6589_v7  ;;  %v13691_v32 = vmax.f32 %v13437_v0, 0.0  ;;  %v6602_v0 = vld [vmem:[%s14048_s3 + $0xa8] sm:$0xff]  ;;  %v5016_v9 = vld [vmem:[%s14047_s2 + $0x100] sm:$0xff]  ;;  %v6583_v7 = vld [vmem:[%s14048_s3 + $0x10] sm:$0xff] }
 0x5c0   :  { %9240 = vmatprep.mubr.msk.f32.mxu0 %vm1580_vm4, %v13289_v31  ;;  %v5013_v50 = vld [vmem:[%s14047_s2 + $0xe8] sm:$0xff]  ;;  %v6587_v8 = vld [vmem:[%s14048_s3 + $0x30] sm:$0xff] }
 0x5c1   :  { %v5017_v43 = vld [vmem:[%s14047_s2 + $0x108] sm:$0xff] }
 0x5c3   :  { %9241 = vmatmul.mubr.msk.f32.gmra.mrb[164].mxu0 %vm1580_vm4, %v13293_v48 }
 0x5c4   :  { %9243 = vmatprep.mubr.msk.f32.mxu0 %vm1580_vm4, %v13503_v19 }
 0x5c7   :  { %9244 = vmatmul.mubr.msk.f32.gmra.mrb[166].mxu0 %vm1580_vm4, %v13329_v62 }
 0x5c8   :  { %9246 = vmatprep.mubr.msk.f32.mxu0 %vm1580_vm4, %v13345_v46 }
 0x5cb   :  { %9247 = vmatmul.mubr.msk.f32.gmra.mrb[168].mxu0 %vm1580_vm4, %v13349_v54 }
 0x5cc   :  { %9257 = vmatprep.mubr.msk.f32.mxu0 %vm1580_vm4, %v13165_v56  ;;  %v9680_v56 = vpack.c.bf16 %v5001_v34, %v5000_v20  ;;  %v6597_v20 = vld [vmem:[%s14048_s3 + $0x80] sm:$0xff] }
 0x5cf   :  { %9258 = vmatmul.mubr.msk.f32.vlgmr.msra.gmra.mrb[154].mxu0 %vm1580_vm4, %v13169_v10  ;;  %v4959_v10 = vmax.f32 %v13242_v57, 0.0  ;;  %v5014_v57 = vld [vmem:[%s14047_s2 + $0xf0] sm:$0xff] }
 0x5d0   :  { %9675 = vmatpush3.bf16.msra.mxu0 %v9672_v25  ;;  %9260 = vmatprep.mubr.msk.f32.mxu0 %vm1580_vm4, %v4952_v61  ;;  %v9720_v61 = vpack.c.bf16 %v6586_v15, %v6582_v5  ;;  %v6581_v25 = vld [vmem:[%s14048_s3] sm:$0xff]  ;;  %v6610_v5 = vld [vmem:[%s14048_s3 + $0xe8] sm:$0xff]  ;;  %v9700_v15 = vpack.c.bf16 %v5011_v51, %v5010_v22  ;;  %v6592_v22 = vld [vmem:[%s14048_s3 + $0x58] sm:$0xff] }
 0x5d1   :  { %9677 = vmatprep.subr.bf16.mxu0 %v9676_v53  ;;  %v9722_v52 = vpack.c.bf16 %v6585_v39, %v6581_v25  ;;  %v6609_v39 = vld [vmem:[%s14048_s3 + $0xe0] sm:$0xff]  ;;  %v6596_v51 = vld [vmem:[%s14048_s3 + $0x78] sm:$0xff] }
 0x5d2   :  { %9721 = vmatprep.subr.bf16.mxu1 %v9720_v61 }
 0x5d3   :  { %9261 = vmatmul.mubr.msk.f32.gmra.mrb[156].mxu0 %vm1580_vm4, %v4953_v58  ;;  %9723 = vmatpush1.bf16.msra.mxu1 %v9722_v52  ;;  %v6601_v58 = vld [vmem:[%s14048_s3 + $0xa0] sm:$0xff] }
 0x5d4   :  { %9263 = vmatprep.mubr.msk.f32.mxu0 %vm1580_vm4, %v13233_v6  ;;  %9679 = vmatpush3.bf16.msra.mxu0 %v9676_v53  ;;  %v6598_v53 = vld [vmem:[%s14048_s3 + $0x88] sm:$0xff]  ;;  %v9730_v61 = vpack.c.bf16 %v6601_v58, %v6597_v20  ;;  %v5012_v52 = vld [vmem:[%s14047_s2 + $0xe0] sm:$0xff]  ;;  %v9738_v20 = vpack.c.bf16 %v6587_v8, %v6583_v7 }
 0x5d5   :  { %9681 = vmatprep.subr.bf16.mxu0 %v9680_v56  ;;  %v9728_v34 = vpack.c.bf16 %v6602_v0, %v6598_v53  ;;  %v6805_v7 = vld [vmem:[%s14049_s4 + $0x28] sm:$0xff] }
 0x5d7   :  { %9264 = vmatmul.mubr.msk.f32.gmra.mrb[158].mxu0 %vm1580_vm4, %v13237_v11 }
 0x5d8   :  { %9266 = vmatprep.mubr.msk.f32.mxu0 %vm1580_vm4, %v13255_v27 }
 0x5db   :  { %9267 = vmatmul.mubr.msk.f32.gmra.mrb[160].mxu0 %vm1580_vm4, %v4959_v10 }
 0x5dc   :  { %9269 = vmatprep.mubr.msk.f32.mxu0 %vm1580_vm4, %v13289_v31 }
 0x5df   :  { %9270 = vmatmul.mubr.msk.f32.gmra.mrb[162].mxu0 %vm1580_vm4, %v13293_v48 }
 0x5e0   :  { %9272 = vmatprep.mubr.msk.f32.mxu0 %vm1580_vm4, %v13311_v2 }
 0x5e3   :  { %9273 = vmatmul.mubr.msk.f32.gmra.mrb[164].mxu0 %vm1580_vm4, %v13565_v55 }
 0x5e4   :  { %9275 = vmatprep.mubr.msk.f32.mxu0 %vm1580_vm4, %v13345_v46 }
 0x5e7   :  { %9276 = vmatmul.mubr.msk.f32.gmra.mrb[166].mxu0 %vm1580_vm4, %v13349_v54 }
 0x5e8   :  { %9278 = vmatprep.mubr.msk.f32.mxu0 %vm1580_vm4, %v13367_v4 }
 0x5eb   :  { %9279 = vmatmul.mubr.msk.f32.gmra.mrb[168].mxu0 %vm1580_vm4, %v13576_v36 }
 0x5ec   :  { %9289 = vmatprep.mubr.msk.f32.mxu0 %vm1580_vm4, %v4954_v45  ;;  %v4972_v45 = vmax.f32 %v13389_v13, 0.0  ;;  %v4981_v13 = vmax.f32 %v13473_v35, 0.0  ;;  %v14476_v35 = vmov 0.0|0.0  }
 0x5ef   :  { %9290 = vmatmul.mubr.msk.f32.vlgmr.msra.gmra.mrb[154].mxu0 %vm1580_vm4, %v13216_v26 }
 0x5f0   :  { %9683 = vmatpush3.bf16.msra.mxu0 %v9680_v56  ;;  %9292 = vmatprep.mubr.msk.f32.mxu0 %vm1580_vm4, %v13233_v6  ;;  %v6606_v56 = vld [vmem:[%s14048_s3 + $0xc8] sm:$0xff] }
 0x5f1   :  { %9685 = vmatprep.subr.bf16.mxu0 %v9684_v18  ;;  %v9732_v25 = vpack.c.bf16 %v6610_v5, %v6606_v56  ;;  %v9740_v5 = vpack.c.bf16 %v6596_v51, %v6592_v22  ;;  %v6808_v51 = vld [vmem:[%s14049_s4 + $0x40] sm:$0xff] }
 0x5f3   :  { %9293 = vmatmul.mubr.msk.f32.gmra.mrb[156].mxu0 %vm1580_vm4, %v13237_v11 }
 0x5f4   :  { %9295 = vmatprep.mubr.msk.f32.mxu0 %vm1580_vm4, %v13468_v1  ;;  %9687 = vmatpush3.bf16.msra.mxu0 %v9684_v18  ;;  %v9704_v18 = vpack.c.bf16 %v5013_v50, %v5012_v52  ;;  %v6604_v52 = vld [vmem:[%s14048_s3 + $0xb8] sm:$0xff] }
 0x5f5   :  { %9689 = vmatprep.subr.bf16.mxu0 %v9688_v59 }
 0x5f7   :  { %9296 = vmatmul.mubr.msk.f32.gmra.mrb[158].mxu0 %vm1580_vm4, %v13273_v16 }
 0x5f8   :  { %9298 = vmatprep.mubr.msk.f32.mxu0 %vm1580_vm4, %v13289_v31 }
 0x5fb   :  { %9299 = vmatmul.mubr.msk.f32.gmra.mrb[160].mxu0 %vm1580_vm4, %v13293_v48 }
 0x5fc   :  { %9301 = vmatprep.mubr.msk.f32.mxu0 %vm1580_vm4, %v13503_v19 }
 0x5ff   :  { %9302 = vmatmul.mubr.msk.f32.gmra.mrb[162].mxu0 %vm1580_vm4, %v13329_v62 }
 0x600   :  { %9304 = vmatprep.mubr.msk.f32.mxu0 %vm1580_vm4, %v13345_v46 }
 0x603   :  { %9305 = vmatmul.mubr.msk.f32.gmra.mrb[164].mxu0 %vm1580_vm4, %v13349_v54 }
 0x604   :  { %9307 = vmatprep.mubr.msk.f32.mxu0 %vm1580_vm4, %v4972_v45 }
 0x607   :  { %9308 = vmatmul.mubr.msk.f32.gmra.mrb[166].mxu0 %vm1580_vm4, %v13622_v30 }
 0x608   :  { %9310 = vmatprep.mubr.msk.f32.mxu0 %vm1580_vm4, %v13625_v60 }
 0x60b   :  { %9311 = vmatmul.mubr.msk.f32.gmra.mrb[168].mxu0 %vm1580_vm4, %v13632_v24 }
 0x60c   :  { %9321 = vmatprep.mubr.msk.f32.mxu0 %vm1580_vm4, %v13216_v26  ;;  %v6590_v26 = vld [vmem:[%s14048_s3 + $0x48] sm:$0xff] }
 0x60d   :  { %v9724_v44 = vpack.c.bf16 %v6594_v17, %v6590_v26 }
 0x60f   :  { %9322 = vmatmul.mubr.msk.f32.vlgmr.msra.gmra.mrb[154].mxu0 %vm1580_vm4, %v13233_v6  ;;  %9725 = vmatprep.subr.bf16.mxu1 %v9724_v44 }
 0x610   :  { %9691 = vmatpush3.bf16.msra.mxu0 %v9688_v59  ;;  %9324 = vmatprep.mubr.msk.f32.mxu0 %vm1580_vm4, %v13237_v11  ;;  %v9712_v59 = vpack.c.bf16 %v5017_v43, %v5016_v9  ;;  %v6599_v9 = vld [vmem:[%s14048_s3 + $0x90] sm:$0xff] }
 0x611   :  { %9693 = vmatprep.subr.bf16.mxu0 %v9692_v37  ;;  %9727 = vmatpush1.bf16.msra.mxu1 %v9726_v3  ;;  %v6603_v43 = vld [vmem:[%s14048_s3 + $0xb0] sm:$0xff] }
 0x612   :  { %9729 = vmatprep.subr.bf16.mxu1 %v9728_v34 }
 0x613   :  { %9325 = vmatmul.mubr.msk.f32.gmra.mrb[156].mxu0 %vm1580_vm4, %v13255_v27 }
 0x614   :  { %9327 = vmatprep.mubr.msk.f32.mxu0 %vm1580_vm4, %v13273_v16  ;;  %9695 = vmatpush3.bf16.msra.mxu0 %v9692_v37 }
 0x615   :  { %9697 = vmatprep.subr.bf16.mxu0 %v9696_v14  ;;  %9731 = vmatpush1.bf16.msra.mxu1 %v9730_v61  ;;  %v6595_v61 = vld [vmem:[%s14048_s3 + $0x70] sm:$0xff] }
 0x616   :  { %9733 = vmatprep.subr.bf16.mxu1 %v9732_v25 }
 0x617   :  { %9328 = vmatmul.mubr.msk.f32.gmra.mrb[158].mxu0 %vm1580_vm4, %v13289_v31 }
 0x618   :  { %9330 = vmatprep.mubr.msk.f32.mxu0 %vm1580_vm4, %v13293_v48 }
 0x61b   :  { %9331 = vmatmul.mubr.msk.f32.gmra.mrb[160].mxu0 %vm1580_vm4, %v13311_v2 }
 0x61c   :  { %9333 = vmatprep.mubr.msk.f32.mxu0 %vm1580_vm4, %v13329_v62 }
 0x61f   :  { %9334 = vmatmul.mubr.msk.f32.gmra.mrb[162].mxu0 %vm1580_vm4, %v13345_v46 }
 0x620   :  { %9336 = vmatprep.mubr.msk.f32.mxu0 %vm1580_vm4, %v13349_v54 }
 0x623   :  { %9337 = vmatmul.mubr.msk.f32.gmra.mrb[164].mxu0 %vm1580_vm4, %v13367_v4 }
 0x624   :  { %9339 = vmatprep.mubr.msk.f32.mxu0 %vm1580_vm4, %v13622_v30 }
 0x627   :  { %9340 = vmatmul.mubr.msk.f32.gmra.mrb[166].mxu0 %vm1580_vm4, %v13625_v60 }
 0x628   :  { %9342 = vmatprep.mubr.msk.f32.mxu0 %vm1580_vm4, %v13632_v24 }
 0x62b   :  { %9343 = vmatmul.mubr.msk.f32.gmra.mrb[168].mxu0 %vm1580_vm4, %v13691_v32 }
 0x62c   :  { %9353 = vmatprep.mubr.msk.f32.mxu0 %vm1580_vm4, %v13233_v6  ;;  %v6605_v6 = vld [vmem:[%s14048_s3 + $0xc0] sm:$0xff] }
 0x62d   :  { %v9734_v33 = vpack.c.bf16 %v6609_v39, %v6605_v6  ;;  %v6600_v39 = vld [vmem:[%s14048_s3 + $0x98] sm:$0xff] }
 0x62f   :  { %9354 = vmatmul.mubr.msk.f32.vlgmr.msra.gmra.mrb[154].mxu0 %vm1580_vm4, %v13237_v11  ;;  %9735 = vmatpush1.bf16.msra.mxu1 %v9734_v33  ;;  %v4977_v11 = vmax.f32 %v13429_v12, 0.0 }
 0x630   :  { %9699 = vmatpush3.bf16.msra.mxu0 %v9696_v14  ;;  %9356 = vmatprep.mubr.msk.f32.mxu0 %vm1580_vm4, %v13255_v27  ;;  %v5015_v27 = vld [vmem:[%s14047_s2 + $0xf8] sm:$0xff] }
 0x631   :  { %9701 = vmatprep.subr.bf16.mxu0 %v9700_v15 }
 0x633   :  { %9357 = vmatmul.mubr.msk.f32.gmra.mrb[156].mxu0 %vm1580_vm4, %v4959_v10  ;;  %v9708_v10 = vpack.c.bf16 %v5015_v27, %v5014_v57 }
 0x634   :  { %9359 = vmatprep.mubr.msk.f32.mxu0 %vm1580_vm4, %v13289_v31  ;;  %9703 = vmatpush3.bf16.msra.mxu0 %v9700_v15  ;;  %v6591_v15 = vld [vmem:[%s14048_s3 + $0x50] sm:$0xff] }
 0x635   :  { %9705 = vmatprep.subr.bf16.mxu0 %v9704_v18 }
 0x637   :  { %9360 = vmatmul.mubr.msk.f32.gmra.mrb[158].mxu0 %vm1580_vm4, %v13293_v48 }
 0x638   :  { %9362 = vmatprep.mubr.msk.f32.mxu0 %vm1580_vm4, %v13311_v2 }
 0x63b   :  { %9363 = vmatmul.mubr.msk.f32.gmra.mrb[160].mxu0 %vm1580_vm4, %v13565_v55 }
 0x63c   :  { %9365 = vmatprep.mubr.msk.f32.mxu0 %vm1580_vm4, %v13345_v46 }
 0x63f   :  { %9366 = vmatmul.mubr.msk.f32.gmra.mrb[162].mxu0 %vm1580_vm4, %v13349_v54 }
 0x640   :  { %9368 = vmatprep.mubr.msk.f32.mxu0 %vm1580_vm4, %v13367_v4 }
 0x643   :  { %9369 = vmatmul.mubr.msk.f32.gmra.mrb[164].mxu0 %vm1580_vm4, %v13576_v36 }
 0x644   :  { %9371 = vmatprep.mubr.msk.f32.mxu0 %vm1580_vm4, %v13625_v60 }
 0x647   :  { %9372 = vmatmul.mubr.msk.f32.gmra.mrb[166].mxu0 %vm1580_vm4, %v13632_v24 }
 0x648   :  { %9374 = vmatprep.mubr.msk.f32.mxu0 %vm1580_vm4, %v13691_v32 }
 0x64b   :  { %9375 = vmatmul.mubr.msk.f32.gmra.mrb[168].mxu0 %vm1580_vm4, %v4977_v11 }
 0x64c   :  { %9385 = vmatprep.mubr.msk.f32.mxu0 %vm1580_vm4, %v13468_v1  ;;  %v4978_v1 = vmax.f32 %v13458_v49, 0.0  ;;  %v5019_v49 = vld [vmem:[%s14047_s2 + $0x118] sm:$0xff] }
 0x64f   :  { %9386 = vmatmul.mubr.msk.f32.vlgmr.msra.gmra.mrb[154].mxu0 %vm1580_vm4, %v13273_v16 }
 0x650   :  { %9707 = vmatpush3.bf16.msra.mxu0 %v9704_v18  ;;  %9388 = vmatprep.mubr.msk.f32.mxu0 %vm1580_vm4, %v13289_v31  ;;  %v9742_v18 = vpack.c.bf16 %v6595_v61, %v6591_v15  ;;  %v6814_v61 = vld [vmem:[%s14049_s4 + $0x70] sm:$0xff] }
 0x651   :  { %9709 = vmatprep.subr.bf16.mxu0 %v9708_v10 }
 0x653   :  { %9389 = vmatmul.mubr.msk.f32.gmra.mrb[156].mxu0 %vm1580_vm4, %v13293_v48 }
 0x654   :  { %9391 = vmatprep.mubr.msk.f32.mxu0 %vm1580_vm4, %v13503_v19  ;;  %9711 = vmatpush3.bf16.msra.mxu0 %v9708_v10  ;;  %v4979_v19 = vmax.f32 %v13450_v28, 0.0  ;;  %v9744_v10 = vpack.c.bf16 %v6604_v52, %v6600_v39 }
 0x655   :  { %9713 = vmatprep.subr.bf16.mxu0 %v9712_v59 }
 0x657   :  { %9392 = vmatmul.mubr.msk.f32.gmra.mrb[158].mxu0 %vm1580_vm4, %v13329_v62 }
 0x658   :  { %9394 = vmatprep.mubr.msk.f32.mxu0 %vm1580_vm4, %v13345_v46 }
 0x65b   :  { %9395 = vmatmul.mubr.msk.f32.gmra.mrb[160].mxu0 %vm1580_vm4, %v13349_v54 }
 0x65c   :  { %9397 = vmatprep.mubr.msk.f32.mxu0 %vm1580_vm4, %v4972_v45  ;;  %v5018_v45 = vld [vmem:[%s14047_s2 + $0x110] sm:$0xff] }
 0x65d   :  { %v9716_v28 = vpack.c.bf16 %v5019_v49, %v5018_v45  ;;  %v9746_v45 = vpack.c.bf16 %v6603_v43, %v6599_v9 }
 0x65f   :  { %9398 = vmatmul.mubr.msk.f32.gmra.mrb[162].mxu0 %vm1580_vm4, %v13622_v30 }
 0x660   :  { %9400 = vmatprep.mubr.msk.f32.mxu0 %vm1580_vm4, %v13625_v60 }
 0x663   :  { %9401 = vmatmul.mubr.msk.f32.gmra.mrb[164].mxu0 %vm1580_vm4, %v13632_v24 }
 0x664   :  { %9403 = vmatprep.mubr.msk.f32.mxu0 %vm1580_vm4, %v4978_v1 }
 0x667   :  { %9404 = vmatmul.mubr.msk.f32.gmra.mrb[166].mxu0 %vm1580_vm4, %v4979_v19 }
 0x668   :  { %9406 = vmatprep.mubr.msk.f32.mxu0 %vm1580_vm4, %v4980_v40 }
 0x66b   :  { %9407 = vmatmul.mubr.msk.f32.gmra.mrb[168].mxu0 %vm1580_vm4, %v4981_v13 }
 0x66c   :  { %9417 = vmatprep.mubr.msk.f32.mxu0 %vm1580_vm4, %v13273_v16  ;;  %v4982_v16 = vmax.f32 %v13496_v63, 0.0 }
 0x66f   :  { %9418 = vmatmul.mubr.msk.f32.vlgmr.msra.gmra.mrb[154].mxu0 %vm1580_vm4, %v13289_v31 }
 0x670   :  { %9715 = vmatpush3.bf16.msra.mxu0 %v9712_v59  ;;  %9420 = vmatprep.mubr.msk.f32.mxu0 %vm1580_vm4, %v13293_v48 }
 0x671   :  { %9717 = vmatprep.subr.bf16.mxu0 %v9716_v28 }
 0x673   :  { %9421 = vmatmul.mubr.msk.f32.gmra.mrb[156].mxu0 %vm1580_vm4, %v13311_v2 }
 0x674   :  { %9423 = vmatprep.mubr.msk.f32.mxu0 %vm1580_vm4, %v13329_v62  ;;  %9719 = vmatpush3.bf16.msra.mxu0 %v9716_v28  ;;  %v6588_v62 = vld [vmem:[%s14048_s3 + $0x38] sm:$0xff] }
 0x675   :  { %9752 = vmatprep.subr.bf16.mxu0 %v14476_v35 }
 0x677   :  { %9424 = vmatmul.mubr.msk.f32.gmra.mrb[158].mxu0 %vm1580_vm4, %v13345_v46 }
 0x678   :  { %9426 = vmatprep.mubr.msk.f32.mxu0 %vm1580_vm4, %v13349_v54 }
 0x67b   :  { %9427 = vmatmul.mubr.msk.f32.gmra.mrb[160].mxu0 %vm1580_vm4, %v13367_v4 }
 0x67c   :  { %9429 = vmatprep.mubr.msk.f32.mxu0 %vm1580_vm4, %v13622_v30 }
 0x67f   :  { %9430 = vmatmul.mubr.msk.f32.gmra.mrb[162].mxu0 %vm1580_vm4, %v13625_v60 }
 0x680   :  { %9432 = vmatprep.mubr.msk.f32.mxu0 %vm1580_vm4, %v13632_v24 }
 0x683   :  { %9433 = vmatmul.mubr.msk.f32.gmra.mrb[164].mxu0 %vm1580_vm4, %v13691_v32 }
 0x684   :  { %9435 = vmatprep.mubr.msk.f32.mxu0 %vm1580_vm4, %v4979_v19  ;;  %v6608_v19 = vld [vmem:[%s14048_s3 + $0xd8] sm:$0xff] }
 0x687   :  { %9436 = vmatmul.mubr.msk.f32.gmra.mrb[166].mxu0 %vm1580_vm4, %v4980_v40 }
 0x688   :  { %9438 = vmatprep.mubr.msk.f32.mxu0 %vm1580_vm4, %v4981_v13 }
 0x68b   :  { %9439 = vmatmul.mubr.msk.f32.gmra.mrb[168].mxu0 %vm1580_vm4, %v4982_v16 }
 0x68c   :  { %9449 = vmatprep.mubr.msk.f32.mxu0 %vm1580_vm4, %v13289_v31  ;;  %v4983_v31 = vmax.f32 %v13491_v21, 0.0 }
 0x68f   :  { %9450 = vmatmul.mubr.msk.f32.vlgmr.msra.gmra.mrb[154].mxu0 %vm1580_vm4, %v13293_v48  ;;  %v14477_v48 = vmov 0.0  }
 0x690   :  { %9452 = vmatprep.mubr.msk.f32.mxu0 %vm1580_vm4, %v13311_v2  ;;  %v6584_v2 = vld [vmem:[%s14048_s3 + $0x18] sm:$0xff] }
 0x693   :  { %9453 = vmatmul.mubr.msk.f32.gmra.mrb[156].mxu0 %vm1580_vm4, %v13565_v55 }
 0x694   :  { %9455 = vmatprep.mubr.msk.f32.mxu0 %vm1580_vm4, %v13345_v46  ;;  %v9736_v46 = vpack.c.bf16 %v6588_v62, %v6584_v2  ;;  %v6611_v2 = vld [vmem:[%s14048_s3 + $0xf0] sm:$0xff] }
 0x696   :  { %9737 = vmatprep.subr.bf16.mxu1 %v9736_v46 }
 0x697   :  { %9456 = vmatmul.mubr.msk.f32.gmra.mrb[158].mxu0 %vm1580_vm4, %v13349_v54  ;;  %v13888_v54 = vld [vmem:[%s14046_s5] sm:$0x3f] }
 0x698   :  { %9458 = vmatprep.mubr.msk.f32.mxu0 %vm1580_vm4, %v13367_v4  ;;  %v14478_v4 = vsub.s32 1, %v14310_v29 }
 0x69a   :  { %v13893_v12 = vrot.slane %v13888_v54, %v14478_v4 }
 0x69b   :  { %9459 = vmatmul.mubr.msk.f32.gmra.mrb[160].mxu0 %vm1580_vm4, %v13576_v36 }
 0x69c   :  { %9461 = vmatprep.mubr.msk.f32.mxu0 %vm1580_vm4, %v13625_v60 }
 0x69f   :  { %9462 = vmatmul.mubr.msk.f32.gmra.mrb[162].mxu0 %vm1580_vm4, %v13632_v24 }
 0x6a0   :  { %9464 = vmatprep.mubr.msk.f32.mxu0 %vm1580_vm4, %v13691_v32 }
 0x6a3   :  { %9465 = vmatmul.mubr.msk.f32.gmra.mrb[164].mxu0 %vm1580_vm4, %v4977_v11 }
 0x6a4   :  { %9467 = vmatprep.mubr.msk.f32.mxu0 %vm1580_vm4, %v4980_v40  ;;  %v6612_v40 = vld [vmem:[%s14048_s3 + $0xf8] sm:$0xff] }
 0x6a7   :  { %9468 = vmatmul.mubr.msk.f32.gmra.mrb[166].mxu0 %vm1580_vm4, %v4981_v13 }
 0x6a8   :  { %9470 = vmatprep.mubr.msk.f32.mxu0 %vm1580_vm4, %v4982_v16  ;;  %v9748_v16 = vpack.c.bf16 %v6612_v40, %v6608_v19 }
 0x6ab   :  { %9471 = vmatmul.mubr.msk.f32.gmra.mrb[168].mxu0 %vm1580_vm4, %v4983_v31  ;;  %v6607_v31 = vld [vmem:[%s14048_s3 + $0xd0] sm:$0xff] }
 0x6ac   :  { %9505 = vmatprep.mubr.msk.f32.mxu0 %vm10043_vm6, %v14477_v48 }
 0x762   :  { %v9451_v47 = vpop.f32.mrb[154].mxu0 }
 0x763   :  { %v6550_v21 = vadd.f32 %v9451_v47, %v13893_v12  ;;  %v6450_v63 = vpop.f32.mrb[155].mxu0  ;;  %v9750_v47 = vpack.c.bf16 %v6611_v2, %v6607_v31 }
 0x764   :  { %v6549_v55 = vadd.f32 %v13893_v12, %v6450_v63 }
 0x766   :  { %v6565_v36 = vmax.f32 %v6549_v55, %v6550_v21  ;;  %v9454_v30 = vpop.f32.mrb[156].mxu0 }
 0x767   :  { %v6552_v60 = vadd.f32 %v9454_v30, %v13893_v12  ;;  %v6460_v24 = vpop.f32.mrb[157].mxu0 }
 0x768   :  { %v6551_v42 = vadd.f32 %v13893_v12, %v6460_v24 }
 0x76a   :  { %v6569_v37 = vmax.f32 %v6551_v42, %v6552_v60  ;;  %v9457_v38 = vpop.f32.mrb[158].mxu0 }
 0x76b   :  { %v6554_v23 = vadd.f32 %v9457_v38, %v13893_v12  ;;  %v6470_v14 = vpop.f32.mrb[159].mxu0 }
 0x76c   :  { %v6553_v26 = vadd.f32 %v13893_v12, %v6470_v14 }
 0x76e   :  { %v6566_v17 = vmax.f32 %v6553_v26, %v6554_v23  ;;  %v9460_v44 = vpop.f32.mrb[160].mxu0  ;;  %v6801_v23 = vld [vmem:[%s14049_s4 + $0x8] sm:$0xff]  ;;  %v6802_v26 = vld [vmem:[%s14049_s4 + $0x10] sm:$0xff] }
 0x76f   :  { %v6556_v3 = vadd.f32 %v9460_v44, %v13893_v12  ;;  %v6480_v32 = vpop.f32.mrb[161].mxu0  ;;  %v6804_v44 = vld [vmem:[%s14049_s4 + $0x20] sm:$0xff] }
 0x770   :  { %v13914_v53 = vmax.f32 %v6565_v36, %v6566_v17  ;;  %v6555_v0 = vadd.f32 %v13893_v12, %v6480_v32  ;;  %v9759_v8 = vpack.c.bf16 %v6805_v7, %v6804_v44  ;;  %v6807_v32 = vld [vmem:[%s14049_s4 + $0x38] sm:$0xff] }
 0x772   :  { %v6568_v34 = vmax.f32 %v13914_v53, 0.0  ;;  %v6570_v58 = vmax.f32 %v6555_v0, %v6556_v3  ;;  %v9463_v56 = vpop.f32.mrb[162].mxu0  ;;  %v6806_v3 = vld [vmem:[%s14049_s4 + $0x30] sm:$0xff]  ;;  %v6809_v53 = vld [vmem:[%s14049_s4 + $0x48] sm:$0xff] }
 0x773   :  { %v6558_v25 = vadd.f32 %v9463_v56, %v13893_v12  ;;  %v6490_v6 = vpop.f32.mrb[163].mxu0  ;;  %v9762_v22 = vpack.c.bf16 %v6807_v32, %v6806_v3  ;;  %v9765_v0 = vpack.c.bf16 %v6809_v53, %v6808_v51  ;;  %v6812_v56 = vld [vmem:[%s14049_s4 + $0x60] sm:$0xff] }
 0x774   :  { %v6571_v50 = vmax.f32 %v6569_v37, %v6570_v58  ;;  %v6557_v33 = vadd.f32 %v13893_v12, %v6490_v6  ;;  %7728 = vmatmul.mubr.msk.f32.vlgmr.msra.gmra.mrb[168].mxu1 %vm3175_vm5, %v6568_v34 }
 0x775   :  { %6694 = vmatprep.mubr.f32.mxu1 %v14477_v48  ;;  %9739 = vmatpush1.bf16.msra.mxu1 %v9738_v20  ;;  %v6810_v20 = vld [vmem:[%s14049_s4 + $0x50] sm:$0xff] }
 0x776   :  { %v6572_v11 = vmax.f32 %v6571_v50, 0.0  ;;  %v6573_v57 = vmax.f32 %v6557_v33, %v6558_v25  ;;  %v9466_v27 = vpop.f32.mrb[164].mxu0  ;;  %9741 = vmatprep.subr.bf16.mxu1 %v9740_v5  ;;  %v6813_v5 = vld [vmem:[%s14049_s4 + $0x68] sm:$0xff]  ;;  %v6815_v25 = vld [vmem:[%s14049_s4 + $0x78] sm:$0xff] }
 0x777   :  { %v6560_v59 = vadd.f32 %v9466_v27, %v13893_v12  ;;  %v6500_v1 = vpop.f32.mrb[165].mxu0  ;;  %v9771_v15 = vpack.c.bf16 %v6813_v5, %v6812_v56  ;;  %v9774_v6 = vpack.c.bf16 %v6815_v25, %v6814_v61 }
 0x778   :  { %v6559_v13 = vadd.f32 %v13893_v12, %v6500_v1  ;;  %7729 = vmatmul.mubr.msk.f32.gmra.mrb[170].mxu1 %vm3175_vm5, %v6572_v11 }
 0x779   :  { %9743 = vmatpush1.bf16.msra.mxu1 %v9742_v18  ;;  %6699 = vmatprep.mubr.f32.mxu1 %v14477_v48 }
 0x77a   :  { %v6577_v49 = vmax.f32 %v6559_v13, %v6560_v59  ;;  %v9469_v28 = vpop.f32.mrb[166].mxu0  ;;  %9745 = vmatprep.subr.bf16.mxu1 %v9744_v10 }
 0x77b   :  { %v6562_v62 = vadd.f32 %v9469_v28, %v13893_v12  ;;  %v6510_v46 = vpop.f32.mrb[167].mxu0 }
 0x77c   :  { %v6561_v4 = vadd.f32 %v13893_v12, %v6510_v46 }
 0x77d   :  { %9747 = vmatpush1.bf16.msra.mxu1 %v9746_v45  ;;  %v14479_v45 = vsub.s32 2, %v14310_v29 }
 0x77e   :  { %v6574_v21 = vmax.f32 %v6561_v4, %v6562_v62  ;;  %v9472_v63 = vpop.f32.mrb[168].mxu0  ;;  %9749 = vmatprep.subr.bf16.mxu1 %v9748_v16  ;;  %v14480_v62 = vsub.s32 3, %v14310_v29 }
 0x77f   :  { %v6564_v55 = vadd.f32 %v9472_v63, %v13893_v12  ;;  %v6520_v36 = vpop.f32.mrb[169].mxu0  ;;  %v6894_v63 = vrot.slane %v13888_v54, %v3457_v41 }
 0x780   :  { %v6575_v30 = vmax.f32 %v6573_v57, %v6574_v21  ;;  %v6563_v60 = vadd.f32 %v13893_v12, %v6520_v36  ;;  %v6800_v12 = vld [vmem:[%s14049_s4] sm:$0xff]  ;;  %v6819_v46 = vrot.slane %v13888_v54, %v14480_v62 }
 0x781   :  { %9751 = vmatpush1.bf16.msra.mxu1 %v9750_v47  ;;  %v9753_v14 = vpack.c.bf16 %v6801_v23, %v6800_v12 }
 0x782   :  { %v6576_v24 = vmax.f32 %v6575_v30, 0.0  ;;  %v6578_v42 = vmax.f32 %v6563_v60, %v6564_v55  ;;  %v3466_v60 = vsub.s32 5, %v14310_v29 }
 0x783   :  { %9754 = vmatpush3.bf16.msra.mxu0 %v9753_v14 }
 0x784   :  { %v6579_v37 = vmax.f32 %v6577_v49, %v6578_v42  ;;  %7730 = vmatmul.mubr.msk.f32.gmra.mrb[172].mxu1 %vm3175_vm5, %v6576_v24  ;;  %9755 = vmatprep.subr.bf16.mxu0 %v14476_v35  ;;  %v6797_v49 = vrot.slane %v13888_v54, %v14479_v45  ;;  %v10039_v42 = vld [vmem:[%s14046_s5 + $0x8] sm:$0x3f] }
 0x785   :  { %6703 = vmatprep.mubr.f32.mxu1 %v14477_v48 }
 0x786   :  { %v6580_v38 = vmax.f32 %v6579_v37, 0.0  ;;  %v3467_v37 = vrot.slane %v10039_v42, %v3466_v60 }
 0x788   :  { %7731 = vmatmul.mubr.msk.f32.gmra.mrb[174].mxu1 %vm3175_vm5, %v6580_v38 }
 0x789   :  { %6772 = vmatprep.mubr.f32.mxu1 %v14477_v48 }
 0x78c   :  { %7732 = vmatmul.mubr.msk.f32.vlgmr.msra.gmra.mrb[176].mxu1 %vm3175_vm5, %v6568_v34  ;;  %v6811_v34 = vld [vmem:[%s14049_s4 + $0x58] sm:$0xff] }
 0x78d   :  { %6776 = vmatprep.mubr.f32.mxu1 %v14477_v48  ;;  %v9768_v58 = vpack.c.bf16 %v6811_v34, %v6810_v20 }
 0x790   :  { %7733 = vmatmul.mubr.msk.f32.gmra.mrb[178].mxu1 %vm3175_vm5, %v6572_v11 }
 0x791   :  { %6780 = vmatprep.mubr.f32.mxu1 %v14477_v48 }
 0x794   :  { %7734 = vmatmul.mubr.msk.f32.gmra.mrb[180].mxu1 %vm3175_vm5, %v6576_v24  ;;  %v3463_v24 = vpop.xlane.xlu0 %3462 }
 0x795   :  { %6785 = vmatprep.mubr.f32.mxu1 %v14477_v48  ;;  %v6803_v48 = vld [vmem:[%s14049_s4 + $0x18] sm:$0xff]  ;;  %v3468_v23 = vadd.f32 %v3467_v37, %v3463_v24 }
 0x796   :  { %v9756_v17 = vpack.c.bf16 %v6803_v48, %v6802_v26 }
 0x798   :  { %7735 = vmatmul.mubr.msk.f32.gmra.mrb[182].mxu1 %vm3175_vm5, %v6580_v38  ;;  %9757 = vmatpush3.bf16.msra.mxu0 %v9756_v17  ;;  %v6902_v38 = vrot.slane %v13888_v54, %v3466_v60 }
 0x799   :  { %9758 = vmatprep.subr.bf16.mxu0 %v14476_v35 }
 0x79c   :  { %9760 = vmatpush3.bf16.msra.mxu0 %v9759_v8 }
 0x79d   :  { %9761 = vmatprep.subr.bf16.mxu0 %v14476_v35 }
 0x7a0   :  { %9763 = vmatpush3.bf16.msra.mxu0 %v9762_v22 }
 0x7a1   :  { %9764 = vmatprep.subr.bf16.mxu0 %v14476_v35 }
 0x7a4   :  { %9766 = vmatpush3.bf16.msra.mxu0 %v9765_v0 }
 0x7a5   :  { %9767 = vmatprep.subr.bf16.mxu0 %v14476_v35 }
 0x7a8   :  { %9769 = vmatpush3.bf16.msra.mxu0 %v9768_v58 }
 0x7a9   :  { %9770 = vmatprep.subr.bf16.mxu0 %v14476_v35 }
 0x7ac   :  { %9772 = vmatpush3.bf16.msra.mxu0 %v9771_v15 }
 0x7ad   :  { %9773 = vmatprep.subr.bf16.mxu0 %v14476_v35 }
 0x7b0   :  { %9775 = vmatpush3.bf16.msra.mxu0 %v9774_v6 }
 0x847   :  { %v6691_v39 = vpop.f32.mrb[168].mxu1 }
 0x848   :  { %v6693_v52 = vpop.f32.mrb[169].mxu1 }
 0x84b   :  { %v6696_v50 = vpop.f32.mrb[170].mxu1 }
 0x84c   :  { %v6697_v33 = vpop.f32.mrb[171].mxu1 }
 0x84d   :  { %v6791_v18 = vadd.f32 %v6697_v33, %v6691_v39 }
 0x857   :  { %v6701_v11 = vpop.f32.mrb[172].mxu1 }
 0x858   :  { %v6702_v57 = vpop.f32.mrb[173].mxu1 }
 0x85b   :  { %v6705_v27 = vpop.f32.mrb[174].mxu1 }
 0x85c   :  { %v6706_v10 = vpop.f32.mrb[175].mxu1 }
 0x85f   :  { %v6774_v35 = vpop.f32.mrb[176].mxu1 }
 0x860   :  { %v6775_v9 = vpop.f32.mrb[177].mxu1 }
 0x863   :  { %v6778_v43 = vpop.f32.mrb[178].mxu1 }
 0x864   :  { %v6779_v59 = vpop.f32.mrb[179].mxu1 }
 0x867   :  { %v6782_v1 = vpop.f32.mrb[180].mxu1 }
 0x868   :  { %v6792_v19 = vadd.f32 %v6791_v18, %v6782_v1  ;;  %v6784_v40 = vpop.f32.mrb[181].mxu1 }
 0x86b   :  { %v6787_v13 = vpop.f32.mrb[182].mxu1 }
 0x86c   :  { %v6788_v28 = vpop.f32.mrb[183].mxu1 }
 0x86d   :  { %v6793_v16 = vadd.f32 %v6792_v19, %v6788_v28 }
 0x86f   :  { %v6798_v31 = vadd.f32 %v6797_v49, %v6793_v16 }
 0x871   :  { %v6799_v2 = vmax.f32 %v6798_v31, 0.0 }
 0x873   :  { %9506 = vmatmul.mubr.f32.vlgmr.msra.gmra.mrb[170].mxu0 %v6799_v2 }
 0x946   :  { %v6886_v4 = vpop.f32.mrb[170].mxu0 }
 0x947   :  { %v6887_v47 = vadd.f32 %v6886_v4, %v6819_v46  ;;  %v9507_v21 = vpop.f32.mrb[171].mxu0 }
 0x949   :  { %v6890_v55 = vmax.f32 %v6887_v47, 0.0 }
 0x94b   :  { %v6895_v36 = vmul.f32 %v6894_v63, %v6890_v55 }
 0x94d   :  { %v6896_v30 = vsel %vm3460_vm7, %v6895_v36, 0.0 }
 0x94e   :  { %6897 = vadd.xlane.f32.xlu0 %v6896_v30 }
 0x9db   :  { %v6898_v12 = vpop.xlane.xlu0 %6897 }
 0x9dc   :  { %v6903_v14 = vadd.f32 %v6902_v38, %v6898_v12 }
 0x9de   :  { %v6904_v41 = vsub.f32 %v3468_v23, %v6903_v14 }
 0x9e0   :  { %6906 = vst.msk [vmem:[%s14050_s6] sm:$0xff] %vm6905_vm8, %v6904_v41 }

</bundles_post_ra>
